<compile_context>
chip_gen: v7x
topology: tpu7x:2x2x1
jax: 0.10.0
libtpu: 0.0.40
codegen_flags: <defaults>
</compile_context>

<pallas_src>
import jax
import jax.numpy as jnp
from jax import lax
from jax.experimental import pallas as pl
from jax.experimental.pallas import tpu as pltpu

IN_DIM = 2048
H1_DIM = 1000
H1_PAD = 1024          # lane-aligned (multiple of 128) padded hidden dim
H2_DIM = 128
BN_DIM = 16            # bn_dim
NUM_CLASSES = 10       # unused in forward, kept for parity with the module


def _round_up(x, m):
    return (x + m - 1) // m * m


def _dense_bottleneck_kernel(x_ref, w1_ref, b1_ref, w2_ref, b2_ref,
                             w3_ref, b3_ref, o_ref):
    x = x_ref[...]                                           # (TB, 2048) f32

    # F.normalize(x): x / max(||x||_2, 1e-12).  Folded as a per-row scale
    # applied to the first matmul's output (mathematically identical since
    # the bias is added after the scale).  Reduction -> XLU, rsqrt -> EUP.
    sumsq = jnp.sum(x * x, axis=-1, keepdims=True)           # (TB, 1) f32
    inv_norm = lax.rsqrt(jnp.maximum(sumsq, 1e-24))          # == 1/max(||x||,1e-12)

    # 2048 -> 1024 (padded 1000): bf16 MXU operands, f32 accumulation.
    h1 = jnp.dot(x.astype(jnp.bfloat16), w1_ref[...],
                 preferred_element_type=jnp.float32)
    h1 = jnp.maximum(h1 * inv_norm + b1_ref[...], 0.0)       # f32 VPU math

    # 1024 -> 128
    h2 = jnp.dot(h1.astype(jnp.bfloat16), w2_ref[...],
                 preferred_element_type=jnp.float32) + b2_ref[...]
    h2 = jnp.maximum(h2, 0.0)

    # 128 -> BN_DIM  (block last dim == full array dim, so the spec is legal)
    o_ref[...] = (jnp.dot(h2.astype(jnp.bfloat16), w3_ref[...],
                          preferred_element_type=jnp.float32) + b3_ref[...])


def dense_bottleneck_forward(x, kparams, *, block_b=512):
    """x: (B, 2048) f32; kparams: prepared (padded, bf16-weight) params.

    block_b: batch tile.  512 keeps the per-step working set around ~22 MiB
    (safe on v7x's 64 MiB VMEM); on v5e/v6e (128 MiB VMEM) larger tiles also
    work if desired.
    """
    B = x.shape[0]
    TB = _round_up(min(block_b, _round_up(B, 8)), 8)
    B_pad = _round_up(B, TB)
    if B_pad != B:
        # Zero rows stay zero through the network body (rsqrt clamp keeps them
        # finite); padded outputs are sliced off below.
        x = jnp.pad(x, ((0, B_pad - B), (0, 0)))

    w1, b1 = kparams["w1"], kparams["b1"]
    w2, b2 = kparams["w2"], kparams["b2"]
    w3, b3 = kparams["w3"], kparams["b3"]

    # Weights/biases: constant block index -> DMA'd once, resident in VMEM.
    resident = lambda shape: pl.BlockSpec(shape, lambda i: (0, 0))

    out = pl.pallas_call(
        _dense_bottleneck_kernel,
        out_shape=jax.ShapeDtypeStruct((B_pad, BN_DIM), jnp.float32),
        grid_spec=pltpu.PrefetchScalarGridSpec(
            num_scalar_prefetch=0,
            grid=(B_pad // TB,),
            in_specs=[
                pl.BlockSpec((TB, IN_DIM), lambda i: (i, 0)),   # x: batch-tiled
                resident(w1.shape), resident(b1.shape),
                resident(w2.shape), resident(b2.shape),
                resident(w3.shape), resident(b3.shape),
            ],
            out_specs=pl.BlockSpec((TB, BN_DIM), lambda i: (i, 0)),
        ),
        compiler_params=pltpu.CompilerParams(
            dimension_semantics=("parallel",),     # megacore split on v7x
            vmem_limit_bytes=32 << 20,
        ),
    )(x, w1, b1, w2, b2, w3, b3)
    return out[:B]


def init_params(key):
    """f32 reference params, shapes matching the PyTorch module.

    Weights: xavier_uniform (as in __init__); biases: PyTorch Linear default
    U(-1/sqrt(fan_in), 1/sqrt(fan_in)).  Stored as (in, out) = W.T.
    """
    def xavier(k, fan_in, fan_out):
        limit = (6.0 / (fan_in + fan_out)) ** 0.5
        return jax.random.uniform(k, (fan_in, fan_out), jnp.float32, -limit, limit)

    def bias(k, fan_in, fan_out):
        bound = 1.0 / (fan_in ** 0.5)
        return jax.random.uniform(k, (1, fan_out), jnp.float32, -bound, bound)

    ks = jax.random.split(key, 6)
    return {
        "w1": xavier(ks[0], IN_DIM, H1_DIM), "b1": bias(ks[1], IN_DIM, H1_DIM),
        "w2": xavier(ks[2], H1_DIM, H2_DIM), "b2": bias(ks[3], H1_DIM, H2_DIM),
        "w3": xavier(ks[4], H2_DIM, BN_DIM), "b3": bias(ks[5], H2_DIM, BN_DIM),
    }


def prepare_kernel_params(p):
    """Pad hidden dim 1000 -> 1024 with zeros and cast weights to bf16.

    Padded b1 entries are 0 and padded W2 rows are 0, so the padded h1
    columns are exactly 0 and contribute nothing -> numerically identical
    layout-only change (up to bf16 rounding of the weights).
    """
    pad_c = H1_PAD - H1_DIM
    return {
        "w1": jnp.pad(p["w1"], ((0, 0), (0, pad_c))).astype(jnp.bfloat16),
        "b1": jnp.pad(p["b1"], ((0, 0), (0, pad_c))),            # f32
        "w2": jnp.pad(p["w2"], ((0, pad_c), (0, 0))).astype(jnp.bfloat16),
        "b2": p["b2"],                                           # f32
        "w3": p["w3"].astype(jnp.bfloat16),
        "b3": p["b3"],                                           # f32
    }


def reference_forward(x, p):
    """Pure-JAX f32 reference with the original (unpadded) params."""
    norm = jnp.sqrt(jnp.sum(x * x, axis=-1, keepdims=True))
    xn = x / jnp.maximum(norm, 1e-12)
    h1 = jnp.maximum(xn @ p["w1"] + p["b1"], 0.0)
    h2 = jnp.maximum(h1 @ p["w2"] + p["b2"], 0.0)
    return h2 @ p["w3"] + p["b3"]


if __name__ == "__main__":
    key = jax.random.PRNGKey(0)
    k_x, k_p = jax.random.split(key)

    batch = 8
    x = jax.random.normal(k_x, (batch, IN_DIM), jnp.float32)
    params = init_params(k_p)
    kparams = prepare_kernel_params(params)

    out = dense_bottleneck_forward(x, kparams)
    out = jax.block_until_ready(out)

    ref = reference_forward(x, params)
    assert out.shape == (batch, BN_DIM)
    # bf16 MXU operands vs. f32 reference -> loosened tolerance (expected ~1%).
    max_err = float(jnp.max(jnp.abs(out - ref)))
    assert max_err < 2e-2, f"mismatch vs reference: max abs err = {max_err}"

    print("KERNEL_OK")
</pallas_src>

<mosaic_0001>
module attributes {stable_mosaic.version = 11 : i64} {
  func.func @_dense_bottleneck_kernel(%arg0: i32, %arg1: memref<8x2048xf32, #tpu.memory_space<vmem>>, %arg2: memref<2048x1024xbf16, #tpu.memory_space<vmem>>, %arg3: memref<1x1024xf32, #tpu.memory_space<vmem>>, %arg4: memref<1024x128xbf16, #tpu.memory_space<vmem>>, %arg5: memref<1x128xf32, #tpu.memory_space<vmem>>, %arg6: memref<128x16xbf16, #tpu.memory_space<vmem>>, %arg7: memref<1x16xf32, #tpu.memory_space<vmem>>, %arg8: memref<8x16xf32, #tpu.memory_space<vmem>>) attributes {dimension_semantics = [#tpu.dimension_semantics<parallel>], iteration_bounds = array<i64: 1>, scalar_prefetch = 0 : i64, scratch_operands = 0 : i64, tpu.core_type = #tpu.core_type<tc>, window_params = [{transform_indices = @transform_0, window_bounds = array<i64: 8, 2048>}, {pipeline_mode = #tpu.pipeline_mode<synchronous>, transform_indices = @transform_1, window_bounds = array<i64: 2048, 1024>}, {pipeline_mode = #tpu.pipeline_mode<synchronous>, transform_indices = @transform_2, window_bounds = array<i64: 1, 1024>}, {pipeline_mode = #tpu.pipeline_mode<synchronous>, transform_indices = @transform_3, window_bounds = array<i64: 1024, 128>}, {pipeline_mode = #tpu.pipeline_mode<synchronous>, transform_indices = @transform_4, window_bounds = array<i64: 1, 128>}, {pipeline_mode = #tpu.pipeline_mode<synchronous>, transform_indices = @transform_5, window_bounds = array<i64: 128, 16>}, {pipeline_mode = #tpu.pipeline_mode<synchronous>, transform_indices = @transform_6, window_bounds = array<i64: 1, 16>}, {transform_indices = @transform_7, window_bounds = array<i64: 8, 16>}]} {
    %c0 = arith.constant 0 : index
    %c0_0 = arith.constant 0 : index
    %0 = vector.load %arg1[%c0, %c0_0] : memref<8x2048xf32, #tpu.memory_space<vmem>>, vector<8x2048xf32>
    %1 = arith.mulf %0, %0 : vector<8x2048xf32>
    %cst = arith.constant dense<0.000000e+00> : vector<8xf32>
    %2 = vector.multi_reduction <add>, %1, %cst [1] : vector<8x2048xf32> to vector<8xf32>
    %3 = vector.shape_cast %2 : vector<8xf32> to vector<8x1xf32>
    %cst_1 = arith.constant 1.000000e-24 : f32
    %4 = vector.broadcast %cst_1 : f32 to vector<8x1xf32>
    %5 = arith.maximumf %3, %4 : vector<8x1xf32>
    %6 = math.rsqrt %5 : vector<8x1xf32>
    %7 = arith.truncf %0 : vector<8x2048xf32> to vector<8x2048xbf16>
    %c0_2 = arith.constant 0 : index
    %c0_3 = arith.constant 0 : index
    %8 = vector.load %arg2[%c0_2, %c0_3] : memref<2048x1024xbf16, #tpu.memory_space<vmem>>, vector<2048x1024xbf16>
    %cst_4 = arith.constant dense<0.000000e+00> : vector<8x1024xf32>
    %9 = tpu.matmul %7, %8, %cst_4 {dimension_numbers = #tpu.dot_dimension_numbers<[1], [0], [0], [1], [0, 0, 1, 1], [], []>} : vector<8x2048xbf16>, vector<2048x1024xbf16>, vector<8x1024xf32> -> vector<8x1024xf32>
    %10 = vector.broadcast %6 : vector<8x1xf32> to vector<8x1024xf32>
    %11 = arith.mulf %9, %10 : vector<8x1024xf32>
    %c0_5 = arith.constant 0 : index
    %c0_6 = arith.constant 0 : index
    %12 = vector.load %arg3[%c0_5, %c0_6] : memref<1x1024xf32, #tpu.memory_space<vmem>>, vector<1x1024xf32>
    %13 = vector.broadcast %12 : vector<1x1024xf32> to vector<8x1024xf32>
    %14 = arith.addf %11, %13 : vector<8x1024xf32>
    %cst_7 = arith.constant 0.000000e+00 : f32
    %15 = vector.broadcast %cst_7 : f32 to vector<8x1024xf32>
    %16 = arith.maximumf %14, %15 : vector<8x1024xf32>
    %17 = arith.truncf %16 : vector<8x1024xf32> to vector<8x1024xbf16>
    %c0_8 = arith.constant 0 : index
    %c0_9 = arith.constant 0 : index
    %18 = vector.load %arg4[%c0_8, %c0_9] : memref<1024x128xbf16, #tpu.memory_space<vmem>>, vector<1024x128xbf16>
    %cst_10 = arith.constant dense<0.000000e+00> : vector<8x128xf32>
    %19 = tpu.matmul %17, %18, %cst_10 {dimension_numbers = #tpu.dot_dimension_numbers<[1], [0], [0], [1], [0, 0, 1, 1], [], []>} : vector<8x1024xbf16>, vector<1024x128xbf16>, vector<8x128xf32> -> vector<8x128xf32>
    %c0_11 = arith.constant 0 : index
    %c0_12 = arith.constant 0 : index
    %20 = vector.load %arg5[%c0_11, %c0_12] : memref<1x128xf32, #tpu.memory_space<vmem>>, vector<1x128xf32>
    %21 = vector.broadcast %20 : vector<1x128xf32> to vector<8x128xf32>
    %22 = arith.addf %19, %21 : vector<8x128xf32>
    %cst_13 = arith.constant 0.000000e+00 : f32
    %23 = vector.broadcast %cst_13 : f32 to vector<8x128xf32>
    %24 = arith.maximumf %22, %23 : vector<8x128xf32>
    %25 = arith.truncf %24 : vector<8x128xf32> to vector<8x128xbf16>
    %c0_14 = arith.constant 0 : index
    %c0_15 = arith.constant 0 : index
    %26 = vector.load %arg6[%c0_14, %c0_15] : memref<128x16xbf16, #tpu.memory_space<vmem>>, vector<128x16xbf16>
    %cst_16 = arith.constant dense<0.000000e+00> : vector<8x16xf32>
    %27 = tpu.matmul %25, %26, %cst_16 {dimension_numbers = #tpu.dot_dimension_numbers<[1], [0], [0], [1], [0, 0, 1, 1], [], []>} : vector<8x128xbf16>, vector<128x16xbf16>, vector<8x16xf32> -> vector<8x16xf32>
    %c0_17 = arith.constant 0 : index
    %c0_18 = arith.constant 0 : index
    %28 = vector.load %arg7[%c0_17, %c0_18] : memref<1x16xf32, #tpu.memory_space<vmem>>, vector<1x16xf32>
    %29 = vector.broadcast %28 : vector<1x16xf32> to vector<8x16xf32>
    %30 = arith.addf %27, %29 : vector<8x16xf32>
    %c0_19 = arith.constant 0 : index
    %c0_20 = arith.constant 0 : index
    %31 = vector.load %arg8[%c0_19, %c0_20] : memref<8x16xf32, #tpu.memory_space<vmem>>, vector<8x16xf32>
    tpu.vector_store %arg8[%c0_19, %c0_20], %30 {strides = array<i32>} : memref<8x16xf32, #tpu.memory_space<vmem>>, vector<8x16xf32>,
    return
  }
  func.func @transform_0(%arg0: i32) -> (i32, i32) {
    %c0_i32 = arith.constant 0 : i32
    %c0_i32_0 = arith.constant 0 : i32
    return %arg0, %c0_i32 : i32, i32
  }
  func.func @transform_1(%arg0: i32) -> (i32, i32) {
    %c0_i32 = arith.constant 0 : i32
    %c0_i32_0 = arith.constant 0 : i32
    %c0_i32_1 = arith.constant 0 : i32
    return %c0_i32, %c0_i32_0 : i32, i32
  }
  func.func @transform_2(%arg0: i32) -> (i32, i32) {
    %c0_i32 = arith.constant 0 : i32
    %c0_i32_0 = arith.constant 0 : i32
    %c0_i32_1 = arith.constant 0 : i32
    return %c0_i32, %c0_i32_0 : i32, i32
  }
  func.func @transform_3(%arg0: i32) -> (i32, i32) {
    %c0_i32 = arith.constant 0 : i32
    %c0_i32_0 = arith.constant 0 : i32
    %c0_i32_1 = arith.constant 0 : i32
    return %c0_i32, %c0_i32_0 : i32, i32
  }
  func.func @transform_4(%arg0: i32) -> (i32, i32) {
    %c0_i32 = arith.constant 0 : i32
    %c0_i32_0 = arith.constant 0 : i32
    %c0_i32_1 = arith.constant 0 : i32
    return %c0_i32, %c0_i32_0 : i32, i32
  }
  func.func @transform_5(%arg0: i32) -> (i32, i32) {
    %c0_i32 = arith.constant 0 : i32
    %c0_i32_0 = arith.constant 0 : i32
    %c0_i32_1 = arith.constant 0 : i32
    return %c0_i32, %c0_i32_0 : i32, i32
  }
  func.func @transform_6(%arg0: i32) -> (i32, i32) {
    %c0_i32 = arith.constant 0 : i32
    %c0_i32_0 = arith.constant 0 : i32
    %c0_i32_1 = arith.constant 0 : i32
    return %c0_i32, %c0_i32_0 : i32, i32
  }
  func.func @transform_7(%arg0: i32) -> (i32, i32) {
    %c0_i32 = arith.constant 0 : i32
    %c0_i32_0 = arith.constant 0 : i32
    return %arg0, %c0_i32 : i32, i32
  }
}

</mosaic_0001>

<bundles_post_ra>
// kernel: tpu_custom_call.1
= control target key start
LH: loop header
LB: loop body
LE: loop exit
PB: predicated region body
PF: predicated region fallthrough
CT: control target
= control target key end

     0   :  { %12 = vsyncpa [#allocation3], 0  ;;  %s10462_s0 = inlined_call_operand.hbm [shape: f32[8,2048], index: 0, kind: input, shape index: {}]   ;;  %s10463_s1 = inlined_call_operand.hbm [shape: bf16[2048,1024], index: 1, kind: input, shape index: {}]   ;;  %s10464_s2 = inlined_call_operand.hbm [shape: f32[1,1024], index: 2, kind: input, shape index: {}]   ;;  %s10465_s3 = inlined_call_operand.hbm [shape: bf16[1024,128], index: 3, kind: input, shape index: {}]   ;;  %s10466_s4 = inlined_call_operand.hbm [shape: f32[1,128], index: 4, kind: input, shape index: {}]   ;;  %s10467_s5 = inlined_call_operand.vmem [shape: bf16[128,16], index: 5, kind: input, shape index: {}]   ;;  %s10468_s6 = inlined_call_operand.hbm [shape: f32[1,16], index: 6, kind: input, shape index: {}]   ;;  %s10469_s7 = inlined_call_operand.hbm [shape: f32[8,16], index: 7, kind: output, shape index: {}]  }
   0x1   :  { %13 = vsyncpa [#allocation6], 0 }
   0x2   :  { %14 = vsyncpa [#allocation9], 0 }
   0x3   :  { %15 = vsyncpa [#allocation12], 0 }
   0x4   :  { %16 = vsyncpa [#allocation4], 0  ;;  %s10091_s24 = smov [#allocation5]   ;;  %s9927_s28 = scalar_lea.hbm %s10463_s1, 131072 }
   0x5   :  { %s32_s25 = sshll.u32 %s10091_s24, 4  ;;  %p9928_p0 = scmp.ne.s32.totalorder %s10463_s1, %s9927_s28  ;;  %s33_s25 = int_to_ptr.vmem [resolvable:$true] %s32_s25 }
   0x6   :  { %p9931_p1 = scmp.lt.u32.totalorder %s9927_s28, %s10463_s1 }
   0x8   :  { %p9933_p2 = pnand %p9931_p1, %p9928_p0 }
   0xa   :  { %9936 = shalt.err (!%p9933_p2)
}
   0xb   :  { %s9937_s10 = scalar_lea.vmem %s33_s25, 131072  ;;  %p9942_p4 = scmp.lt.s32.totalorder %s33_s25, %s33_s25 }
   0xc   :  { %p9938_p3 = scmp.ne.s32.totalorder %s33_s25, %s9937_s10  ;;  %p9943_p5 = scmp.lt.s32.totalorder %s9937_s10, %s9937_s10 }
   0xe   :  { %p9944_p6 = por %p9943_p5, %p9942_p4 }
  0x10   :  { %p9945_p7 = pnand %p9944_p6, %p9938_p3 }
  0x12   :  { %9948 = shalt.err (!%p9945_p7)
}
  0x13   :  { %s10092_s11 = smov 512   ;;  %s10093_s12 = smov 32  }
  0x14   :  { %38 = dma.hbm_to_vmem [thread:$0]  %s10463_s1, 131072, %s33_s25, [#allocation6], %s10092_s11, %s10092_s11, %s10093_s12  }
  0x15   :  { %s10094_s15 = smov [#allocation8]   ;;  %s9949_s19 = scalar_lea.hbm %s10465_s3, 8192 }
  0x16   :  { %s54_s16 = sshll.u32 %s10094_s15, 4  ;;  %p9950_p8 = scmp.ne.s32.totalorder %s10465_s3, %s9949_s19  ;;  %s55_s16 = int_to_ptr.vmem [resolvable:$true] %s54_s16 }
  0x17   :  { %p9953_p9 = scmp.lt.u32.totalorder %s9949_s19, %s10465_s3 }
  0x19   :  { %p9955_p10 = pnand %p9953_p9, %p9950_p8 }
  0x1b   :  { %9958 = shalt.err (!%p9955_p10)
}
  0x1c   :  { %s9959_s24 = scalar_lea.vmem %s55_s16, 8192  ;;  %p9964_p12 = scmp.lt.s32.totalorder %s55_s16, %s55_s16 }
  0x1d   :  { %p9960_p11 = scmp.ne.s32.totalorder %s55_s16, %s9959_s24  ;;  %p9965_p13 = scmp.lt.s32.totalorder %s9959_s24, %s9959_s24 }
  0x1f   :  { %p9966_p0 = por %p9965_p13, %p9964_p12 }
  0x21   :  { %p9967_p1 = pnand %p9966_p0, %p9960_p11 }
  0x23   :  { %9970 = shalt.err (!%p9967_p1)
}
  0x24   :  { %s10095_s1 = smov 64   ;;  %s10096_s25 = smov 4  }
  0x25   :  { %60 = dma.hbm_to_vmem [thread:$0]  %s10465_s3, 8192, %s55_s16, [#allocation9], %s10095_s1, %s10095_s1, %s10096_s25  }
  0x26   :  { %s10097_s28 = smov [#allocation2]   ;;  %s10098_s30 = smov [#allocation7]  }
  0x27   :  { %s23_s29 = sshll.u32 %s10097_s28, 4  ;;  %s45_s8 = sshll.u32 %s10098_s30, 4  ;;  %s24_s29 = int_to_ptr.vmem [resolvable:$true] %s23_s29  ;;  %s46_s8 = int_to_ptr.vmem [resolvable:$true] %s45_s8 }
  0x28   :  { %s9971_s11 = scalar_lea.hbm %s10462_s0, 2048 }
  0x29   :  { %p9972_p2 = scmp.ne.s32.totalorder %s10462_s0, %s9971_s11  ;;  %p9975_p3 = scmp.lt.u32.totalorder %s9971_s11, %s10462_s0 }
  0x2b   :  { %p9977_p4 = pnand %p9975_p3, %p9972_p2 }
  0x2d   :  { %9980 = shalt.err (!%p9977_p4)
}
  0x2e   :  { %s9981_s3 = scalar_lea.vmem %s24_s29, 2048  ;;  %p9986_p6 = scmp.lt.s32.totalorder %s24_s29, %s24_s29 }
  0x2f   :  { %p9982_p5 = scmp.ne.s32.totalorder %s24_s29, %s9981_s3  ;;  %p9987_p7 = scmp.lt.s32.totalorder %s9981_s3, %s9981_s3 }
  0x31   :  { %p9988_p8 = por %p9987_p7, %p9986_p6 }
  0x33   :  { %p9989_p9 = pnand %p9988_p8, %p9982_p5 }
  0x35   :  { %9992 = shalt.err (!%p9989_p9)
}
  0x36   :  { %26 = dma.hbm_to_vmem [thread:$0]  %s10462_s0, 2048, %s24_s29, [#allocation3]  }
  0x37   :  { %s9993_s20 = scalar_lea.hbm %s10464_s2, 128 }
  0x38   :  { %p9994_p10 = scmp.ne.s32.totalorder %s10464_s2, %s9993_s20  ;;  %p9997_p11 = scmp.lt.u32.totalorder %s9993_s20, %s10464_s2 }
  0x3a   :  { %p9999_p12 = pnand %p9997_p11, %p9994_p10 }
  0x3c   :  { %10002 = shalt.err (!%p9999_p12)
}
  0x3d   :  { %s10003_s1 = scalar_lea.vmem %s46_s8, 128  ;;  %p10008_p0 = scmp.lt.s32.totalorder %s46_s8, %s46_s8 }
  0x3e   :  { %p10004_p13 = scmp.ne.s32.totalorder %s46_s8, %s10003_s1  ;;  %p10009_p1 = scmp.lt.s32.totalorder %s10003_s1, %s10003_s1 }
  0x40   :  { %p10010_p2 = por %p10009_p1, %p10008_p0 }
  0x42   :  { %p10011_p3 = pnand %p10010_p2, %p10004_p13 }
  0x44   :  { %10014 = shalt.err (!%p10011_p3)
}
  0x45   :  { %48 = dma.hbm_to_vmem [thread:$0]  %s10464_s2, 128, %s46_s8, [#allocation6]  }
  0x46   :  { %s10099_s26 = smov [#allocation10]   ;;  %s10100_s28 = smov [#allocation11]  }
  0x47   :  { %s67_s27 = sshll.u32 %s10099_s26, 4  ;;  %s79_s29 = sshll.u32 %s10100_s28, 4  ;;  %s68_s27 = int_to_ptr.vmem [resolvable:$true] %s67_s27  ;;  %s80_s29 = int_to_ptr.vmem [resolvable:$true] %s79_s29 }
  0x48   :  { %s10015_s10 = scalar_lea.hbm %s10466_s4, 16 }
  0x49   :  { %p10016_p4 = scmp.ne.s32.totalorder %s10466_s4, %s10015_s10  ;;  %p10019_p5 = scmp.lt.u32.totalorder %s10015_s10, %s10466_s4 }
  0x4b   :  { %p10021_p6 = pnand %p10019_p5, %p10016_p4 }
  0x4d   :  { %10024 = shalt.err (!%p10021_p6)
}
  0x4e   :  { %s10025_s2 = scalar_lea.vmem %s68_s27, 16  ;;  %s10029_s8 = scalar_lea.vmem %s68_s27, 32 }
  0x4f   :  { %p10026_p7 = scmp.ne.s32.totalorder %s68_s27, %s10025_s2  ;;  %p10030_p8 = scmp.lt.s32.totalorder %s68_s27, %s68_s27 }
  0x50   :  { %p10031_p9 = scmp.lt.s32.totalorder %s10029_s8, %s10025_s2 }
  0x52   :  { %p10032_p10 = por %p10031_p9, %p10030_p8 }
  0x54   :  { %p10033_p11 = pnand %p10032_p10, %p10026_p7 }
  0x56   :  { %10036 = shalt.err (!%p10033_p11)
}
  0x57   :  { %70 = dma.hbm_to_vmem [thread:$0]  %s10466_s4, 16, %s68_s27, [#allocation9]  }
  0x58   :  { %s10037_s18 = scalar_lea.hbm %s10468_s6, 16 }
  0x59   :  { %p10038_p12 = scmp.ne.s32.totalorder %s10468_s6, %s10037_s18  ;;  %p10041_p13 = scmp.lt.u32.totalorder %s10037_s18, %s10468_s6 }
  0x5b   :  { %p10043_p0 = pnand %p10041_p13, %p10038_p12 }
  0x5d   :  { %10046 = shalt.err (!%p10043_p0)
}
  0x5e   :  { %s10047_s23 = scalar_lea.vmem %s80_s29, 16  ;;  %s10051_s24 = scalar_lea.vmem %s80_s29, 32 }
  0x5f   :  { %p10048_p1 = scmp.ne.s32.totalorder %s80_s29, %s10047_s23  ;;  %p10052_p2 = scmp.lt.s32.totalorder %s80_s29, %s80_s29 }
  0x60   :  { %p10053_p3 = scmp.lt.s32.totalorder %s10051_s24, %s10047_s23 }
  0x62   :  { %p10054_p4 = por %p10053_p3, %p10052_p2 }
  0x64   :  { %p10055_p5 = pnand %p10054_p4, %p10048_p1 }
  0x66   :  { %10058 = shalt.err (!%p10055_p5)
}
  0x67   :  { %82 = dma.hbm_to_vmem [thread:$0]  %s10468_s6, 16, %s80_s29, [#allocation12]  }
  0x68   :  { %10081 = dma.done.wait [#allocation3], 2048  }
  0x69   :  { %10082 = vsyncadd [#allocation3], 4294965248 }
  0x6a   :  { %10083 = dma.done.wait [#allocation6], 131200  }
  0x6b   :  { %10084 = vsyncadd [#allocation6], 4294836096 }
  0x6c   :  { %10085 = dma.done.wait [#allocation9], 8208  }
  0x6d   :  { %10086 = vsyncadd [#allocation9], 4294959088 }
  0x6e   :  { %10087 = dma.done.wait [#allocation12], 16  }
  0x6f   :  { %10088 = vsyncadd [#allocation12], 4294967280  ;;  %v169_v0 = vld [vmem:[#allocation5] sm:$0xff]  ;;  %v170_v2 = vld [vmem:[#allocation5 + $0x8] sm:$0xff]  ;;  %vm10102_vm0 = vmmov 0   ;;  %vm8491_vm1 = vcmask 130048  }
  0x70   :  { %v173_v1 = vld [vmem:[#allocation5 + $0x20] sm:$0xff]  ;;  %v174_v4 = vld [vmem:[#allocation5 + $0x28] sm:$0xff] }
  0x71   :  { %v8512_v3 = vcombine.high %v169_v0, %v173_v1  ;;  %v8511_v5 = vcombine.low %v169_v0, %v173_v1  ;;  %v177_v6 = vld [vmem:[#allocation5 + $0x40] sm:$0xff]  ;;  %v8514_v8 = vcombine.high %v170_v2, %v174_v4  ;;  %v8513_v9 = vcombine.low %v170_v2, %v174_v4  ;;  %v178_v11 = vld [vmem:[#allocation5 + $0x48] sm:$0xff] }
  0x72   :  { %v181_v7 = vld [vmem:[#allocation5 + $0x60] sm:$0xff]  ;;  %v182_v12 = vld [vmem:[#allocation5 + $0x68] sm:$0xff] }
  0x73   :  { %v8520_v10 = vcombine.high %v177_v6, %v181_v7  ;;  %v185_v13 = vld [vmem:[#allocation5 + $0x80] sm:$0xff]  ;;  %6313 = vmatprep.subr.bf16.mxu0 %v8512_v3  ;;  %v8522_v14 = vcombine.high %v178_v11, %v182_v12  ;;  %v186_v16 = vld [vmem:[#allocation5 + $0x88] sm:$0xff]  ;;  %6641 = vmatprep.subr.bf16.mxu1 %v8514_v8  ;;  %v8519_v18 = vcombine.low %v177_v6, %v181_v7 }
  0x74   :  { %v189_v15 = vld [vmem:[#allocation5 + $0xa0] sm:$0xff]  ;;  %v190_v17 = vld [vmem:[#allocation5 + $0xa8] sm:$0xff]  ;;  %6314 = vmatpush1.bf16.msra.mxu0 %v8511_v5  ;;  %6642 = vmatpush1.bf16.msra.mxu1 %v8513_v9  ;;  %v8521_v19 = vcombine.low %v178_v11, %v182_v12 }
  0x75   :  { %6315 = vmatprep.subr.bf16.mxu0 %v8520_v10  ;;  %v8528_v20 = vcombine.high %v185_v13, %v189_v15  ;;  %6643 = vmatprep.subr.bf16.mxu1 %v8522_v14  ;;  %v8530_v21 = vcombine.high %v186_v16, %v190_v17  ;;  %v193_v22 = vld [vmem:[#allocation5 + $0xc0] sm:$0xff]  ;;  %v194_v24 = vld [vmem:[#allocation5 + $0xc8] sm:$0xff]  ;;  %v8527_v26 = vcombine.low %v185_v13, %v189_v15 }
  0x76   :  { %v197_v23 = vld [vmem:[#allocation5 + $0xe0] sm:$0xff]  ;;  %v198_v25 = vld [vmem:[#allocation5 + $0xe8] sm:$0xff]  ;;  %v8529_v27 = vcombine.low %v186_v16, %v190_v17 }
  0x77   :  { %v8536_v28 = vcombine.high %v193_v22, %v197_v23  ;;  %v8538_v29 = vcombine.high %v194_v24, %v198_v25  ;;  %v201_v30 = vld [vmem:[#allocation5 + $0x100] sm:$0xff]  ;;  %v202_v32 = vld [vmem:[#allocation5 + $0x108] sm:$0xff]  ;;  %v8535_v34 = vcombine.low %v193_v22, %v197_v23  ;;  %v8537_v35 = vcombine.low %v194_v24, %v198_v25 }
  0x78   :  { %6316 = vmatpush1.bf16.msra.mxu0 %v8519_v18  ;;  %6644 = vmatpush1.bf16.msra.mxu1 %v8521_v19  ;;  %v205_v31 = vld [vmem:[#allocation5 + $0x120] sm:$0xff]  ;;  %v206_v33 = vld [vmem:[#allocation5 + $0x128] sm:$0xff] }
  0x79   :  { %6317 = vmatprep.subr.bf16.mxu0 %v8528_v20  ;;  %6645 = vmatprep.subr.bf16.mxu1 %v8530_v21  ;;  %v8544_v36 = vcombine.high %v201_v30, %v205_v31  ;;  %v8546_v37 = vcombine.high %v202_v32, %v206_v33  ;;  %v209_v38 = vld [vmem:[#allocation5 + $0x140] sm:$0xff]  ;;  %v210_v40 = vld [vmem:[#allocation5 + $0x148] sm:$0xff]  ;;  %v8543_v42 = vcombine.low %v201_v30, %v205_v31 }
  0x7a   :  { %v213_v39 = vld [vmem:[#allocation5 + $0x160] sm:$0xff]  ;;  %v214_v41 = vld [vmem:[#allocation5 + $0x168] sm:$0xff]  ;;  %v8545_v43 = vcombine.low %v202_v32, %v206_v33 }
  0x7b   :  { %v8552_v44 = vcombine.high %v209_v38, %v213_v39  ;;  %v8554_v45 = vcombine.high %v210_v40, %v214_v41  ;;  %v217_v46 = vld [vmem:[#allocation5 + $0x180] sm:$0xff]  ;;  %v218_v48 = vld [vmem:[#allocation5 + $0x188] sm:$0xff]  ;;  %v8551_v50 = vcombine.low %v209_v38, %v213_v39  ;;  %v8553_v51 = vcombine.low %v210_v40, %v214_v41 }
  0x7c   :  { %6318 = vmatpush1.bf16.msra.mxu0 %v8527_v26  ;;  %6646 = vmatpush1.bf16.msra.mxu1 %v8529_v27  ;;  %v221_v47 = vld [vmem:[#allocation5 + $0x1a0] sm:$0xff]  ;;  %v222_v49 = vld [vmem:[#allocation5 + $0x1a8] sm:$0xff] }
  0x7d   :  { %6319 = vmatprep.subr.bf16.mxu0 %v8536_v28  ;;  %6647 = vmatprep.subr.bf16.mxu1 %v8538_v29  ;;  %v8560_v52 = vcombine.high %v217_v46, %v221_v47  ;;  %v103_v53 = vld [vmem:[#allocation2 + $0x8] sm:$0xff]  ;;  %v8562_v54 = vcombine.high %v218_v48, %v222_v49  ;;  %v225_v55 = vld [vmem:[#allocation5 + $0x1c0] sm:$0xff]  ;;  %v8559_v62 = vcombine.low %v217_v46, %v221_v47 }
  0x7e   :  { %v229_v56 = vld [vmem:[#allocation5 + $0x1e0] sm:$0xff]  ;;  %v119_v57 = vmul.f32 %v103_v53, %v103_v53  ;;  %v10216_v58 = vpack.c.bf16 %v103_v53, %v103_v53  ;;  %v226_v59 = vld [vmem:[#allocation5 + $0x1c8] sm:$0xff]  ;;  %v8561_v0 = vcombine.low %v218_v48, %v222_v49 }
  0x7f   :  { %v230_v60 = vld [vmem:[#allocation5 + $0x1e8] sm:$0xff]  ;;  %v10218_v61 = vld [vmem:[#allocation2] sm:$0xff]  ;;  %v8568_v1 = vcombine.high %v225_v55, %v229_v56  ;;  %v8567_v8 = vcombine.low %v225_v55, %v229_v56 }
  0x80   :  { %6320 = vmatpush1.bf16.msra.mxu0 %v8535_v34  ;;  %6648 = vmatpush1.bf16.msra.mxu1 %v8537_v35  ;;  %v118_v63 = vmul.f32 %v10218_v61, %v10218_v61  ;;  %v8570_v2 = vcombine.high %v226_v59, %v230_v60  ;;  %v233_v3 = vld [vmem:[#allocation5 + $0x200] sm:$0xff]  ;;  %v234_v6 = vld [vmem:[#allocation5 + $0x208] sm:$0xff]  ;;  %v8569_v9 = vcombine.low %v226_v59, %v230_v60 }
  0x81   :  { %6321 = vmatprep.subr.bf16.mxu0 %v8544_v36  ;;  %6649 = vmatprep.subr.bf16.mxu1 %v8546_v37  ;;  %v237_v4 = vld [vmem:[#allocation5 + $0x220] sm:$0xff]  ;;  %v238_v7 = vld [vmem:[#allocation5 + $0x228] sm:$0xff] }
  0x82   :  { %6345 = vmatprep.mubr.bf16.mxu0 %v10216_v58  ;;  %6673 = vmatprep.mubr.bf16.mxu1 %v10216_v58  ;;  %v10224_v5 = vadd.f32 %v119_v57, %v118_v63  ;;  %v8576_v10 = vcombine.high %v233_v3, %v237_v4  ;;  %v8578_v11 = vcombine.high %v234_v6, %v238_v7  ;;  %v241_v12 = vld [vmem:[#allocation5 + $0x240] sm:$0xff]  ;;  %v242_v14 = vld [vmem:[#allocation5 + $0x248] sm:$0xff] }
  0x83   :  { %v245_v13 = vld [vmem:[#allocation5 + $0x260] sm:$0xff]  ;;  %v246_v15 = vld [vmem:[#allocation5 + $0x268] sm:$0xff]  ;;  %v8575_v16 = vcombine.low %v233_v3, %v237_v4  ;;  %v8577_v17 = vcombine.low %v234_v6, %v238_v7 }
  0x84   :  { %6322 = vmatpush1.bf16.msra.mxu0 %v8543_v42  ;;  %6650 = vmatpush1.bf16.msra.mxu1 %v8545_v43  ;;  %v8584_v18 = vcombine.high %v241_v12, %v245_v13  ;;  %v8586_v19 = vcombine.high %v242_v14, %v246_v15  ;;  %v249_v20 = vld [vmem:[#allocation5 + $0x280] sm:$0xff]  ;;  %v250_v22 = vld [vmem:[#allocation5 + $0x288] sm:$0xff]  ;;  %v8583_v24 = vcombine.low %v241_v12, %v245_v13  ;;  %v10226_v43 = vld [vmem:[#allocation2 + $0x10] sm:$0xff] }
  0x85   :  { %6323 = vmatprep.subr.bf16.mxu0 %v8552_v44  ;;  %6651 = vmatprep.subr.bf16.mxu1 %v8554_v45  ;;  %v253_v21 = vld [vmem:[#allocation5 + $0x2a0] sm:$0xff]  ;;  %v254_v23 = vld [vmem:[#allocation5 + $0x2a8] sm:$0xff]  ;;  %v8585_v25 = vcombine.low %v242_v14, %v246_v15  ;;  %v120_v47 = vmul.f32 %v10226_v43, %v10226_v43 }
  0x86   :  { %v8592_v26 = vcombine.high %v249_v20, %v253_v21  ;;  %v8594_v27 = vcombine.high %v250_v22, %v254_v23  ;;  %v257_v28 = vld [vmem:[#allocation5 + $0x2c0] sm:$0xff]  ;;  %v258_v30 = vld [vmem:[#allocation5 + $0x2c8] sm:$0xff]  ;;  %v8591_v32 = vcombine.low %v249_v20, %v253_v21  ;;  %v8593_v33 = vcombine.low %v250_v22, %v254_v23  ;;  %v105_v22 = vld [vmem:[#allocation2 + $0x18] sm:$0xff] }
  0x87   :  { %v261_v29 = vld [vmem:[#allocation5 + $0x2e0] sm:$0xff]  ;;  %v262_v31 = vld [vmem:[#allocation5 + $0x2e8] sm:$0xff] }
  0x88   :  { %6324 = vmatpush1.bf16.msra.mxu0 %v8551_v50  ;;  %6652 = vmatpush1.bf16.msra.mxu1 %v8553_v51  ;;  %v8600_v34 = vcombine.high %v257_v28, %v261_v29  ;;  %v8602_v35 = vcombine.high %v258_v30, %v262_v31  ;;  %v265_v36 = vld [vmem:[#allocation5 + $0x300] sm:$0xff]  ;;  %v266_v38 = vld [vmem:[#allocation5 + $0x308] sm:$0xff]  ;;  %v8599_v40 = vcombine.low %v257_v28, %v261_v29 }
  0x89   :  { %6325 = vmatprep.subr.bf16.mxu0 %v8560_v52  ;;  %6653 = vmatprep.subr.bf16.mxu1 %v8562_v54  ;;  %v269_v37 = vld [vmem:[#allocation5 + $0x320] sm:$0xff]  ;;  %v270_v39 = vld [vmem:[#allocation5 + $0x328] sm:$0xff]  ;;  %v8601_v41 = vcombine.low %v258_v30, %v262_v31  ;;  %v10231_v51 = vadd.f32 %v10224_v5, %v120_v47 }
  0x8a   :  { %v8608_v42 = vcombine.high %v265_v36, %v269_v37  ;;  %v8610_v44 = vcombine.high %v266_v38, %v270_v39  ;;  %v273_v45 = vld [vmem:[#allocation5 + $0x340] sm:$0xff]  ;;  %v274_v48 = vld [vmem:[#allocation5 + $0x348] sm:$0xff]  ;;  %v8607_v50 = vcombine.low %v265_v36, %v269_v37  ;;  %v8609_v52 = vcombine.low %v266_v38, %v270_v39 }
  0x8b   :  { %v277_v46 = vld [vmem:[#allocation5 + $0x360] sm:$0xff]  ;;  %v278_v49 = vld [vmem:[#allocation5 + $0x368] sm:$0xff] }
  0x8c   :  { %6326 = vmatpush1.bf16.msra.mxu0 %v8559_v62  ;;  %6654 = vmatpush1.bf16.msra.mxu1 %v8561_v0  ;;  %v8616_v53 = vcombine.high %v273_v45, %v277_v46  ;;  %v8618_v54 = vcombine.high %v274_v48, %v278_v49  ;;  %v281_v55 = vld [vmem:[#allocation5 + $0x380] sm:$0xff]  ;;  %v282_v57 = vld [vmem:[#allocation5 + $0x388] sm:$0xff]  ;;  %v8615_v60 = vcombine.low %v273_v45, %v277_v46 }
  0x8d   :  { %6327 = vmatprep.subr.bf16.mxu0 %v8568_v1  ;;  %6655 = vmatprep.subr.bf16.mxu1 %v8570_v2  ;;  %v285_v56 = vld [vmem:[#allocation5 + $0x3a0] sm:$0xff]  ;;  %v286_v59 = vld [vmem:[#allocation5 + $0x3a8] sm:$0xff]  ;;  %v8617_v62 = vcombine.low %v274_v48, %v278_v49 }
  0x8e   :  { %v8624_v63 = vcombine.high %v281_v55, %v285_v56  ;;  %v8626_v0 = vcombine.high %v282_v57, %v286_v59  ;;  %v289_v1 = vld [vmem:[#allocation5 + $0x3c0] sm:$0xff]  ;;  %v290_v3 = vld [vmem:[#allocation5 + $0x3c8] sm:$0xff]  ;;  %v8623_v5 = vcombine.low %v281_v55, %v285_v56  ;;  %v8625_v6 = vcombine.low %v282_v57, %v286_v59 }
  0x8f   :  { %v293_v2 = vld [vmem:[#allocation5 + $0x3e0] sm:$0xff]  ;;  %v294_v4 = vld [vmem:[#allocation5 + $0x3e8] sm:$0xff] }
  0x90   :  { %6328 = vmatpush1.bf16.msra.mxu0 %v8567_v8  ;;  %6656 = vmatpush1.bf16.msra.mxu1 %v8569_v9  ;;  %v8632_v7 = vcombine.high %v289_v1, %v293_v2  ;;  %v8634_v8 = vcombine.high %v290_v3, %v294_v4  ;;  %v297_v9 = vld [vmem:[#allocation5 + $0x400] sm:$0xff]  ;;  %v302_v12 = vld [vmem:[#allocation5 + $0x428] sm:$0xff]  ;;  %v8631_v13 = vcombine.low %v289_v1, %v293_v2 }
  0x91   :  { %6329 = vmatprep.subr.bf16.mxu0 %v8576_v10  ;;  %6657 = vmatprep.subr.bf16.mxu1 %v8578_v11  ;;  %v301_v10 = vld [vmem:[#allocation5 + $0x420] sm:$0xff]  ;;  %v298_v11 = vld [vmem:[#allocation5 + $0x408] sm:$0xff]  ;;  %v8633_v14 = vcombine.low %v290_v3, %v294_v4 }
  0x92   :  { %v8640_v15 = vcombine.high %v297_v9, %v301_v10  ;;  %v306_v20 = vld [vmem:[#allocation5 + $0x448] sm:$0xff]  ;;  %v8639_v23 = vcombine.low %v297_v9, %v301_v10  ;;  %v317_v29 = vld [vmem:[#allocation5 + $0x4a0] sm:$0xff] }
  0x93   :  { %v310_v21 = vld [vmem:[#allocation5 + $0x468] sm:$0xff]  ;;  %v321_v38 = vld [vmem:[#allocation5 + $0x4c0] sm:$0xff] }
  0x94   :  { %6330 = vmatpush1.bf16.msra.mxu0 %v8575_v16  ;;  %6658 = vmatpush1.bf16.msra.mxu1 %v8577_v17  ;;  %v8642_v16 = vcombine.high %v298_v11, %v302_v12  ;;  %v305_v17 = vld [vmem:[#allocation5 + $0x440] sm:$0xff]  ;;  %v8650_v28 = vcombine.high %v306_v20, %v310_v21  ;;  %v314_v30 = vld [vmem:[#allocation5 + $0x488] sm:$0xff]  ;;  %v8649_v36 = vcombine.low %v306_v20, %v310_v21 }
  0x95   :  { %6331 = vmatprep.subr.bf16.mxu0 %v8584_v18  ;;  %6659 = vmatprep.subr.bf16.mxu1 %v8586_v19  ;;  %v309_v18 = vld [vmem:[#allocation5 + $0x460] sm:$0xff]  ;;  %v10235_v19 = vpack.c.bf16 %v10218_v61, %v10218_v61  ;;  %v318_v31 = vld [vmem:[#allocation5 + $0x4a8] sm:$0xff] }
  0x96   :  { %v106_v61 = vld [vmem:[#allocation2 + $0x20] sm:$0xff]  ;;  %v8657_v46 = vcombine.low %v314_v30, %v318_v31  ;;  %v338_v59 = vld [vmem:[#allocation5 + $0x548] sm:$0xff] }
  0x97   :  { %v325_v39 = vld [vmem:[#allocation5 + $0x4e0] sm:$0xff]  ;;  %v346_v4 = vld [vmem:[#allocation5 + $0x588] sm:$0xff] }
  0x98   :  { %6332 = vmatpush1.bf16.msra.mxu0 %v8583_v24  ;;  %6660 = vmatpush1.bf16.msra.mxu1 %v8585_v25  ;;  %v121_v24 = vmul.f32 %v105_v22, %v105_v22  ;;  %v8641_v25 = vcombine.low %v298_v11, %v302_v12  ;;  %v8664_v47 = vcombine.high %v321_v38, %v325_v39  ;;  %v329_v48 = vld [vmem:[#allocation5 + $0x500] sm:$0xff]  ;;  %v354_v12 = vld [vmem:[#allocation5 + $0x5c8] sm:$0xff] }
  0x99   :  { %6333 = vmatprep.subr.bf16.mxu0 %v8592_v26  ;;  %6661 = vmatprep.subr.bf16.mxu1 %v8594_v27  ;;  %v8648_v26 = vcombine.high %v305_v17, %v309_v18  ;;  %v313_v27 = vld [vmem:[#allocation5 + $0x480] sm:$0xff]  ;;  %v362_v21 = vld [vmem:[#allocation5 + $0x608] sm:$0xff] }
  0x9a   :  { %v8656_v37 = vcombine.high %v313_v27, %v317_v29  ;;  %v8655_v45 = vcombine.low %v313_v27, %v317_v29  ;;  %v333_v49 = vld [vmem:[#allocation5 + $0x520] sm:$0xff]  ;;  %v370_v29 = vld [vmem:[#allocation5 + $0x648] sm:$0xff] }
  0x9b   :  { %v8672_v55 = vcombine.high %v329_v48, %v333_v49  ;;  %v337_v56 = vld [vmem:[#allocation5 + $0x540] sm:$0xff] }
  0x9c   :  { %6334 = vmatpush1.bf16.msra.mxu0 %v8591_v32  ;;  %6662 = vmatpush1.bf16.msra.mxu1 %v8593_v33  ;;  %v10237_v32 = vpack.c.bf16 %v105_v22, %v105_v22  ;;  %v8647_v33 = vcombine.low %v305_v17, %v309_v18  ;;  %v341_v57 = vld [vmem:[#allocation5 + $0x560] sm:$0xff] }
  0x9d   :  { %6335 = vmatprep.subr.bf16.mxu0 %v8600_v34  ;;  %6663 = vmatprep.subr.bf16.mxu1 %v8602_v35  ;;  %v122_v34 = vmul.f32 %v106_v61, %v106_v61  ;;  %v136_v35 = vadd.f32 %v10231_v51, %v121_v24  ;;  %v8680_v1 = vcombine.high %v337_v56, %v341_v57  ;;  %v345_v2 = vld [vmem:[#allocation5 + $0x580] sm:$0xff] }
  0x9e   :  { %v349_v3 = vld [vmem:[#allocation5 + $0x5a0] sm:$0xff] }
  0x9f   :  { %v8688_v9 = vcombine.high %v345_v2, %v349_v3  ;;  %v353_v10 = vld [vmem:[#allocation5 + $0x5c0] sm:$0xff] }
  0xa0   :  { %6336 = vmatpush1.bf16.msra.mxu0 %v8599_v40  ;;  %6664 = vmatpush1.bf16.msra.mxu1 %v8601_v41  ;;  %v322_v40 = vld [vmem:[#allocation5 + $0x4c8] sm:$0xff]  ;;  %v8658_v41 = vcombine.high %v314_v30, %v318_v31  ;;  %v357_v11 = vld [vmem:[#allocation5 + $0x5e0] sm:$0xff] }
  0xa1   :  { %6337 = vmatprep.subr.bf16.mxu0 %v8608_v42  ;;  %6665 = vmatprep.subr.bf16.mxu1 %v8610_v44  ;;  %v326_v42 = vld [vmem:[#allocation5 + $0x4e8] sm:$0xff]  ;;  %v10243_v44 = vadd.f32 %v136_v35, %v122_v34  ;;  %v8696_v17 = vcombine.high %v353_v10, %v357_v11  ;;  %v361_v18 = vld [vmem:[#allocation5 + $0x600] sm:$0xff]  ;;  %v8695_v24 = vcombine.low %v353_v10, %v357_v11 }
  0xa2   :  { %v8666_v51 = vcombine.high %v322_v40, %v326_v42  ;;  %v365_v20 = vld [vmem:[#allocation5 + $0x620] sm:$0xff]  ;;  %v374_v31 = vld [vmem:[#allocation5 + $0x668] sm:$0xff] }
  0xa3   :  { %v369_v27 = vld [vmem:[#allocation5 + $0x640] sm:$0xff]  ;;  %v8703_v61 = vcombine.low %v361_v18, %v365_v20  ;;  %v414_v11 = vld [vmem:[#allocation5 + $0x7a8] sm:$0xff] }
  0xa4   :  { %6338 = vmatpush1.bf16.msra.mxu0 %v8607_v50  ;;  %6666 = vmatpush1.bf16.msra.mxu1 %v8609_v52  ;;  %v330_v50 = vld [vmem:[#allocation5 + $0x508] sm:$0xff]  ;;  %v377_v35 = vld [vmem:[#allocation5 + $0x680] sm:$0xff] }
  0xa5   :  { %6339 = vmatprep.subr.bf16.mxu0 %v8616_v53  ;;  %6667 = vmatprep.subr.bf16.mxu1 %v8618_v54  ;;  %v334_v52 = vld [vmem:[#allocation5 + $0x528] sm:$0xff]  ;;  %v8663_v53 = vcombine.low %v321_v38, %v325_v39  ;;  %v8665_v54 = vcombine.low %v322_v40, %v326_v42  ;;  %v8714_v38 = vcombine.high %v370_v29, %v374_v31 }
  0xa6   :  { %v382_v39 = vld [vmem:[#allocation5 + $0x6a8] sm:$0xff] }
  0xa8   :  { %6340 = vmatpush1.bf16.msra.mxu0 %v8615_v60  ;;  %6668 = vmatpush1.bf16.msra.mxu1 %v8617_v62  ;;  %v8674_v60 = vcombine.high %v330_v50, %v334_v52  ;;  %v342_v62 = vld [vmem:[#allocation5 + $0x568] sm:$0xff] }
  0xa9   :  { %6341 = vmatprep.subr.bf16.mxu0 %v8624_v63  ;;  %6669 = vmatprep.subr.bf16.mxu1 %v8626_v0  ;;  %v8671_v63 = vcombine.low %v329_v48, %v333_v49  ;;  %v8673_v0 = vcombine.low %v330_v50, %v334_v52  ;;  %v390_v49 = vld [vmem:[#allocation5 + $0x6e8] sm:$0xff] }
  0xac   :  { %6342 = vmatpush1.bf16.msra.mxu0 %v8623_v5  ;;  %6670 = vmatpush1.bf16.msra.mxu1 %v8625_v6  ;;  %v8682_v5 = vcombine.high %v338_v59, %v342_v62  ;;  %v350_v6 = vld [vmem:[#allocation5 + $0x5a8] sm:$0xff] }
  0xad   :  { %6343 = vmatprep.subr.bf16.mxu0 %v8632_v7  ;;  %6671 = vmatprep.subr.bf16.mxu1 %v8634_v8  ;;  %v8679_v7 = vcombine.low %v337_v56, %v341_v57  ;;  %v8681_v8 = vcombine.low %v338_v59, %v342_v62  ;;  %v398_v57 = vld [vmem:[#allocation5 + $0x728] sm:$0xff] }
  0xb0   :  { %6344 = vmatpush1.bf16.msra.mxu0 %v8631_v13  ;;  %6672 = vmatpush1.bf16.msra.mxu1 %v8633_v14  ;;  %v8690_v13 = vcombine.high %v346_v4, %v350_v6  ;;  %v358_v14 = vld [vmem:[#allocation5 + $0x5e8] sm:$0xff] }
  0xb1   :  { %6354 = vmatprep.subr.bf16.mxu0 %v8640_v15  ;;  %6682 = vmatprep.subr.bf16.mxu1 %v8642_v16  ;;  %v8687_v15 = vcombine.low %v345_v2, %v349_v3  ;;  %v8689_v16 = vcombine.low %v346_v4, %v350_v6  ;;  %v8698_v22 = vcombine.high %v354_v12, %v358_v14  ;;  %v406_v3 = vld [vmem:[#allocation5 + $0x768] sm:$0xff] }
  0xb3   :  { %6346 = vmatmul.mubr.bf16.vlgmr.msra.gmra.mrb[0].mxu0 %v10235_v19  ;;  %6674 = vmatmul.mubr.bf16.vlgmr.msra.gmra.mrb[0].mxu1 %v10235_v19 }
  0xb4   :  { %6355 = vmatpush1.bf16.msra.mxu0 %v8639_v23  ;;  %6683 = vmatpush1.bf16.msra.mxu1 %v8641_v25  ;;  %v366_v23 = vld [vmem:[#allocation5 + $0x628] sm:$0xff]  ;;  %v8697_v25 = vcombine.low %v354_v12, %v358_v14 }
  0xb5   :  { %6356 = vmatprep.subr.bf16.mxu0 %v8648_v26  ;;  %6684 = vmatprep.subr.bf16.mxu1 %v8650_v28  ;;  %v8704_v26 = vcombine.high %v361_v18, %v365_v20  ;;  %v373_v28 = vld [vmem:[#allocation5 + $0x660] sm:$0xff]  ;;  %v8706_v30 = vcombine.high %v362_v21, %v366_v23  ;;  %v422_v20 = vld [vmem:[#allocation5 + $0x7e8] sm:$0xff] }
  0xb6   :  { %6386 = vmatprep.mubr.bf16.mxu0 %v10237_v32  ;;  %6714 = vmatprep.mubr.bf16.mxu1 %v10237_v32  ;;  %v8712_v34 = vcombine.high %v369_v27, %v373_v28  ;;  %v8711_v40 = vcombine.low %v369_v27, %v373_v28  ;;  %v430_v28 = vld [vmem:[#allocation5 + $0x828] sm:$0xff] }
  0xb8   :  { %6357 = vmatpush1.bf16.msra.mxu0 %v8647_v33  ;;  %6685 = vmatpush1.bf16.msra.mxu1 %v8649_v36  ;;  %v8705_v33 = vcombine.low %v362_v21, %v366_v23  ;;  %v381_v36 = vld [vmem:[#allocation5 + $0x6a0] sm:$0xff] }
  0xb9   :  { %6358 = vmatprep.subr.bf16.mxu0 %v8656_v37  ;;  %6686 = vmatprep.subr.bf16.mxu1 %v8658_v41  ;;  %v378_v37 = vld [vmem:[#allocation5 + $0x688] sm:$0xff]  ;;  %v8713_v41 = vcombine.low %v370_v29, %v374_v31  ;;  %v8720_v42 = vcombine.high %v377_v35, %v381_v36  ;;  %v8719_v50 = vcombine.low %v377_v35, %v381_v36 }
  0xba   :  { %v8722_v48 = vcombine.high %v378_v37, %v382_v39  ;;  %v438_v35 = vld [vmem:[#allocation5 + $0x868] sm:$0xff] }
  0xbc   :  { %6359 = vmatpush1.bf16.msra.mxu0 %v8655_v45  ;;  %6687 = vmatpush1.bf16.msra.mxu1 %v8657_v46  ;;  %v385_v45 = vld [vmem:[#allocation5 + $0x6c0] sm:$0xff] }
  0xbd   :  { %6360 = vmatprep.subr.bf16.mxu0 %v8664_v47  ;;  %6688 = vmatprep.subr.bf16.mxu1 %v8666_v51  ;;  %v389_v46 = vld [vmem:[#allocation5 + $0x6e0] sm:$0xff]  ;;  %v386_v47 = vld [vmem:[#allocation5 + $0x6c8] sm:$0xff]  ;;  %v8721_v51 = vcombine.low %v378_v37, %v382_v39 }
  0xbe   :  { %v8728_v52 = vcombine.high %v385_v45, %v389_v46  ;;  %v8730_v56 = vcombine.high %v386_v47, %v390_v49  ;;  %v8727_v59 = vcombine.low %v385_v45, %v389_v46  ;;  %v107_v37 = vld [vmem:[#allocation2 + $0x28] sm:$0xff]  ;;  %v441_v45 = vld [vmem:[#allocation5 + $0x880] sm:$0xff] }
  0xbf   :  { %v123_v39 = vmul.f32 %v107_v37, %v107_v37  ;;  %v445_v46 = vld [vmem:[#allocation5 + $0x8a0] sm:$0xff] }
  0xc0   :  { %6361 = vmatpush1.bf16.msra.mxu0 %v8663_v53  ;;  %6689 = vmatpush1.bf16.msra.mxu1 %v8665_v54  ;;  %v393_v53 = vld [vmem:[#allocation5 + $0x700] sm:$0xff] }
  0xc1   :  { %6362 = vmatprep.subr.bf16.mxu0 %v8672_v55  ;;  %6690 = vmatprep.subr.bf16.mxu1 %v8674_v60  ;;  %v397_v54 = vld [vmem:[#allocation5 + $0x720] sm:$0xff]  ;;  %v394_v55 = vld [vmem:[#allocation5 + $0x708] sm:$0xff]  ;;  %v8729_v60 = vcombine.low %v386_v47, %v390_v49 }
  0xc2   :  { %v8736_v62 = vcombine.high %v393_v53, %v397_v54  ;;  %v8738_v2 = vcombine.high %v394_v55, %v398_v57  ;;  %v8735_v4 = vcombine.low %v393_v53, %v397_v54  ;;  %v446_v49 = vld [vmem:[#allocation5 + $0x8a8] sm:$0xff] }
  0xc4   :  { %6363 = vmatpush1.bf16.msra.mxu0 %v8671_v63  ;;  %6691 = vmatpush1.bf16.msra.mxu1 %v8673_v0  ;;  %v401_v63 = vld [vmem:[#allocation5 + $0x740] sm:$0xff] }
  0xc5   :  { %6364 = vmatprep.subr.bf16.mxu0 %v8680_v1  ;;  %6692 = vmatprep.subr.bf16.mxu1 %v8682_v5  ;;  %v405_v0 = vld [vmem:[#allocation5 + $0x760] sm:$0xff]  ;;  %v402_v1 = vld [vmem:[#allocation5 + $0x748] sm:$0xff]  ;;  %v8737_v5 = vcombine.low %v394_v55, %v398_v57  ;;  %v8784_v55 = vcombine.high %v441_v45, %v445_v46 }
  0xc6   :  { %v8744_v6 = vcombine.high %v401_v63, %v405_v0  ;;  %v8746_v10 = vcombine.high %v402_v1, %v406_v3  ;;  %v8743_v12 = vcombine.low %v401_v63, %v405_v0  ;;  %v453_v57 = vld [vmem:[#allocation5 + $0x8e0] sm:$0xff]  ;;  %v454_v63 = vld [vmem:[#allocation5 + $0x8e8] sm:$0xff] }
  0xc8   :  { %6365 = vmatpush1.bf16.msra.mxu0 %v8679_v7  ;;  %6693 = vmatpush1.bf16.msra.mxu1 %v8681_v8  ;;  %v409_v7 = vld [vmem:[#allocation5 + $0x780] sm:$0xff] }
  0xc9   :  { %6366 = vmatprep.subr.bf16.mxu0 %v8688_v9  ;;  %6694 = vmatprep.subr.bf16.mxu1 %v8690_v13  ;;  %v413_v8 = vld [vmem:[#allocation5 + $0x7a0] sm:$0xff]  ;;  %v410_v9 = vld [vmem:[#allocation5 + $0x788] sm:$0xff]  ;;  %v8745_v13 = vcombine.low %v402_v1, %v406_v3 }
  0xca   :  { %v8752_v14 = vcombine.high %v409_v7, %v413_v8  ;;  %v8754_v18 = vcombine.high %v410_v9, %v414_v11  ;;  %v8751_v21 = vcombine.low %v409_v7, %v413_v8  ;;  %v461_v3 = vld [vmem:[#allocation5 + $0x920] sm:$0xff] }
  0xcc   :  { %6367 = vmatpush1.bf16.msra.mxu0 %v8687_v15  ;;  %6695 = vmatpush1.bf16.msra.mxu1 %v8689_v16  ;;  %v417_v15 = vld [vmem:[#allocation5 + $0x7c0] sm:$0xff] }
  0xcd   :  { %6368 = vmatprep.subr.bf16.mxu0 %v8696_v17  ;;  %6696 = vmatprep.subr.bf16.mxu1 %v8698_v22  ;;  %v421_v16 = vld [vmem:[#allocation5 + $0x7e0] sm:$0xff]  ;;  %v418_v17 = vld [vmem:[#allocation5 + $0x7c8] sm:$0xff]  ;;  %v8753_v22 = vcombine.low %v410_v9, %v414_v11 }
  0xce   :  { %v8760_v23 = vcombine.high %v417_v15, %v421_v16  ;;  %v8762_v27 = vcombine.high %v418_v17, %v422_v20  ;;  %v8759_v29 = vcombine.low %v417_v15, %v421_v16  ;;  %v8761_v31 = vcombine.low %v418_v17, %v422_v20  ;;  %v465_v11 = vld [vmem:[#allocation5 + $0x940] sm:$0xff] }
  0xcf   :  { %v473_v20 = vld [vmem:[#allocation5 + $0x980] sm:$0xff] }
  0xd0   :  { %6369 = vmatpush1.bf16.msra.mxu0 %v8695_v24  ;;  %6697 = vmatpush1.bf16.msra.mxu1 %v8697_v25  ;;  %v425_v24 = vld [vmem:[#allocation5 + $0x800] sm:$0xff] }
  0xd1   :  { %6370 = vmatprep.subr.bf16.mxu0 %v8704_v26  ;;  %6698 = vmatprep.subr.bf16.mxu1 %v8706_v30  ;;  %v429_v25 = vld [vmem:[#allocation5 + $0x820] sm:$0xff]  ;;  %v426_v26 = vld [vmem:[#allocation5 + $0x808] sm:$0xff] }
  0xd2   :  { %v433_v30 = vld [vmem:[#allocation5 + $0x840] sm:$0xff]  ;;  %v8770_v36 = vcombine.high %v426_v26, %v430_v28 }
  0xd4   :  { %6371 = vmatpush1.bf16.msra.mxu0 %v8703_v61  ;;  %6699 = vmatpush1.bf16.msra.mxu1 %v8705_v33  ;;  %v8768_v61 = vcombine.high %v425_v24, %v429_v25  ;;  %v437_v33 = vld [vmem:[#allocation5 + $0x860] sm:$0xff] }
  0xd5   :  { %6372 = vmatprep.subr.bf16.mxu0 %v8712_v34  ;;  %6700 = vmatprep.subr.bf16.mxu1 %v8714_v38  ;;  %v434_v34 = vld [vmem:[#allocation5 + $0x848] sm:$0xff]  ;;  %v10248_v38 = vpack.c.bf16 %v10226_v43, %v10226_v43  ;;  %v8775_v53 = vcombine.low %v433_v30, %v437_v33 }
  0xd6   :  { %v8778_v47 = vcombine.high %v434_v34, %v438_v35  ;;  %v8777_v54 = vcombine.low %v434_v34, %v438_v35 }
  0xd8   :  { %6373 = vmatpush1.bf16.msra.mxu0 %v8711_v40  ;;  %6701 = vmatpush1.bf16.msra.mxu1 %v8713_v41  ;;  %v8767_v40 = vcombine.low %v425_v24, %v429_v25  ;;  %v8769_v41 = vcombine.low %v426_v26, %v430_v28  ;;  %v481_v28 = vld [vmem:[#allocation5 + $0x9c0] sm:$0xff] }
  0xd9   :  { %6374 = vmatprep.subr.bf16.mxu0 %v8720_v42  ;;  %6702 = vmatprep.subr.bf16.mxu1 %v8722_v48  ;;  %v8776_v42 = vcombine.high %v433_v30, %v437_v33  ;;  %v442_v48 = vld [vmem:[#allocation5 + $0x888] sm:$0xff] }
  0xda   :  { %v8785_v0 = vcombine.low %v442_v48, %v446_v49  ;;  %v482_v30 = vld [vmem:[#allocation5 + $0x9c8] sm:$0xff] }
  0xdc   :  { %6375 = vmatpush1.bf16.msra.mxu0 %v8719_v50  ;;  %6703 = vmatpush1.bf16.msra.mxu1 %v8721_v51  ;;  %v10250_v50 = vpack.c.bf16 %v107_v37, %v107_v37  ;;  %v10252_v51 = vld [vmem:[#allocation2 + $0x30] sm:$0xff]  ;;  %v493_v37 = vld [vmem:[#allocation5 + $0xa20] sm:$0xff] }
  0xdd   :  { %6376 = vmatprep.subr.bf16.mxu0 %v8728_v52  ;;  %6704 = vmatprep.subr.bf16.mxu1 %v8730_v56  ;;  %v124_v43 = vmul.f32 %v10252_v51, %v10252_v51  ;;  %v138_v52 = vadd.f32 %v10243_v44, %v123_v39  ;;  %v449_v56 = vld [vmem:[#allocation5 + $0x8c0] sm:$0xff]  ;;  %v8783_v44 = vcombine.low %v441_v45, %v445_v46  ;;  %v490_v39 = vld [vmem:[#allocation5 + $0xa08] sm:$0xff] }
  0xde   :  { %v8792_v1 = vcombine.high %v449_v56, %v453_v57  ;;  %v8791_v7 = vcombine.low %v449_v56, %v453_v57  ;;  %v505_v56 = vld [vmem:[#allocation5 + $0xa80] sm:$0xff] }
  0xdf   :  { %v509_v57 = vld [vmem:[#allocation5 + $0xaa0] sm:$0xff] }
  0xe0   :  { %6377 = vmatpush1.bf16.msra.mxu0 %v8727_v59  ;;  %6705 = vmatpush1.bf16.msra.mxu1 %v8729_v60  ;;  %v450_v59 = vld [vmem:[#allocation5 + $0x8c8] sm:$0xff]  ;;  %v10259_v60 = vadd.f32 %v138_v52, %v124_v43 }
  0xe1   :  { %6378 = vmatprep.subr.bf16.mxu0 %v8736_v62  ;;  %6706 = vmatprep.subr.bf16.mxu1 %v8738_v2  ;;  %v8786_v62 = vcombine.high %v442_v48, %v446_v49  ;;  %v457_v2 = vld [vmem:[#allocation5 + $0x900] sm:$0xff]  ;;  %v8793_v8 = vcombine.low %v450_v59, %v454_v63  ;;  %v498_v49 = vld [vmem:[#allocation5 + $0xa48] sm:$0xff] }
  0xe2   :  { %v8800_v9 = vcombine.high %v457_v2, %v461_v3  ;;  %v8799_v15 = vcombine.low %v457_v2, %v461_v3  ;;  %v501_v48 = vld [vmem:[#allocation5 + $0xa60] sm:$0xff]  ;;  %v502_v43 = vld [vmem:[#allocation5 + $0xa68] sm:$0xff] }
  0xe3   :  { %v513_v2 = vld [vmem:[#allocation5 + $0xac0] sm:$0xff] }
  0xe4   :  { %6379 = vmatpush1.bf16.msra.mxu0 %v8735_v4  ;;  %6707 = vmatpush1.bf16.msra.mxu1 %v8737_v5  ;;  %v458_v4 = vld [vmem:[#allocation5 + $0x908] sm:$0xff]  ;;  %v8794_v5 = vcombine.high %v450_v59, %v454_v63  ;;  %v517_v3 = vld [vmem:[#allocation5 + $0xae0] sm:$0xff] }
  0xe5   :  { %6380 = vmatprep.subr.bf16.mxu0 %v8744_v6  ;;  %6708 = vmatprep.subr.bf16.mxu1 %v8746_v10  ;;  %v462_v6 = vld [vmem:[#allocation5 + $0x928] sm:$0xff] }
  0xe6   :  { %v8802_v10 = vcombine.high %v458_v4, %v462_v6  ;;  %v8801_v16 = vcombine.low %v458_v4, %v462_v6  ;;  %v506_v59 = vld [vmem:[#allocation5 + $0xa88] sm:$0xff]  ;;  %v8847_v6 = vcombine.low %v505_v56, %v509_v57 }
  0xe7   :  { %v514_v4 = vld [vmem:[#allocation5 + $0xac8] sm:$0xff] }
  0xe8   :  { %6381 = vmatpush1.bf16.msra.mxu0 %v8743_v12  ;;  %6709 = vmatpush1.bf16.msra.mxu1 %v8745_v13  ;;  %v469_v12 = vld [vmem:[#allocation5 + $0x960] sm:$0xff]  ;;  %v466_v13 = vld [vmem:[#allocation5 + $0x948] sm:$0xff] }
  0xe9   :  { %6382 = vmatprep.subr.bf16.mxu0 %v8752_v14  ;;  %6710 = vmatprep.subr.bf16.mxu1 %v8754_v18  ;;  %v470_v14 = vld [vmem:[#allocation5 + $0x968] sm:$0xff]  ;;  %v8808_v17 = vcombine.high %v465_v11, %v469_v12  ;;  %v8807_v24 = vcombine.low %v465_v11, %v469_v12  ;;  %v525_v11 = vld [vmem:[#allocation5 + $0xb20] sm:$0xff] }
  0xea   :  { %v8810_v18 = vcombine.high %v466_v13, %v470_v14  ;;  %v8809_v25 = vcombine.low %v466_v13, %v470_v14  ;;  %v522_v12 = vld [vmem:[#allocation5 + $0xb08] sm:$0xff]  ;;  %v8855_v14 = vcombine.low %v513_v2, %v517_v3 }
  0xeb   :  { %v526_v13 = vld [vmem:[#allocation5 + $0xb28] sm:$0xff] }
  0xec   :  { %6383 = vmatpush1.bf16.msra.mxu0 %v8751_v21  ;;  %6711 = vmatpush1.bf16.msra.mxu1 %v8753_v22  ;;  %v477_v21 = vld [vmem:[#allocation5 + $0x9a0] sm:$0xff]  ;;  %v474_v22 = vld [vmem:[#allocation5 + $0x988] sm:$0xff] }
  0xed   :  { %6384 = vmatprep.subr.bf16.mxu0 %v8760_v23  ;;  %6712 = vmatprep.subr.bf16.mxu1 %v8762_v27  ;;  %v478_v23 = vld [vmem:[#allocation5 + $0x9a8] sm:$0xff]  ;;  %v8816_v26 = vcombine.high %v473_v20, %v477_v21 }
  0xee   :  { %v8818_v27 = vcombine.high %v474_v22, %v478_v23  ;;  %v8817_v33 = vcombine.low %v474_v22, %v478_v23  ;;  %v534_v22 = vld [vmem:[#allocation5 + $0xb68] sm:$0xff] }
  0xf0   :  { %6385 = vmatpush1.bf16.msra.mxu0 %v8759_v29  ;;  %6713 = vmatpush1.bf16.msra.mxu1 %v8761_v31  ;;  %v485_v29 = vld [vmem:[#allocation5 + $0x9e0] sm:$0xff]  ;;  %v486_v31 = vld [vmem:[#allocation5 + $0x9e8] sm:$0xff] }
  0xf1   :  { %6395 = vmatprep.subr.bf16.mxu0 %v8768_v61  ;;  %6723 = vmatprep.subr.bf16.mxu1 %v8770_v36  ;;  %v8815_v61 = vcombine.low %v473_v20, %v477_v21  ;;  %v8824_v34 = vcombine.high %v481_v28, %v485_v29  ;;  %v8826_v35 = vcombine.high %v482_v30, %v486_v31  ;;  %v489_v36 = vld [vmem:[#allocation5 + $0xa00] sm:$0xff]  ;;  %v530_v21 = vld [vmem:[#allocation5 + $0xb48] sm:$0xff] }
  0xf2   :  { %v8832_v45 = vcombine.high %v489_v36, %v493_v37  ;;  %v8831_v52 = vcombine.low %v489_v36, %v493_v37  ;;  %v533_v20 = vld [vmem:[#allocation5 + $0xb60] sm:$0xff]  ;;  %v546_v37 = vld [vmem:[#allocation5 + $0xbc8] sm:$0xff] }
  0xf3   :  { %6387 = vmatmul.mubr.bf16.vlgmr.msra.gmra.mrb[0].mxu0 %v10248_v38  ;;  %6715 = vmatmul.mubr.bf16.vlgmr.msra.gmra.mrb[0].mxu1 %v10248_v38  ;;  %v549_v36 = vld [vmem:[#allocation5 + $0xbe0] sm:$0xff] }
  0xf4   :  { %6396 = vmatpush1.bf16.msra.mxu0 %v8767_v40  ;;  %6724 = vmatpush1.bf16.msra.mxu1 %v8769_v41  ;;  %v494_v40 = vld [vmem:[#allocation5 + $0xa28] sm:$0xff]  ;;  %v8823_v41 = vcombine.low %v481_v28, %v485_v29  ;;  %v541_v28 = vld [vmem:[#allocation5 + $0xba0] sm:$0xff] }
  0xf5   :  { %6397 = vmatprep.subr.bf16.mxu0 %v8776_v42  ;;  %6725 = vmatprep.subr.bf16.mxu1 %v8778_v47  ;;  %v8825_v42 = vcombine.low %v482_v30, %v486_v31  ;;  %v8834_v46 = vcombine.high %v490_v39, %v494_v40  ;;  %v497_v47 = vld [vmem:[#allocation5 + $0xa40] sm:$0xff]  ;;  %v538_v29 = vld [vmem:[#allocation5 + $0xb88] sm:$0xff] }
  0xf6   :  { %6427 = vmatprep.mubr.bf16.mxu0 %v10250_v50  ;;  %6755 = vmatprep.mubr.bf16.mxu1 %v10250_v50  ;;  %v8839_v63 = vcombine.low %v497_v47, %v501_v48  ;;  %v542_v30 = vld [vmem:[#allocation5 + $0xba8] sm:$0xff] }
  0xf8   :  { %6398 = vmatpush1.bf16.msra.mxu0 %v8775_v53  ;;  %6726 = vmatpush1.bf16.msra.mxu1 %v8777_v54  ;;  %v8833_v53 = vcombine.low %v490_v39, %v494_v40  ;;  %v8840_v54 = vcombine.high %v497_v47, %v501_v48  ;;  %v550_v39 = vld [vmem:[#allocation5 + $0xbe8] sm:$0xff]  ;;  %v557_v47 = vld [vmem:[#allocation5 + $0xc20] sm:$0xff] }
  0xf9   :  { %6399 = vmatprep.subr.bf16.mxu0 %v8784_v55  ;;  %6727 = vmatprep.subr.bf16.mxu1 %v8786_v62  ;;  %v8842_v55 = vcombine.high %v498_v49, %v502_v43  ;;  %v510_v62 = vld [vmem:[#allocation5 + $0xaa8] sm:$0xff] }
  0xfa   :  { %v554_v48 = vld [vmem:[#allocation5 + $0xc08] sm:$0xff] }
  0xfc   :  { %6400 = vmatpush1.bf16.msra.mxu0 %v8783_v44  ;;  %6728 = vmatpush1.bf16.msra.mxu1 %v8785_v0  ;;  %v8841_v44 = vcombine.low %v498_v49, %v502_v43  ;;  %v8848_v0 = vcombine.high %v505_v56, %v509_v57  ;;  %v558_v49 = vld [vmem:[#allocation5 + $0xc28] sm:$0xff]  ;;  %v565_v56 = vld [vmem:[#allocation5 + $0xc60] sm:$0xff]  ;;  %v109_v57 = vld [vmem:[#allocation2 + $0x38] sm:$0xff] }
  0xfd   :  { %6401 = vmatprep.subr.bf16.mxu0 %v8792_v1  ;;  %6729 = vmatprep.subr.bf16.mxu1 %v8794_v5  ;;  %v8850_v1 = vcombine.high %v506_v59, %v510_v62  ;;  %v518_v5 = vld [vmem:[#allocation5 + $0xae8] sm:$0xff] }
 0x100   :  { %6402 = vmatpush1.bf16.msra.mxu0 %v8791_v7  ;;  %6730 = vmatpush1.bf16.msra.mxu1 %v8793_v8  ;;  %v8849_v7 = vcombine.low %v506_v59, %v510_v62  ;;  %v8856_v8 = vcombine.high %v513_v2, %v517_v3  ;;  %v9925_v59 = vld [vmem:[#allocation2 + $0x20] sm:$0xff]  ;;  %v8897_v2 = vcombine.low %v554_v48, %v558_v49 }
 0x101   :  { %6403 = vmatprep.subr.bf16.mxu0 %v8800_v9  ;;  %6731 = vmatprep.subr.bf16.mxu1 %v8802_v10  ;;  %v8858_v9 = vcombine.high %v514_v4, %v518_v5  ;;  %v521_v10 = vld [vmem:[#allocation5 + $0xb00] sm:$0xff]  ;;  %v10263_v62 = vpack.c.bf16 %v9925_v59, %v9925_v59 }
 0x102   :  { %v8863_v23 = vcombine.low %v521_v10, %v525_v11 }
 0x104   :  { %6404 = vmatpush1.bf16.msra.mxu0 %v8799_v15  ;;  %6732 = vmatpush1.bf16.msra.mxu1 %v8801_v16  ;;  %v8857_v15 = vcombine.low %v514_v4, %v518_v5  ;;  %v8864_v16 = vcombine.high %v521_v10, %v525_v11  ;;  %v569_v5 = vld [vmem:[#allocation5 + $0xc80] sm:$0xff]  ;;  %v574_v10 = vld [vmem:[#allocation5 + $0xca8] sm:$0xff] }
 0x105   :  { %6405 = vmatprep.subr.bf16.mxu0 %v8808_v17  ;;  %6733 = vmatprep.subr.bf16.mxu1 %v8810_v18  ;;  %v8866_v17 = vcombine.high %v522_v12, %v526_v13  ;;  %v529_v18 = vld [vmem:[#allocation5 + $0xb40] sm:$0xff] }
 0x106   :  { %v8871_v31 = vcombine.low %v529_v18, %v533_v20 }
 0x108   :  { %6406 = vmatpush1.bf16.msra.mxu0 %v8807_v24  ;;  %6734 = vmatpush1.bf16.msra.mxu1 %v8809_v25  ;;  %v8865_v24 = vcombine.low %v522_v12, %v526_v13  ;;  %v8872_v25 = vcombine.high %v529_v18, %v533_v20  ;;  %v577_v18 = vld [vmem:[#allocation5 + $0xcc0] sm:$0xff] }
 0x109   :  { %6407 = vmatprep.subr.bf16.mxu0 %v8816_v26  ;;  %6735 = vmatprep.subr.bf16.mxu1 %v8818_v27  ;;  %v8874_v26 = vcombine.high %v530_v21, %v534_v22  ;;  %v537_v27 = vld [vmem:[#allocation5 + $0xb80] sm:$0xff] }
 0x10a   :  { %v8879_v40 = vcombine.low %v537_v27, %v541_v28  ;;  %v581_v20 = vld [vmem:[#allocation5 + $0xce0] sm:$0xff] }
 0x10c   :  { %6408 = vmatpush1.bf16.msra.mxu0 %v8815_v61  ;;  %6736 = vmatpush1.bf16.msra.mxu1 %v8817_v33  ;;  %v8873_v61 = vcombine.low %v530_v21, %v534_v22  ;;  %v8880_v33 = vcombine.high %v537_v27, %v541_v28  ;;  %v578_v21 = vld [vmem:[#allocation5 + $0xcc8] sm:$0xff]  ;;  %v589_v27 = vld [vmem:[#allocation5 + $0xd20] sm:$0xff] }
 0x10d   :  { %6409 = vmatprep.subr.bf16.mxu0 %v8824_v34  ;;  %6737 = vmatprep.subr.bf16.mxu1 %v8826_v35  ;;  %v8882_v34 = vcombine.high %v538_v29, %v542_v30  ;;  %v545_v35 = vld [vmem:[#allocation5 + $0xbc0] sm:$0xff]  ;;  %v582_v22 = vld [vmem:[#allocation5 + $0xce8] sm:$0xff] }
 0x10e   :  { %v8887_v43 = vcombine.low %v545_v35, %v549_v36  ;;  %v586_v28 = vld [vmem:[#allocation5 + $0xd08] sm:$0xff] }
 0x110   :  { %6410 = vmatpush1.bf16.msra.mxu0 %v8823_v41  ;;  %6738 = vmatpush1.bf16.msra.mxu1 %v8825_v42  ;;  %v8881_v41 = vcombine.low %v538_v29, %v542_v30  ;;  %v8888_v42 = vcombine.high %v545_v35, %v549_v36  ;;  %v590_v29 = vld [vmem:[#allocation5 + $0xd28] sm:$0xff]  ;;  %v8919_v30 = vcombine.low %v577_v18, %v581_v20  ;;  %v597_v35 = vld [vmem:[#allocation5 + $0xd60] sm:$0xff] }
 0x111   :  { %6411 = vmatprep.subr.bf16.mxu0 %v8832_v45  ;;  %6739 = vmatprep.subr.bf16.mxu1 %v8834_v46  ;;  %v8890_v45 = vcombine.high %v546_v37, %v550_v39  ;;  %v553_v46 = vld [vmem:[#allocation5 + $0xc00] sm:$0xff]  ;;  %v594_v36 = vld [vmem:[#allocation5 + $0xd48] sm:$0xff] }
 0x114   :  { %6412 = vmatpush1.bf16.msra.mxu0 %v8831_v52  ;;  %6740 = vmatpush1.bf16.msra.mxu1 %v8833_v53  ;;  %v8889_v52 = vcombine.low %v546_v37, %v550_v39  ;;  %v8896_v53 = vcombine.high %v553_v46, %v557_v47  ;;  %v598_v37 = vld [vmem:[#allocation5 + $0xd68] sm:$0xff] }
 0x115   :  { %6413 = vmatprep.subr.bf16.mxu0 %v8840_v54  ;;  %6741 = vmatprep.subr.bf16.mxu1 %v8842_v55  ;;  %v8898_v54 = vcombine.high %v554_v48, %v558_v49  ;;  %v561_v55 = vld [vmem:[#allocation5 + $0xc40] sm:$0xff]  ;;  %v606_v48 = vld [vmem:[#allocation5 + $0xda8] sm:$0xff] }
 0x116   :  { %v8904_v3 = vcombine.high %v561_v55, %v565_v56  ;;  %v8903_v13 = vcombine.low %v561_v55, %v565_v56  ;;  %v613_v55 = vld [vmem:[#allocation5 + $0xde0] sm:$0xff]  ;;  %v610_v56 = vld [vmem:[#allocation5 + $0xdc8] sm:$0xff] }
 0x118   :  { %6414 = vmatpush1.bf16.msra.mxu0 %v8839_v63  ;;  %6742 = vmatpush1.bf16.msra.mxu1 %v8841_v44  ;;  %v562_v63 = vld [vmem:[#allocation5 + $0xc48] sm:$0xff] }
 0x119   :  { %6415 = vmatprep.subr.bf16.mxu0 %v8848_v0  ;;  %6743 = vmatprep.subr.bf16.mxu1 %v8850_v1  ;;  %v566_v44 = vld [vmem:[#allocation5 + $0xc68] sm:$0xff]  ;;  %v125_v0 = vmul.f32 %v109_v57, %v109_v57  ;;  %v8895_v1 = vcombine.low %v553_v46, %v557_v47  ;;  %v605_v46 = vld [vmem:[#allocation5 + $0xda0] sm:$0xff] }
 0x11a   :  { %v8906_v4 = vcombine.high %v562_v63, %v566_v44  ;;  %v602_v47 = vld [vmem:[#allocation5 + $0xd88] sm:$0xff] }
 0x11b   :  { %v140_v12 = vadd.f32 %v10259_v60, %v125_v0 }
 0x11c   :  { %6416 = vmatpush1.bf16.msra.mxu0 %v8847_v6  ;;  %6744 = vmatpush1.bf16.msra.mxu1 %v8849_v7  ;;  %v573_v6 = vld [vmem:[#allocation5 + $0xca0] sm:$0xff]  ;;  %v10265_v7 = vpack.c.bf16 %v109_v57, %v109_v57  ;;  %v614_v57 = vld [vmem:[#allocation5 + $0xde8] sm:$0xff] }
 0x11d   :  { %6417 = vmatprep.subr.bf16.mxu0 %v8856_v8  ;;  %6745 = vmatprep.subr.bf16.mxu1 %v8858_v9  ;;  %v10267_v8 = vld [vmem:[#allocation2 + $0x40] sm:$0xff]  ;;  %v570_v9 = vld [vmem:[#allocation5 + $0xc88] sm:$0xff]  ;;  %v8911_v60 = vcombine.low %v569_v5, %v573_v6  ;;  %v8954_v0 = vcombine.high %v610_v56, %v614_v57 }
 0x11e   :  { %v126_v11 = vmul.f32 %v10267_v8, %v10267_v8 }
 0x120   :  { %6418 = vmatpush1.bf16.msra.mxu0 %v8855_v14  ;;  %6746 = vmatpush1.bf16.msra.mxu1 %v8857_v15  ;;  %v8905_v14 = vcombine.low %v562_v63, %v566_v44  ;;  %v8912_v15 = vcombine.high %v569_v5, %v573_v6  ;;  %v8945_v63 = vcombine.low %v602_v47, %v606_v48 }
 0x121   :  { %6419 = vmatprep.subr.bf16.mxu0 %v8864_v16  ;;  %6747 = vmatprep.subr.bf16.mxu1 %v8866_v17  ;;  %v10274_v16 = vadd.f32 %v140_v12, %v126_v11  ;;  %v8914_v17 = vcombine.high %v570_v9, %v574_v10  ;;  %v8953_v6 = vcombine.low %v610_v56, %v614_v57  ;;  %v625_v11 = vld [vmem:[#allocation5 + $0xe40] sm:$0xff] }
 0x122   :  { %v629_v12 = vld [vmem:[#allocation5 + $0xe60] sm:$0xff] }
 0x123   :  { %v665_v56 = vld [vmem:[#allocation5 + $0xf80] sm:$0xff] }
 0x124   :  { %6420 = vmatpush1.bf16.msra.mxu0 %v8863_v23  ;;  %6748 = vmatpush1.bf16.msra.mxu1 %v8865_v24  ;;  %v8913_v23 = vcombine.low %v570_v9, %v574_v10  ;;  %v8920_v24 = vcombine.high %v577_v18, %v581_v20  ;;  %v8968_v18 = vcombine.high %v625_v11, %v629_v12  ;;  %v669_v57 = vld [vmem:[#allocation5 + $0xfa0] sm:$0xff] }
 0x125   :  { %6421 = vmatprep.subr.bf16.mxu0 %v8872_v25  ;;  %6749 = vmatprep.subr.bf16.mxu1 %v8874_v26  ;;  %v8922_v25 = vcombine.high %v578_v21, %v582_v22  ;;  %v585_v26 = vld [vmem:[#allocation5 + $0xd00] sm:$0xff] }
 0x126   :  { %v8927_v39 = vcombine.low %v585_v26, %v589_v27 }
 0x128   :  { %6422 = vmatpush1.bf16.msra.mxu0 %v8871_v31  ;;  %6750 = vmatpush1.bf16.msra.mxu1 %v8873_v61  ;;  %v8921_v31 = vcombine.low %v578_v21, %v582_v22  ;;  %v8928_v61 = vcombine.high %v585_v26, %v589_v27  ;;  %v633_v21 = vld [vmem:[#allocation5 + $0xe80] sm:$0xff] }
 0x129   :  { %6423 = vmatprep.subr.bf16.mxu0 %v8880_v33  ;;  %6751 = vmatprep.subr.bf16.mxu1 %v8882_v34  ;;  %v8930_v33 = vcombine.high %v586_v28, %v590_v29  ;;  %v593_v34 = vld [vmem:[#allocation5 + $0xd40] sm:$0xff] }
 0x12a   :  { %v8935_v49 = vcombine.low %v593_v34, %v597_v35  ;;  %v637_v22 = vld [vmem:[#allocation5 + $0xea0] sm:$0xff] }
 0x12b   :  { %v8976_v26 = vcombine.high %v633_v21, %v637_v22 }
 0x12c   :  { %6424 = vmatpush1.bf16.msra.mxu0 %v8879_v40  ;;  %6752 = vmatpush1.bf16.msra.mxu1 %v8881_v41  ;;  %v8929_v40 = vcombine.low %v586_v28, %v590_v29  ;;  %v8936_v41 = vcombine.high %v593_v34, %v597_v35  ;;  %v641_v28 = vld [vmem:[#allocation5 + $0xec0] sm:$0xff] }
 0x12d   :  { %6425 = vmatprep.subr.bf16.mxu0 %v8888_v42  ;;  %6753 = vmatprep.subr.bf16.mxu1 %v8890_v45  ;;  %v8938_v42 = vcombine.high %v594_v36, %v598_v37  ;;  %v601_v45 = vld [vmem:[#allocation5 + $0xd80] sm:$0xff] }
 0x12e   :  { %v8943_v59 = vcombine.low %v601_v45, %v605_v46  ;;  %v645_v29 = vld [vmem:[#allocation5 + $0xee0] sm:$0xff] }
 0x12f   :  { %v8984_v34 = vcombine.high %v641_v28, %v645_v29 }
 0x130   :  { %6426 = vmatpush1.bf16.msra.mxu0 %v8887_v43  ;;  %6754 = vmatpush1.bf16.msra.mxu1 %v8889_v52  ;;  %v8937_v43 = vcombine.low %v594_v36, %v598_v37  ;;  %v8944_v52 = vcombine.high %v601_v45, %v605_v46  ;;  %v649_v36 = vld [vmem:[#allocation5 + $0xf00] sm:$0xff] }
 0x131   :  { %6436 = vmatprep.subr.bf16.mxu0 %v8896_v53  ;;  %6764 = vmatprep.subr.bf16.mxu1 %v8898_v54  ;;  %v8946_v53 = vcombine.high %v602_v47, %v606_v48  ;;  %v609_v54 = vld [vmem:[#allocation5 + $0xdc0] sm:$0xff] }
 0x132   :  { %v8952_v44 = vcombine.high %v609_v54, %v613_v55  ;;  %v8951_v5 = vcombine.low %v609_v54, %v613_v55  ;;  %v653_v37 = vld [vmem:[#allocation5 + $0xf20] sm:$0xff] }
 0x133   :  { %6428 = vmatmul.mubr.bf16.vlgmr.msra.gmra.mrb[0].mxu0 %v10263_v62  ;;  %6756 = vmatmul.mubr.bf16.vlgmr.msra.gmra.mrb[0].mxu1 %v10263_v62  ;;  %v8992_v45 = vcombine.high %v649_v36, %v653_v37  ;;  %v657_v47 = vld [vmem:[#allocation5 + $0xf40] sm:$0xff] }
 0x134   :  { %6437 = vmatpush1.bf16.msra.mxu0 %v8895_v1  ;;  %6765 = vmatpush1.bf16.msra.mxu1 %v8897_v2  ;;  %v617_v1 = vld [vmem:[#allocation5 + $0xe00] sm:$0xff] }
 0x135   :  { %6438 = vmatprep.subr.bf16.mxu0 %v8904_v3  ;;  %6766 = vmatprep.subr.bf16.mxu1 %v8906_v4  ;;  %v621_v2 = vld [vmem:[#allocation5 + $0xe20] sm:$0xff]  ;;  %v618_v3 = vld [vmem:[#allocation5 + $0xe08] sm:$0xff] }
 0x136   :  { %6468 = vmatprep.mubr.bf16.mxu0 %v10265_v7  ;;  %6796 = vmatprep.mubr.bf16.mxu1 %v10265_v7  ;;  %v622_v4 = vld [vmem:[#allocation5 + $0xe28] sm:$0xff]  ;;  %v8960_v9 = vcombine.high %v617_v1, %v621_v2  ;;  %v661_v48 = vld [vmem:[#allocation5 + $0xf60] sm:$0xff] }
 0x137   :  { %v8962_v10 = vcombine.high %v618_v3, %v622_v4  ;;  %v9000_v54 = vcombine.high %v657_v47, %v661_v48 }
 0x138   :  { %6439 = vmatpush1.bf16.msra.mxu0 %v8903_v13  ;;  %6767 = vmatpush1.bf16.msra.mxu1 %v8905_v14  ;;  %v626_v13 = vld [vmem:[#allocation5 + $0xe48] sm:$0xff] }
 0x139   :  { %6440 = vmatprep.subr.bf16.mxu0 %v8912_v15  ;;  %6768 = vmatprep.subr.bf16.mxu1 %v8914_v17  ;;  %v630_v14 = vld [vmem:[#allocation5 + $0xe68] sm:$0xff]  ;;  %v8959_v15 = vcombine.low %v617_v1, %v621_v2  ;;  %v8961_v17 = vcombine.low %v618_v3, %v622_v4  ;;  %v9008_v1 = vcombine.high %v665_v56, %v669_v57  ;;  %v673_v3 = vld [vmem:[#allocation5 + $0xfc0] sm:$0xff] }
 0x13a   :  { %v8970_v20 = vcombine.high %v626_v13, %v630_v14  ;;  %v677_v4 = vld [vmem:[#allocation5 + $0xfe0] sm:$0xff] }
 0x13c   :  { %6441 = vmatpush1.bf16.msra.mxu0 %v8911_v60  ;;  %6769 = vmatpush1.bf16.msra.mxu1 %v8913_v23  ;;  %v634_v60 = vld [vmem:[#allocation5 + $0xe88] sm:$0xff] }
 0x13d   :  { %6442 = vmatprep.subr.bf16.mxu0 %v8920_v24  ;;  %6770 = vmatprep.subr.bf16.mxu1 %v8922_v25  ;;  %v638_v23 = vld [vmem:[#allocation5 + $0xea8] sm:$0xff]  ;;  %v8967_v24 = vcombine.low %v625_v11, %v629_v12  ;;  %v8969_v25 = vcombine.low %v626_v13, %v630_v14  ;;  %v9016_v11 = vcombine.high %v673_v3, %v677_v4  ;;  %v681_v13 = vld [vmem:[#allocation5 + $0x1000] sm:$0xff] }
 0x13e   :  { %v8978_v27 = vcombine.high %v634_v60, %v638_v23  ;;  %v685_v14 = vld [vmem:[#allocation5 + $0x1020] sm:$0xff] }
 0x140   :  { %6443 = vmatpush1.bf16.msra.mxu0 %v8919_v30  ;;  %6771 = vmatpush1.bf16.msra.mxu1 %v8921_v31  ;;  %v642_v30 = vld [vmem:[#allocation5 + $0xec8] sm:$0xff] }
 0x141   :  { %6444 = vmatprep.subr.bf16.mxu0 %v8928_v61  ;;  %6772 = vmatprep.subr.bf16.mxu1 %v8930_v33  ;;  %v646_v31 = vld [vmem:[#allocation5 + $0xee8] sm:$0xff]  ;;  %v8975_v61 = vcombine.low %v633_v21, %v637_v22  ;;  %v8977_v33 = vcombine.low %v634_v60, %v638_v23  ;;  %v9024_v21 = vcombine.high %v681_v13, %v685_v14  ;;  %v689_v60 = vld [vmem:[#allocation5 + $0x1040] sm:$0xff] }
 0x142   :  { %v8986_v35 = vcombine.high %v642_v30, %v646_v31  ;;  %v693_v23 = vld [vmem:[#allocation5 + $0x1060] sm:$0xff] }
 0x144   :  { %6445 = vmatpush1.bf16.msra.mxu0 %v8927_v39  ;;  %6773 = vmatpush1.bf16.msra.mxu1 %v8929_v40  ;;  %v650_v39 = vld [vmem:[#allocation5 + $0xf08] sm:$0xff] }
 0x145   :  { %6446 = vmatprep.subr.bf16.mxu0 %v8936_v41  ;;  %6774 = vmatprep.subr.bf16.mxu1 %v8938_v42  ;;  %v654_v40 = vld [vmem:[#allocation5 + $0xf28] sm:$0xff]  ;;  %v8983_v41 = vcombine.low %v641_v28, %v645_v29  ;;  %v8985_v42 = vcombine.low %v642_v30, %v646_v31  ;;  %v9023_v28 = vcombine.low %v681_v13, %v685_v14 }
 0x146   :  { %v8994_v46 = vcombine.high %v650_v39, %v654_v40  ;;  %v9032_v30 = vcombine.high %v689_v60, %v693_v23 }
 0x148   :  { %6447 = vmatpush1.bf16.msra.mxu0 %v8935_v49  ;;  %6775 = vmatpush1.bf16.msra.mxu1 %v8937_v43  ;;  %v658_v49 = vld [vmem:[#allocation5 + $0xf48] sm:$0xff] }
 0x149   :  { %6448 = vmatprep.subr.bf16.mxu0 %v8944_v52  ;;  %6776 = vmatprep.subr.bf16.mxu1 %v8946_v53  ;;  %v662_v43 = vld [vmem:[#allocation5 + $0xf68] sm:$0xff]  ;;  %v8991_v52 = vcombine.low %v649_v36, %v653_v37  ;;  %v8993_v53 = vcombine.low %v650_v39, %v654_v40  ;;  %v9031_v36 = vcombine.low %v689_v60, %v693_v23 }
 0x14a   :  { %v9002_v55 = vcombine.high %v658_v49, %v662_v43 }
 0x14c   :  { %6449 = vmatpush1.bf16.msra.mxu0 %v8943_v59  ;;  %6777 = vmatpush1.bf16.msra.mxu1 %v8945_v63  ;;  %v666_v59 = vld [vmem:[#allocation5 + $0xf88] sm:$0xff] }
 0x14d   :  { %6450 = vmatprep.subr.bf16.mxu0 %v8952_v44  ;;  %6778 = vmatprep.subr.bf16.mxu1 %v8954_v0  ;;  %v670_v63 = vld [vmem:[#allocation5 + $0xfa8] sm:$0xff]  ;;  %v8999_v44 = vcombine.low %v657_v47, %v661_v48  ;;  %v9001_v0 = vcombine.low %v658_v49, %v662_v43 }
 0x14e   :  { %v9010_v2 = vcombine.high %v666_v59, %v670_v63 }
 0x150   :  { %6451 = vmatpush1.bf16.msra.mxu0 %v8951_v5  ;;  %6779 = vmatpush1.bf16.msra.mxu1 %v8953_v6  ;;  %v674_v5 = vld [vmem:[#allocation5 + $0xfc8] sm:$0xff] }
 0x151   :  { %6452 = vmatprep.subr.bf16.mxu0 %v8960_v9  ;;  %6780 = vmatprep.subr.bf16.mxu1 %v8962_v10  ;;  %v678_v6 = vld [vmem:[#allocation5 + $0xfe8] sm:$0xff]  ;;  %v9007_v9 = vcombine.low %v665_v56, %v669_v57  ;;  %v9009_v10 = vcombine.low %v666_v59, %v670_v63 }
 0x152   :  { %v9018_v12 = vcombine.high %v674_v5, %v678_v6 }
 0x154   :  { %6453 = vmatpush1.bf16.msra.mxu0 %v8959_v15  ;;  %6781 = vmatpush1.bf16.msra.mxu1 %v8961_v17  ;;  %v682_v15 = vld [vmem:[#allocation5 + $0x1008] sm:$0xff] }
 0x155   :  { %6454 = vmatprep.subr.bf16.mxu0 %v8968_v18  ;;  %6782 = vmatprep.subr.bf16.mxu1 %v8970_v20  ;;  %v686_v17 = vld [vmem:[#allocation5 + $0x1028] sm:$0xff]  ;;  %v9015_v18 = vcombine.low %v673_v3, %v677_v4  ;;  %v9017_v20 = vcombine.low %v674_v5, %v678_v6 }
 0x156   :  { %v9026_v22 = vcombine.high %v682_v15, %v686_v17  ;;  %v9025_v29 = vcombine.low %v682_v15, %v686_v17 }
 0x158   :  { %6455 = vmatpush1.bf16.msra.mxu0 %v8967_v24  ;;  %6783 = vmatpush1.bf16.msra.mxu1 %v8969_v25  ;;  %v10280_v24 = vpack.c.bf16 %v10252_v51, %v10252_v51  ;;  %v690_v25 = vld [vmem:[#allocation5 + $0x1048] sm:$0xff] }
 0x159   :  { %6456 = vmatprep.subr.bf16.mxu0 %v8976_v26  ;;  %6784 = vmatprep.subr.bf16.mxu1 %v8978_v27  ;;  %v694_v26 = vld [vmem:[#allocation5 + $0x1068] sm:$0xff] }
 0x15a   :  { %v111_v27 = vld [vmem:[#allocation2 + $0x48] sm:$0xff]  ;;  %v9034_v31 = vcombine.high %v690_v25, %v694_v26  ;;  %v9033_v37 = vcombine.low %v690_v25, %v694_v26 }
 0x15b   :  { %v702_v51 = vld [vmem:[#allocation5 + $0x10a8] sm:$0xff] }
 0x15c   :  { %6457 = vmatpush1.bf16.msra.mxu0 %v8975_v61  ;;  %6785 = vmatpush1.bf16.msra.mxu1 %v8977_v33  ;;  %v697_v61 = vld [vmem:[#allocation5 + $0x1080] sm:$0xff] }
 0x15d   :  { %6458 = vmatprep.subr.bf16.mxu0 %v8984_v34  ;;  %6786 = vmatprep.subr.bf16.mxu1 %v8986_v35  ;;  %v701_v33 = vld [vmem:[#allocation5 + $0x10a0] sm:$0xff]  ;;  %v10282_v34 = vpack.c.bf16 %v111_v27, %v111_v27  ;;  %v698_v35 = vld [vmem:[#allocation5 + $0x1088] sm:$0xff] }
 0x15e   :  { %v9040_v39 = vcombine.high %v697_v61, %v701_v33  ;;  %v9042_v40 = vcombine.high %v698_v35, %v702_v51  ;;  %v9039_v47 = vcombine.low %v697_v61, %v701_v33  ;;  %v9041_v48 = vcombine.low %v698_v35, %v702_v51  ;;  %v745_v27 = vld [vmem:[#allocation5 + $0x1200] sm:$0xff] }
 0x15f   :  { %v753_v51 = vld [vmem:[#allocation5 + $0x1240] sm:$0xff] }
 0x160   :  { %6459 = vmatpush1.bf16.msra.mxu0 %v8983_v41  ;;  %6787 = vmatpush1.bf16.msra.mxu1 %v8985_v42  ;;  %v705_v41 = vld [vmem:[#allocation5 + $0x10c0] sm:$0xff] }
 0x161   :  { %6460 = vmatprep.subr.bf16.mxu0 %v8992_v45  ;;  %6788 = vmatprep.subr.bf16.mxu1 %v8994_v46  ;;  %v709_v42 = vld [vmem:[#allocation5 + $0x10e0] sm:$0xff]  ;;  %v706_v45 = vld [vmem:[#allocation5 + $0x10c8] sm:$0xff] }
 0x162   :  { %v710_v46 = vld [vmem:[#allocation5 + $0x10e8] sm:$0xff]  ;;  %v9048_v49 = vcombine.high %v705_v41, %v709_v42  ;;  %v9047_v56 = vcombine.low %v705_v41, %v709_v42 }
 0x163   :  { %v9050_v43 = vcombine.high %v706_v45, %v710_v46  ;;  %v9049_v57 = vcombine.low %v706_v45, %v710_v46  ;;  %v761_v46 = vld [vmem:[#allocation5 + $0x1280] sm:$0xff] }
 0x164   :  { %6461 = vmatpush1.bf16.msra.mxu0 %v8991_v52  ;;  %6789 = vmatpush1.bf16.msra.mxu1 %v8993_v53  ;;  %v713_v52 = vld [vmem:[#allocation5 + $0x1100] sm:$0xff] }
 0x165   :  { %6462 = vmatprep.subr.bf16.mxu0 %v9000_v54  ;;  %6790 = vmatprep.subr.bf16.mxu1 %v9002_v55  ;;  %v717_v53 = vld [vmem:[#allocation5 + $0x1120] sm:$0xff]  ;;  %v714_v54 = vld [vmem:[#allocation5 + $0x1108] sm:$0xff] }
 0x166   :  { %v718_v55 = vld [vmem:[#allocation5 + $0x1128] sm:$0xff]  ;;  %v9056_v59 = vcombine.high %v713_v52, %v717_v53  ;;  %v9055_v3 = vcombine.low %v713_v52, %v717_v53 }
 0x167   :  { %v9058_v63 = vcombine.high %v714_v54, %v718_v55  ;;  %v9057_v4 = vcombine.low %v714_v54, %v718_v55  ;;  %v769_v55 = vld [vmem:[#allocation5 + $0x12c0] sm:$0xff] }
 0x168   :  { %6463 = vmatpush1.bf16.msra.mxu0 %v8999_v44  ;;  %6791 = vmatpush1.bf16.msra.mxu1 %v9001_v0  ;;  %v721_v44 = vld [vmem:[#allocation5 + $0x1140] sm:$0xff] }
 0x169   :  { %6464 = vmatprep.subr.bf16.mxu0 %v9008_v1  ;;  %6792 = vmatprep.subr.bf16.mxu1 %v9010_v2  ;;  %v725_v0 = vld [vmem:[#allocation5 + $0x1160] sm:$0xff]  ;;  %v722_v1 = vld [vmem:[#allocation5 + $0x1148] sm:$0xff] }
 0x16a   :  { %v726_v2 = vld [vmem:[#allocation5 + $0x1168] sm:$0xff]  ;;  %v9064_v5 = vcombine.high %v721_v44, %v725_v0  ;;  %v9063_v13 = vcombine.low %v721_v44, %v725_v0 }
 0x16b   :  { %v9066_v6 = vcombine.high %v722_v1, %v726_v2  ;;  %v9065_v14 = vcombine.low %v722_v1, %v726_v2  ;;  %v777_v2 = vld [vmem:[#allocation5 + $0x1300] sm:$0xff] }
 0x16c   :  { %6465 = vmatpush1.bf16.msra.mxu0 %v9007_v9  ;;  %6793 = vmatpush1.bf16.msra.mxu1 %v9009_v10  ;;  %v729_v9 = vld [vmem:[#allocation5 + $0x1180] sm:$0xff] }
 0x16d   :  { %6466 = vmatprep.subr.bf16.mxu0 %v9016_v11  ;;  %6794 = vmatprep.subr.bf16.mxu1 %v9018_v12  ;;  %v733_v10 = vld [vmem:[#allocation5 + $0x11a0] sm:$0xff]  ;;  %v730_v11 = vld [vmem:[#allocation5 + $0x1188] sm:$0xff] }
 0x16e   :  { %v734_v12 = vld [vmem:[#allocation5 + $0x11a8] sm:$0xff]  ;;  %v9072_v15 = vcombine.high %v729_v9, %v733_v10  ;;  %v9071_v60 = vcombine.low %v729_v9, %v733_v10 }
 0x16f   :  { %v9074_v17 = vcombine.high %v730_v11, %v734_v12  ;;  %v9073_v23 = vcombine.low %v730_v11, %v734_v12  ;;  %v785_v12 = vld [vmem:[#allocation5 + $0x1340] sm:$0xff] }
 0x170   :  { %6467 = vmatpush1.bf16.msra.mxu0 %v9015_v18  ;;  %6795 = vmatpush1.bf16.msra.mxu1 %v9017_v20  ;;  %v737_v18 = vld [vmem:[#allocation5 + $0x11c0] sm:$0xff] }
 0x171   :  { %6477 = vmatprep.subr.bf16.mxu0 %v9024_v21  ;;  %6805 = vmatprep.subr.bf16.mxu1 %v9026_v22  ;;  %v741_v20 = vld [vmem:[#allocation5 + $0x11e0] sm:$0xff]  ;;  %v738_v21 = vld [vmem:[#allocation5 + $0x11c8] sm:$0xff] }
 0x172   :  { %v742_v22 = vld [vmem:[#allocation5 + $0x11e8] sm:$0xff]  ;;  %v9080_v25 = vcombine.high %v737_v18, %v741_v20 }
 0x173   :  { %6469 = vmatmul.mubr.bf16.vlgmr.msra.gmra.mrb[0].mxu0 %v10280_v24  ;;  %6797 = vmatmul.mubr.bf16.vlgmr.msra.gmra.mrb[0].mxu1 %v10280_v24  ;;  %v9082_v26 = vcombine.high %v738_v21, %v742_v22  ;;  %v9081_v61 = vcombine.low %v738_v21, %v742_v22  ;;  %v793_v22 = vld [vmem:[#allocation5 + $0x1380] sm:$0xff] }
 0x174   :  { %6478 = vmatpush1.bf16.msra.mxu0 %v9023_v28  ;;  %6806 = vmatpush1.bf16.msra.mxu1 %v9025_v29  ;;  %v749_v28 = vld [vmem:[#allocation5 + $0x1220] sm:$0xff]  ;;  %v746_v29 = vld [vmem:[#allocation5 + $0x1208] sm:$0xff] }
 0x175   :  { %6479 = vmatprep.subr.bf16.mxu0 %v9032_v30  ;;  %6807 = vmatprep.subr.bf16.mxu1 %v9034_v31  ;;  %v750_v30 = vld [vmem:[#allocation5 + $0x1228] sm:$0xff]  ;;  %v9079_v31 = vcombine.low %v737_v18, %v741_v20  ;;  %v9088_v33 = vcombine.high %v745_v27, %v749_v28 }
 0x176   :  { %6509 = vmatprep.mubr.bf16.mxu0 %v10282_v34  ;;  %6837 = vmatprep.mubr.bf16.mxu1 %v10282_v34  ;;  %v9090_v35 = vcombine.high %v746_v29, %v750_v30  ;;  %v9089_v41 = vcombine.low %v746_v29, %v750_v30  ;;  %v801_v30 = vld [vmem:[#allocation5 + $0x13c0] sm:$0xff] }
 0x178   :  { %6480 = vmatpush1.bf16.msra.mxu0 %v9031_v36  ;;  %6808 = vmatpush1.bf16.msra.mxu1 %v9033_v37  ;;  %v757_v36 = vld [vmem:[#allocation5 + $0x1260] sm:$0xff]  ;;  %v754_v37 = vld [vmem:[#allocation5 + $0x1248] sm:$0xff] }
 0x179   :  { %6481 = vmatprep.subr.bf16.mxu0 %v9040_v39  ;;  %6809 = vmatprep.subr.bf16.mxu1 %v9042_v40  ;;  %v758_v39 = vld [vmem:[#allocation5 + $0x1268] sm:$0xff]  ;;  %v9087_v40 = vcombine.low %v745_v27, %v749_v28  ;;  %v9096_v42 = vcombine.high %v753_v51, %v757_v36 }
 0x17a   :  { %v9098_v45 = vcombine.high %v754_v37, %v758_v39  ;;  %v9097_v52 = vcombine.low %v754_v37, %v758_v39  ;;  %v809_v39 = vld [vmem:[#allocation5 + $0x1400] sm:$0xff] }
 0x17c   :  { %6482 = vmatpush1.bf16.msra.mxu0 %v9039_v47  ;;  %6810 = vmatpush1.bf16.msra.mxu1 %v9041_v48  ;;  %v765_v47 = vld [vmem:[#allocation5 + $0x12a0] sm:$0xff]  ;;  %v762_v48 = vld [vmem:[#allocation5 + $0x1288] sm:$0xff] }
 0x17d   :  { %6483 = vmatprep.subr.bf16.mxu0 %v9048_v49  ;;  %6811 = vmatprep.subr.bf16.mxu1 %v9050_v43  ;;  %v766_v49 = vld [vmem:[#allocation5 + $0x12a8] sm:$0xff]  ;;  %v9095_v43 = vcombine.low %v753_v51, %v757_v36  ;;  %v9104_v53 = vcombine.high %v761_v46, %v765_v47 }
 0x17e   :  { %v9106_v54 = vcombine.high %v762_v48, %v766_v49  ;;  %v9105_v44 = vcombine.low %v762_v48, %v766_v49  ;;  %v817_v49 = vld [vmem:[#allocation5 + $0x1440] sm:$0xff] }
 0x180   :  { %6484 = vmatpush1.bf16.msra.mxu0 %v9047_v56  ;;  %6812 = vmatpush1.bf16.msra.mxu1 %v9049_v57  ;;  %v773_v56 = vld [vmem:[#allocation5 + $0x12e0] sm:$0xff]  ;;  %v770_v57 = vld [vmem:[#allocation5 + $0x12c8] sm:$0xff] }
 0x181   :  { %6485 = vmatprep.subr.bf16.mxu0 %v9056_v59  ;;  %6813 = vmatprep.subr.bf16.mxu1 %v9058_v63  ;;  %v774_v59 = vld [vmem:[#allocation5 + $0x12e8] sm:$0xff]  ;;  %v9103_v63 = vcombine.low %v761_v46, %v765_v47  ;;  %v9112_v0 = vcombine.high %v769_v55, %v773_v56 }
 0x182   :  { %v9114_v1 = vcombine.high %v770_v57, %v774_v59  ;;  %v9113_v9 = vcombine.low %v770_v57, %v774_v59 }
 0x184   :  { %6486 = vmatpush1.bf16.msra.mxu0 %v9055_v3  ;;  %6814 = vmatpush1.bf16.msra.mxu1 %v9057_v4  ;;  %v781_v3 = vld [vmem:[#allocation5 + $0x1320] sm:$0xff]  ;;  %v778_v4 = vld [vmem:[#allocation5 + $0x1308] sm:$0xff] }
 0x185   :  { %6487 = vmatprep.subr.bf16.mxu0 %v9064_v5  ;;  %6815 = vmatprep.subr.bf16.mxu1 %v9066_v6  ;;  %v782_v5 = vld [vmem:[#allocation5 + $0x1328] sm:$0xff]  ;;  %v9111_v6 = vcombine.low %v769_v55, %v773_v56  ;;  %v9120_v10 = vcombine.high %v777_v2, %v781_v3  ;;  %v10292_v55 = vld [vmem:[#allocation2 + $0x58] sm:$0xff] }
 0x186   :  { %v9122_v11 = vcombine.high %v778_v4, %v782_v5  ;;  %v9121_v18 = vcombine.low %v778_v4, %v782_v5 }
 0x188   :  { %6488 = vmatpush1.bf16.msra.mxu0 %v9063_v13  ;;  %6816 = vmatpush1.bf16.msra.mxu1 %v9065_v14  ;;  %v789_v13 = vld [vmem:[#allocation5 + $0x1360] sm:$0xff]  ;;  %v786_v14 = vld [vmem:[#allocation5 + $0x1348] sm:$0xff] }
 0x189   :  { %6489 = vmatprep.subr.bf16.mxu0 %v9072_v15  ;;  %6817 = vmatprep.subr.bf16.mxu1 %v9074_v17  ;;  %v790_v15 = vld [vmem:[#allocation5 + $0x1368] sm:$0xff]  ;;  %v9119_v17 = vcombine.low %v777_v2, %v781_v3  ;;  %v9128_v20 = vcombine.high %v785_v12, %v789_v13 }
 0x18a   :  { %v9130_v21 = vcombine.high %v786_v14, %v790_v15  ;;  %v9129_v27 = vcombine.low %v786_v14, %v790_v15  ;;  %v830_v2 = vld [vmem:[#allocation5 + $0x14a8] sm:$0xff] }
 0x18c   :  { %6490 = vmatpush1.bf16.msra.mxu0 %v9071_v60  ;;  %6818 = vmatpush1.bf16.msra.mxu1 %v9073_v23  ;;  %v797_v60 = vld [vmem:[#allocation5 + $0x13a0] sm:$0xff]  ;;  %v794_v23 = vld [vmem:[#allocation5 + $0x1388] sm:$0xff] }
 0x18d   :  { %6491 = vmatprep.subr.bf16.mxu0 %v9080_v25  ;;  %6819 = vmatprep.subr.bf16.mxu1 %v9082_v26  ;;  %v798_v25 = vld [vmem:[#allocation5 + $0x13a8] sm:$0xff]  ;;  %v9127_v26 = vcombine.low %v785_v12, %v789_v13  ;;  %v9136_v28 = vcombine.high %v793_v22, %v797_v60 }
 0x18e   :  { %v9138_v29 = vcombine.high %v794_v23, %v798_v25  ;;  %v9137_v51 = vcombine.low %v794_v23, %v798_v25  ;;  %v838_v12 = vld [vmem:[#allocation5 + $0x14e8] sm:$0xff] }
 0x190   :  { %6492 = vmatpush1.bf16.msra.mxu0 %v9079_v31  ;;  %6820 = vmatpush1.bf16.msra.mxu1 %v9081_v61  ;;  %v805_v31 = vld [vmem:[#allocation5 + $0x13e0] sm:$0xff]  ;;  %v802_v61 = vld [vmem:[#allocation5 + $0x13c8] sm:$0xff] }
 0x191   :  { %6493 = vmatprep.subr.bf16.mxu0 %v9088_v33  ;;  %6821 = vmatprep.subr.bf16.mxu1 %v9090_v35  ;;  %v806_v33 = vld [vmem:[#allocation5 + $0x13e8] sm:$0xff]  ;;  %v9135_v35 = vcombine.low %v793_v22, %v797_v60  ;;  %v9144_v36 = vcombine.high %v801_v30, %v805_v31 }
 0x192   :  { %v9146_v37 = vcombine.high %v802_v61, %v806_v33  ;;  %v9145_v46 = vcombine.low %v802_v61, %v806_v33  ;;  %v846_v22 = vld [vmem:[#allocation5 + $0x1528] sm:$0xff] }
 0x194   :  { %6494 = vmatpush1.bf16.msra.mxu0 %v9087_v40  ;;  %6822 = vmatpush1.bf16.msra.mxu1 %v9089_v41  ;;  %v813_v40 = vld [vmem:[#allocation5 + $0x1420] sm:$0xff]  ;;  %v810_v41 = vld [vmem:[#allocation5 + $0x1408] sm:$0xff] }
 0x195   :  { %6495 = vmatprep.subr.bf16.mxu0 %v9096_v42  ;;  %6823 = vmatprep.subr.bf16.mxu1 %v9098_v45  ;;  %v814_v42 = vld [vmem:[#allocation5 + $0x1428] sm:$0xff]  ;;  %v9143_v45 = vcombine.low %v801_v30, %v805_v31  ;;  %v9152_v47 = vcombine.high %v809_v39, %v813_v40  ;;  %v9151_v56 = vcombine.low %v809_v39, %v813_v40 }
 0x196   :  { %v9154_v48 = vcombine.high %v810_v41, %v814_v42  ;;  %v9153_v57 = vcombine.low %v810_v41, %v814_v42  ;;  %v854_v30 = vld [vmem:[#allocation5 + $0x1568] sm:$0xff] }
 0x197   :  { %v862_v39 = vld [vmem:[#allocation5 + $0x15a8] sm:$0xff] }
 0x198   :  { %6496 = vmatpush1.bf16.msra.mxu0 %v9095_v43  ;;  %6824 = vmatpush1.bf16.msra.mxu1 %v9097_v52  ;;  %v821_v43 = vld [vmem:[#allocation5 + $0x1460] sm:$0xff]  ;;  %v10290_v52 = vpack.c.bf16 %v10267_v8, %v10267_v8  ;;  %v826_v8 = vld [vmem:[#allocation5 + $0x1488] sm:$0xff] }
 0x199   :  { %6497 = vmatprep.subr.bf16.mxu0 %v9104_v53  ;;  %6825 = vmatprep.subr.bf16.mxu1 %v9106_v54  ;;  %v818_v53 = vld [vmem:[#allocation5 + $0x1448] sm:$0xff]  ;;  %v9160_v59 = vcombine.high %v817_v49, %v821_v43  ;;  %v9159_v3 = vcombine.low %v817_v49, %v821_v43  ;;  %v9169_v14 = vcombine.low %v826_v8, %v830_v2 }
 0x19a   :  { %v822_v54 = vld [vmem:[#allocation5 + $0x1468] sm:$0xff] }
 0x19b   :  { %v9161_v4 = vcombine.low %v818_v53, %v822_v54  ;;  %v870_v49 = vld [vmem:[#allocation5 + $0x15e8] sm:$0xff] }
 0x19c   :  { %6498 = vmatpush1.bf16.msra.mxu0 %v9103_v63  ;;  %6826 = vmatpush1.bf16.msra.mxu1 %v9105_v44  ;;  %v9162_v63 = vcombine.high %v818_v53, %v822_v54  ;;  %v825_v44 = vld [vmem:[#allocation5 + $0x1480] sm:$0xff] }
 0x19d   :  { %6499 = vmatprep.subr.bf16.mxu0 %v9112_v0  ;;  %6827 = vmatprep.subr.bf16.mxu1 %v9114_v1  ;;  %v829_v0 = vld [vmem:[#allocation5 + $0x14a0] sm:$0xff]  ;;  %v10296_v1 = vpack.c.bf16 %v10292_v55, %v10292_v55 }
 0x19e   :  { %v9168_v5 = vcombine.high %v825_v44, %v829_v0  ;;  %v9167_v13 = vcombine.low %v825_v44, %v829_v0  ;;  %v878_v44 = vld [vmem:[#allocation5 + $0x1628] sm:$0xff] }
 0x1a0   :  { %6500 = vmatpush1.bf16.msra.mxu0 %v9111_v6  ;;  %6828 = vmatpush1.bf16.msra.mxu1 %v9113_v9  ;;  %v9170_v6 = vcombine.high %v826_v8, %v830_v2  ;;  %v833_v9 = vld [vmem:[#allocation5 + $0x14c0] sm:$0xff] }
 0x1a1   :  { %6501 = vmatprep.subr.bf16.mxu0 %v9120_v10  ;;  %6829 = vmatprep.subr.bf16.mxu1 %v9122_v11  ;;  %v837_v10 = vld [vmem:[#allocation5 + $0x14e0] sm:$0xff]  ;;  %v834_v11 = vld [vmem:[#allocation5 + $0x14c8] sm:$0xff] }
 0x1a2   :  { %v9176_v15 = vcombine.high %v833_v9, %v837_v10  ;;  %v9175_v60 = vcombine.low %v833_v9, %v837_v10  ;;  %v9177_v23 = vcombine.low %v834_v11, %v838_v12  ;;  %v886_v9 = vld [vmem:[#allocation5 + $0x1668] sm:$0xff] }
 0x1a4   :  { %6502 = vmatpush1.bf16.msra.mxu0 %v9119_v17  ;;  %6830 = vmatpush1.bf16.msra.mxu1 %v9121_v18  ;;  %v9178_v17 = vcombine.high %v834_v11, %v838_v12  ;;  %v841_v18 = vld [vmem:[#allocation5 + $0x1500] sm:$0xff] }
 0x1a5   :  { %6503 = vmatprep.subr.bf16.mxu0 %v9128_v20  ;;  %6831 = vmatprep.subr.bf16.mxu1 %v9130_v21  ;;  %v845_v20 = vld [vmem:[#allocation5 + $0x1520] sm:$0xff]  ;;  %v842_v21 = vld [vmem:[#allocation5 + $0x1508] sm:$0xff] }
 0x1a6   :  { %v9184_v25 = vcombine.high %v841_v18, %v845_v20  ;;  %v9183_v31 = vcombine.low %v841_v18, %v845_v20  ;;  %v9185_v61 = vcombine.low %v842_v21, %v846_v22  ;;  %v894_v18 = vld [vmem:[#allocation5 + $0x16a8] sm:$0xff] }
 0x1a8   :  { %6504 = vmatpush1.bf16.msra.mxu0 %v9127_v26  ;;  %6832 = vmatpush1.bf16.msra.mxu1 %v9129_v27  ;;  %v9186_v26 = vcombine.high %v842_v21, %v846_v22  ;;  %v849_v27 = vld [vmem:[#allocation5 + $0x1540] sm:$0xff] }
 0x1a9   :  { %6505 = vmatprep.subr.bf16.mxu0 %v9136_v28  ;;  %6833 = vmatprep.subr.bf16.mxu1 %v9138_v29  ;;  %v853_v28 = vld [vmem:[#allocation5 + $0x1560] sm:$0xff]  ;;  %v850_v29 = vld [vmem:[#allocation5 + $0x1548] sm:$0xff] }
 0x1aa   :  { %v9192_v33 = vcombine.high %v849_v27, %v853_v28  ;;  %v9191_v40 = vcombine.low %v849_v27, %v853_v28  ;;  %v9193_v41 = vcombine.low %v850_v29, %v854_v30  ;;  %v902_v27 = vld [vmem:[#allocation5 + $0x16e8] sm:$0xff] }
 0x1ac   :  { %6506 = vmatpush1.bf16.msra.mxu0 %v9135_v35  ;;  %6834 = vmatpush1.bf16.msra.mxu1 %v9137_v51  ;;  %v9194_v35 = vcombine.high %v850_v29, %v854_v30  ;;  %v857_v51 = vld [vmem:[#allocation5 + $0x1580] sm:$0xff] }
 0x1ad   :  { %6507 = vmatprep.subr.bf16.mxu0 %v9144_v36  ;;  %6835 = vmatprep.subr.bf16.mxu1 %v9146_v37  ;;  %v861_v36 = vld [vmem:[#allocation5 + $0x15a0] sm:$0xff]  ;;  %v858_v37 = vld [vmem:[#allocation5 + $0x1588] sm:$0xff] }
 0x1ae   :  { %v9200_v42 = vcombine.high %v857_v51, %v861_v36  ;;  %v9199_v43 = vcombine.low %v857_v51, %v861_v36  ;;  %v9201_v53 = vcombine.low %v858_v37, %v862_v39  ;;  %v910_v51 = vld [vmem:[#allocation5 + $0x1728] sm:$0xff] }
 0x1b0   :  { %6508 = vmatpush1.bf16.msra.mxu0 %v9143_v45  ;;  %6836 = vmatpush1.bf16.msra.mxu1 %v9145_v46  ;;  %v9202_v45 = vcombine.high %v858_v37, %v862_v39  ;;  %v865_v46 = vld [vmem:[#allocation5 + $0x15c0] sm:$0xff] }
 0x1b1   :  { %6518 = vmatprep.subr.bf16.mxu0 %v9152_v47  ;;  %6846 = vmatprep.subr.bf16.mxu1 %v9154_v48  ;;  %v869_v47 = vld [vmem:[#allocation5 + $0x15e0] sm:$0xff]  ;;  %v866_v48 = vld [vmem:[#allocation5 + $0x15c8] sm:$0xff] }
 0x1b2   :  { %v9208_v54 = vcombine.high %v865_v46, %v869_v47  ;;  %v9207_v0 = vcombine.low %v865_v46, %v869_v47  ;;  %v9209_v8 = vcombine.low %v866_v48, %v870_v49  ;;  %v918_v46 = vld [vmem:[#allocation5 + $0x1768] sm:$0xff] }
 0x1b3   :  { %6510 = vmatmul.mubr.bf16.vlgmr.msra.gmra.mrb[0].mxu0 %v10290_v52  ;;  %6838 = vmatmul.mubr.bf16.vlgmr.msra.gmra.mrb[0].mxu1 %v10290_v52 }
 0x1b4   :  { %6519 = vmatpush1.bf16.msra.mxu0 %v9151_v56  ;;  %6847 = vmatpush1.bf16.msra.mxu1 %v9153_v57  ;;  %v9210_v56 = vcombine.high %v866_v48, %v870_v49  ;;  %v873_v57 = vld [vmem:[#allocation5 + $0x1600] sm:$0xff] }
 0x1b5   :  { %6520 = vmatprep.subr.bf16.mxu0 %v9160_v59  ;;  %6848 = vmatprep.subr.bf16.mxu1 %v9162_v63  ;;  %v877_v59 = vld [vmem:[#allocation5 + $0x1620] sm:$0xff]  ;;  %v874_v63 = vld [vmem:[#allocation5 + $0x1608] sm:$0xff] }
 0x1b6   :  { %6550 = vmatprep.mubr.bf16.mxu0 %v10296_v1  ;;  %6878 = vmatprep.mubr.bf16.mxu1 %v10296_v1  ;;  %v9216_v2 = vcombine.high %v873_v57, %v877_v59  ;;  %v9215_v10 = vcombine.low %v873_v57, %v877_v59  ;;  %v9217_v11 = vcombine.low %v874_v63, %v878_v44  ;;  %v926_v57 = vld [vmem:[#allocation5 + $0x17a8] sm:$0xff] }
 0x1b8   :  { %6521 = vmatpush1.bf16.msra.mxu0 %v9159_v3  ;;  %6849 = vmatpush1.bf16.msra.mxu1 %v9161_v4  ;;  %v9218_v3 = vcombine.high %v874_v63, %v878_v44  ;;  %v881_v4 = vld [vmem:[#allocation5 + $0x1640] sm:$0xff] }
 0x1b9   :  { %6522 = vmatprep.subr.bf16.mxu0 %v9168_v5  ;;  %6850 = vmatprep.subr.bf16.mxu1 %v9170_v6  ;;  %v885_v5 = vld [vmem:[#allocation5 + $0x1660] sm:$0xff]  ;;  %v882_v6 = vld [vmem:[#allocation5 + $0x1648] sm:$0xff] }
 0x1ba   :  { %v9224_v12 = vcombine.high %v881_v4, %v885_v5  ;;  %v9223_v20 = vcombine.low %v881_v4, %v885_v5  ;;  %v9225_v21 = vcombine.low %v882_v6, %v886_v9  ;;  %v934_v4 = vld [vmem:[#allocation5 + $0x17e8] sm:$0xff] }
 0x1bc   :  { %6523 = vmatpush1.bf16.msra.mxu0 %v9167_v13  ;;  %6851 = vmatpush1.bf16.msra.mxu1 %v9169_v14  ;;  %v9226_v13 = vcombine.high %v882_v6, %v886_v9  ;;  %v889_v14 = vld [vmem:[#allocation5 + $0x1680] sm:$0xff] }
 0x1bd   :  { %6524 = vmatprep.subr.bf16.mxu0 %v9176_v15  ;;  %6852 = vmatprep.subr.bf16.mxu1 %v9178_v17  ;;  %v893_v15 = vld [vmem:[#allocation5 + $0x16a0] sm:$0xff]  ;;  %v890_v17 = vld [vmem:[#allocation5 + $0x1688] sm:$0xff] }
 0x1be   :  { %v9232_v22 = vcombine.high %v889_v14, %v893_v15  ;;  %v9231_v28 = vcombine.low %v889_v14, %v893_v15  ;;  %v9233_v29 = vcombine.low %v890_v17, %v894_v18  ;;  %v942_v14 = vld [vmem:[#allocation5 + $0x1828] sm:$0xff] }
 0x1c0   :  { %6525 = vmatpush1.bf16.msra.mxu0 %v9175_v60  ;;  %6853 = vmatpush1.bf16.msra.mxu1 %v9177_v23  ;;  %v9234_v60 = vcombine.high %v890_v17, %v894_v18  ;;  %v897_v23 = vld [vmem:[#allocation5 + $0x16c0] sm:$0xff]  ;;  %v10302_v17 = vld [vmem:[#allocation2 + $0x50] sm:$0xff] }
 0x1c1   :  { %6526 = vmatprep.subr.bf16.mxu0 %v9184_v25  ;;  %6854 = vmatprep.subr.bf16.mxu1 %v9186_v26  ;;  %v901_v25 = vld [vmem:[#allocation5 + $0x16e0] sm:$0xff]  ;;  %v898_v26 = vld [vmem:[#allocation5 + $0x16c8] sm:$0xff] }
 0x1c2   :  { %v9240_v30 = vcombine.high %v897_v23, %v901_v25  ;;  %v9239_v36 = vcombine.low %v897_v23, %v901_v25  ;;  %v9241_v37 = vcombine.low %v898_v26, %v902_v27  ;;  %v10306_v23 = vpack.c.bf16 %v10302_v17, %v10302_v17  ;;  %v946_v25 = vld [vmem:[#allocation5 + $0x1848] sm:$0xff] }
 0x1c4   :  { %6527 = vmatpush1.bf16.msra.mxu0 %v9183_v31  ;;  %6855 = vmatpush1.bf16.msra.mxu1 %v9185_v61  ;;  %v9242_v31 = vcombine.high %v898_v26, %v902_v27  ;;  %v905_v61 = vld [vmem:[#allocation5 + $0x1700] sm:$0xff]  ;;  %v950_v26 = vld [vmem:[#allocation5 + $0x1868] sm:$0xff] }
 0x1c5   :  { %6528 = vmatprep.subr.bf16.mxu0 %v9192_v33  ;;  %6856 = vmatprep.subr.bf16.mxu1 %v9194_v35  ;;  %v909_v33 = vld [vmem:[#allocation5 + $0x1720] sm:$0xff]  ;;  %v906_v35 = vld [vmem:[#allocation5 + $0x1708] sm:$0xff] }
 0x1c6   :  { %v9248_v39 = vcombine.high %v905_v61, %v909_v33  ;;  %v9247_v47 = vcombine.low %v905_v61, %v909_v33  ;;  %v9249_v48 = vcombine.low %v906_v35, %v910_v51  ;;  %v10308_v27 = vld [vmem:[#allocation2 + $0x68] sm:$0xff]  ;;  %v953_v61 = vld [vmem:[#allocation5 + $0x1880] sm:$0xff] }
 0x1c7   :  { %v957_v33 = vld [vmem:[#allocation5 + $0x18a0] sm:$0xff] }
 0x1c8   :  { %6529 = vmatpush1.bf16.msra.mxu0 %v9191_v40  ;;  %6857 = vmatpush1.bf16.msra.mxu1 %v9193_v41  ;;  %v9250_v40 = vcombine.high %v906_v35, %v910_v51  ;;  %v913_v41 = vld [vmem:[#allocation5 + $0x1740] sm:$0xff]  ;;  %v10312_v35 = vpack.c.bf16 %v10308_v27, %v10308_v27  ;;  %v954_v51 = vld [vmem:[#allocation5 + $0x1888] sm:$0xff] }
 0x1c9   :  { %6530 = vmatprep.subr.bf16.mxu0 %v9200_v42  ;;  %6858 = vmatprep.subr.bf16.mxu1 %v9202_v45  ;;  %v917_v42 = vld [vmem:[#allocation5 + $0x1760] sm:$0xff]  ;;  %v914_v45 = vld [vmem:[#allocation5 + $0x1748] sm:$0xff] }
 0x1ca   :  { %v9256_v49 = vcombine.high %v913_v41, %v917_v42  ;;  %v9255_v59 = vcombine.low %v913_v41, %v917_v42  ;;  %v9257_v63 = vcombine.low %v914_v45, %v918_v46  ;;  %v961_v42 = vld [vmem:[#allocation5 + $0x18c0] sm:$0xff] }
 0x1cc   :  { %6531 = vmatpush1.bf16.msra.mxu0 %v9199_v43  ;;  %6859 = vmatpush1.bf16.msra.mxu1 %v9201_v53  ;;  %v9258_v43 = vcombine.high %v914_v45, %v918_v46  ;;  %v921_v53 = vld [vmem:[#allocation5 + $0x1780] sm:$0xff]  ;;  %v962_v46 = vld [vmem:[#allocation5 + $0x18c8] sm:$0xff] }
 0x1cd   :  { %6532 = vmatprep.subr.bf16.mxu0 %v9208_v54  ;;  %6860 = vmatprep.subr.bf16.mxu1 %v9210_v56  ;;  %v925_v54 = vld [vmem:[#allocation5 + $0x17a0] sm:$0xff]  ;;  %v922_v56 = vld [vmem:[#allocation5 + $0x1788] sm:$0xff] }
 0x1ce   :  { %v9264_v44 = vcombine.high %v921_v53, %v925_v54  ;;  %v9263_v5 = vcombine.low %v921_v53, %v925_v54  ;;  %v9265_v6 = vcombine.low %v922_v56, %v926_v57  ;;  %v965_v45 = vld [vmem:[#allocation5 + $0x18e0] sm:$0xff] }
 0x1cf   :  { %v969_v54 = vld [vmem:[#allocation5 + $0x1900] sm:$0xff] }
 0x1d0   :  { %6533 = vmatpush1.bf16.msra.mxu0 %v9207_v0  ;;  %6861 = vmatpush1.bf16.msra.mxu1 %v9209_v8  ;;  %v9266_v0 = vcombine.high %v922_v56, %v926_v57  ;;  %v929_v8 = vld [vmem:[#allocation5 + $0x17c0] sm:$0xff]  ;;  %v970_v57 = vld [vmem:[#allocation5 + $0x1908] sm:$0xff] }
 0x1d1   :  { %6534 = vmatprep.subr.bf16.mxu0 %v9216_v2  ;;  %6862 = vmatprep.subr.bf16.mxu1 %v9218_v3  ;;  %v933_v2 = vld [vmem:[#allocation5 + $0x17e0] sm:$0xff]  ;;  %v930_v3 = vld [vmem:[#allocation5 + $0x17c8] sm:$0xff] }
 0x1d2   :  { %v9272_v9 = vcombine.high %v929_v8, %v933_v2  ;;  %v9271_v15 = vcombine.low %v929_v8, %v933_v2  ;;  %v9273_v18 = vcombine.low %v930_v3, %v934_v4  ;;  %v973_v56 = vld [vmem:[#allocation5 + $0x1920] sm:$0xff] }
 0x1d3   :  { %v977_v2 = vld [vmem:[#allocation5 + $0x1940] sm:$0xff] }
 0x1d4   :  { %6535 = vmatpush1.bf16.msra.mxu0 %v9215_v10  ;;  %6863 = vmatpush1.bf16.msra.mxu1 %v9217_v11  ;;  %v9274_v10 = vcombine.high %v930_v3, %v934_v4  ;;  %v937_v11 = vld [vmem:[#allocation5 + $0x1800] sm:$0xff]  ;;  %v978_v4 = vld [vmem:[#allocation5 + $0x1948] sm:$0xff] }
 0x1d5   :  { %6536 = vmatprep.subr.bf16.mxu0 %v9224_v12  ;;  %6864 = vmatprep.subr.bf16.mxu1 %v9226_v13  ;;  %v941_v12 = vld [vmem:[#allocation5 + $0x1820] sm:$0xff]  ;;  %v938_v13 = vld [vmem:[#allocation5 + $0x1808] sm:$0xff] }
 0x1d6   :  { %v981_v3 = vld [vmem:[#allocation5 + $0x1960] sm:$0xff] }
 0x1d8   :  { %6537 = vmatpush1.bf16.msra.mxu0 %v9223_v20  ;;  %6865 = vmatpush1.bf16.msra.mxu1 %v9225_v21  ;;  %v9280_v20 = vcombine.high %v937_v11, %v941_v12  ;;  %v9282_v21 = vcombine.high %v938_v13, %v942_v14 }
 0x1d9   :  { %6538 = vmatprep.subr.bf16.mxu0 %v9232_v22  ;;  %6866 = vmatprep.subr.bf16.mxu1 %v9234_v60  ;;  %v945_v22 = vld [vmem:[#allocation5 + $0x1840] sm:$0xff] }
 0x1da   :  { %v949_v60 = vld [vmem:[#allocation5 + $0x1860] sm:$0xff] }
 0x1dc   :  { %6539 = vmatpush1.bf16.msra.mxu0 %v9231_v28  ;;  %6867 = vmatpush1.bf16.msra.mxu1 %v9233_v29  ;;  %v9279_v28 = vcombine.low %v937_v11, %v941_v12  ;;  %v9281_v29 = vcombine.low %v938_v13, %v942_v14  ;;  %v985_v12 = vld [vmem:[#allocation5 + $0x1980] sm:$0xff]  ;;  %v986_v14 = vld [vmem:[#allocation5 + $0x1988] sm:$0xff] }
 0x1dd   :  { %6540 = vmatprep.subr.bf16.mxu0 %v9240_v30  ;;  %6868 = vmatprep.subr.bf16.mxu1 %v9242_v31  ;;  %v9288_v30 = vcombine.high %v945_v22, %v949_v60  ;;  %v9290_v31 = vcombine.high %v946_v25, %v950_v26  ;;  %v989_v13 = vld [vmem:[#allocation5 + $0x19a0] sm:$0xff] }
 0x1e0   :  { %6541 = vmatpush1.bf16.msra.mxu0 %v9239_v36  ;;  %6869 = vmatpush1.bf16.msra.mxu1 %v9241_v37  ;;  %v958_v36 = vld [vmem:[#allocation5 + $0x18a8] sm:$0xff]  ;;  %v9287_v37 = vcombine.low %v945_v22, %v949_v60  ;;  %v993_v60 = vld [vmem:[#allocation5 + $0x19c0] sm:$0xff] }
 0x1e1   :  { %6542 = vmatprep.subr.bf16.mxu0 %v9248_v39  ;;  %6870 = vmatprep.subr.bf16.mxu1 %v9250_v40  ;;  %v9289_v39 = vcombine.low %v946_v25, %v950_v26  ;;  %v9296_v40 = vcombine.high %v953_v61, %v957_v33  ;;  %v9298_v41 = vcombine.high %v954_v51, %v958_v36  ;;  %v997_v25 = vld [vmem:[#allocation5 + $0x19e0] sm:$0xff]  ;;  %v994_v26 = vld [vmem:[#allocation5 + $0x19c8] sm:$0xff] }
 0x1e4   :  { %6543 = vmatpush1.bf16.msra.mxu0 %v9247_v47  ;;  %6871 = vmatpush1.bf16.msra.mxu1 %v9249_v48  ;;  %v966_v47 = vld [vmem:[#allocation5 + $0x18e8] sm:$0xff]  ;;  %v9295_v48 = vcombine.low %v953_v61, %v957_v33  ;;  %v1001_v33 = vld [vmem:[#allocation5 + $0x1a00] sm:$0xff] }
 0x1e5   :  { %6544 = vmatprep.subr.bf16.mxu0 %v9256_v49  ;;  %6872 = vmatprep.subr.bf16.mxu1 %v9258_v43  ;;  %v9297_v49 = vcombine.low %v954_v51, %v958_v36  ;;  %v9304_v43 = vcombine.high %v961_v42, %v965_v45  ;;  %v9306_v53 = vcombine.high %v962_v46, %v966_v47  ;;  %v1005_v51 = vld [vmem:[#allocation5 + $0x1a20] sm:$0xff]  ;;  %v1002_v36 = vld [vmem:[#allocation5 + $0x1a08] sm:$0xff] }
 0x1e8   :  { %6545 = vmatpush1.bf16.msra.mxu0 %v9255_v59  ;;  %6873 = vmatpush1.bf16.msra.mxu1 %v9257_v63  ;;  %v974_v59 = vld [vmem:[#allocation5 + $0x1928] sm:$0xff]  ;;  %v9303_v63 = vcombine.low %v961_v42, %v965_v45  ;;  %v1009_v45 = vld [vmem:[#allocation5 + $0x1a40] sm:$0xff] }
 0x1e9   :  { %6546 = vmatprep.subr.bf16.mxu0 %v9264_v44  ;;  %6874 = vmatprep.subr.bf16.mxu1 %v9266_v0  ;;  %v9305_v44 = vcombine.low %v962_v46, %v966_v47  ;;  %v9312_v0 = vcombine.high %v969_v54, %v973_v56  ;;  %v9314_v8 = vcombine.high %v970_v57, %v974_v59  ;;  %v1013_v46 = vld [vmem:[#allocation5 + $0x1a60] sm:$0xff]  ;;  %v1010_v47 = vld [vmem:[#allocation5 + $0x1a48] sm:$0xff] }
 0x1ec   :  { %6547 = vmatpush1.bf16.msra.mxu0 %v9263_v5  ;;  %6875 = vmatpush1.bf16.msra.mxu1 %v9265_v6  ;;  %v982_v5 = vld [vmem:[#allocation5 + $0x1968] sm:$0xff]  ;;  %v9311_v6 = vcombine.low %v969_v54, %v973_v56  ;;  %v1017_v56 = vld [vmem:[#allocation5 + $0x1a80] sm:$0xff] }
 0x1ed   :  { %6548 = vmatprep.subr.bf16.mxu0 %v9272_v9  ;;  %6876 = vmatprep.subr.bf16.mxu1 %v9274_v10  ;;  %v9313_v9 = vcombine.low %v970_v57, %v974_v59  ;;  %v9320_v10 = vcombine.high %v977_v2, %v981_v3  ;;  %v9322_v11 = vcombine.high %v978_v4, %v982_v5  ;;  %v1021_v57 = vld [vmem:[#allocation5 + $0x1aa0] sm:$0xff]  ;;  %v1018_v59 = vld [vmem:[#allocation5 + $0x1a88] sm:$0xff] }
 0x1f0   :  { %6549 = vmatpush1.bf16.msra.mxu0 %v9271_v15  ;;  %6877 = vmatpush1.bf16.msra.mxu1 %v9273_v18  ;;  %v990_v15 = vld [vmem:[#allocation5 + $0x19a8] sm:$0xff]  ;;  %v9319_v18 = vcombine.low %v977_v2, %v981_v3  ;;  %v1025_v3 = vld [vmem:[#allocation5 + $0x1ac0] sm:$0xff] }
 0x1f1   :  { %6559 = vmatprep.subr.bf16.mxu0 %v9280_v20  ;;  %6887 = vmatprep.subr.bf16.mxu1 %v9282_v21  ;;  %v9321_v20 = vcombine.low %v978_v4, %v982_v5  ;;  %v9328_v21 = vcombine.high %v985_v12, %v989_v13  ;;  %v9330_v22 = vcombine.high %v986_v14, %v990_v15  ;;  %v1029_v4 = vld [vmem:[#allocation5 + $0x1ae0] sm:$0xff]  ;;  %v1026_v5 = vld [vmem:[#allocation5 + $0x1ac8] sm:$0xff] }
 0x1f3   :  { %6551 = vmatmul.mubr.bf16.vlgmr.msra.gmra.mrb[0].mxu0 %v10306_v23  ;;  %6879 = vmatmul.mubr.bf16.vlgmr.msra.gmra.mrb[0].mxu1 %v10306_v23 }
 0x1f4   :  { %6560 = vmatpush1.bf16.msra.mxu0 %v9279_v28  ;;  %6888 = vmatpush1.bf16.msra.mxu1 %v9281_v29  ;;  %v998_v28 = vld [vmem:[#allocation5 + $0x19e8] sm:$0xff]  ;;  %v9327_v29 = vcombine.low %v985_v12, %v989_v13  ;;  %v1033_v13 = vld [vmem:[#allocation5 + $0x1b00] sm:$0xff] }
 0x1f5   :  { %6561 = vmatprep.subr.bf16.mxu0 %v9288_v30  ;;  %6889 = vmatprep.subr.bf16.mxu1 %v9290_v31  ;;  %v9329_v30 = vcombine.low %v986_v14, %v990_v15  ;;  %v9336_v31 = vcombine.high %v993_v60, %v997_v25  ;;  %v9338_v61 = vcombine.high %v994_v26, %v998_v28  ;;  %v1037_v14 = vld [vmem:[#allocation5 + $0x1b20] sm:$0xff]  ;;  %v9926_v15 = vld [vmem:[#allocation2 + $0x48] sm:$0xff] }
 0x1f6   :  { %6591 = vmatprep.mubr.bf16.mxu0 %v10312_v35  ;;  %6919 = vmatprep.mubr.bf16.mxu1 %v10312_v35 }
 0x1f8   :  { %6562 = vmatpush1.bf16.msra.mxu0 %v9287_v37  ;;  %6890 = vmatpush1.bf16.msra.mxu1 %v9289_v39  ;;  %v1006_v37 = vld [vmem:[#allocation5 + $0x1a28] sm:$0xff]  ;;  %v9335_v39 = vcombine.low %v993_v60, %v997_v25  ;;  %v128_v60 = vmul.f32 %v10302_v17, %v10302_v17 }
 0x1f9   :  { %6563 = vmatprep.subr.bf16.mxu0 %v9296_v40  ;;  %6891 = vmatprep.subr.bf16.mxu1 %v9298_v41  ;;  %v9337_v40 = vcombine.low %v994_v26, %v998_v28  ;;  %v9344_v41 = vcombine.high %v1001_v33, %v1005_v51  ;;  %v9346_v42 = vcombine.high %v1002_v36, %v1006_v37 }
 0x1fa   :  { %v9376_v26 = vcombine.high %v1033_v13, %v1037_v14 }
 0x1fc   :  { %6564 = vmatpush1.bf16.msra.mxu0 %v9295_v48  ;;  %6892 = vmatpush1.bf16.msra.mxu1 %v9297_v49  ;;  %v1014_v48 = vld [vmem:[#allocation5 + $0x1a68] sm:$0xff]  ;;  %v9343_v49 = vcombine.low %v1001_v33, %v1005_v51 }
 0x1fd   :  { %6565 = vmatprep.subr.bf16.mxu0 %v9304_v43  ;;  %6893 = vmatprep.subr.bf16.mxu1 %v9306_v53  ;;  %v9345_v43 = vcombine.low %v1002_v36, %v1006_v37  ;;  %v9352_v53 = vcombine.high %v1009_v45, %v1013_v46  ;;  %v9354_v54 = vcombine.high %v1010_v47, %v1014_v48  ;;  %v1046_v33 = vld [vmem:[#allocation5 + $0x1b68] sm:$0xff] }
 0x1fe   :  { %v9375_v36 = vcombine.low %v1033_v13, %v1037_v14  ;;  %v1066_v13 = vld [vmem:[#allocation5 + $0x1c08] sm:$0xff] }
 0x1ff   :  { %v1070_v14 = vld [vmem:[#allocation5 + $0x1c28] sm:$0xff] }
 0x200   :  { %6566 = vmatpush1.bf16.msra.mxu0 %v9303_v63  ;;  %6894 = vmatpush1.bf16.msra.mxu1 %v9305_v44  ;;  %v1022_v63 = vld [vmem:[#allocation5 + $0x1aa8] sm:$0xff]  ;;  %v9351_v44 = vcombine.low %v1009_v45, %v1013_v46  ;;  %v114_v45 = vld [vmem:[#allocation2 + $0x60] sm:$0xff] }
 0x201   :  { %6567 = vmatprep.subr.bf16.mxu0 %v9312_v0  ;;  %6895 = vmatprep.subr.bf16.mxu1 %v9314_v8  ;;  %v9353_v0 = vcombine.low %v1010_v47, %v1014_v48  ;;  %v9360_v8 = vcombine.high %v1017_v56, %v1021_v57  ;;  %v9362_v2 = vcombine.high %v1018_v59, %v1022_v63  ;;  %v1050_v46 = vld [vmem:[#allocation5 + $0x1b88] sm:$0xff] }
 0x202   :  { %v1054_v47 = vld [vmem:[#allocation5 + $0x1ba8] sm:$0xff]  ;;  %v130_v48 = vmul.f32 %v114_v45, %v114_v45 }
 0x204   :  { %6568 = vmatpush1.bf16.msra.mxu0 %v9311_v6  ;;  %6896 = vmatpush1.bf16.msra.mxu1 %v9313_v9  ;;  %v1030_v6 = vld [vmem:[#allocation5 + $0x1ae8] sm:$0xff]  ;;  %v9359_v9 = vcombine.low %v1017_v56, %v1021_v57  ;;  %v9394_v56 = vcombine.high %v1050_v46, %v1054_v47  ;;  %v1057_v57 = vld [vmem:[#allocation5 + $0x1bc0] sm:$0xff] }
 0x205   :  { %6569 = vmatprep.subr.bf16.mxu0 %v9320_v10  ;;  %6897 = vmatprep.subr.bf16.mxu1 %v9322_v11  ;;  %v9361_v10 = vcombine.low %v1018_v59, %v1022_v63  ;;  %v9368_v11 = vcombine.high %v1025_v3, %v1029_v4  ;;  %v9370_v12 = vcombine.high %v1026_v5, %v1030_v6  ;;  %v1061_v59 = vld [vmem:[#allocation5 + $0x1be0] sm:$0xff]  ;;  %v10325_v63 = vld [vmem:[#allocation2 + $0x70] sm:$0xff] }
 0x206   :  { %v9369_v25 = vcombine.low %v1026_v5, %v1030_v6  ;;  %v117_v5 = vld [vmem:[#allocation2 + $0x78] sm:$0xff] }
 0x207   :  { %v133_v6 = vmul.f32 %v117_v5, %v117_v5 }
 0x208   :  { %6570 = vmatpush1.bf16.msra.mxu0 %v9319_v18  ;;  %6898 = vmatpush1.bf16.msra.mxu1 %v9321_v20  ;;  %v127_v18 = vmul.f32 %v9926_v15, %v9926_v15  ;;  %v1034_v20 = vld [vmem:[#allocation5 + $0x1b08] sm:$0xff] }
 0x209   :  { %6571 = vmatprep.subr.bf16.mxu0 %v9328_v21  ;;  %6899 = vmatprep.subr.bf16.mxu1 %v9330_v22  ;;  %v1038_v21 = vld [vmem:[#allocation5 + $0x1b28] sm:$0xff]  ;;  %v9367_v22 = vcombine.low %v1025_v3, %v1029_v4  ;;  %v9393_v4 = vcombine.low %v1050_v46, %v1054_v47  ;;  %v1089_v46 = vld [vmem:[#allocation5 + $0x1cc0] sm:$0xff] }
 0x20a   :  { %v9378_v28 = vcombine.high %v1034_v20, %v1038_v21  ;;  %v142_v51 = vadd.f32 %v10274_v16, %v127_v18  ;;  %v9377_v17 = vcombine.low %v1034_v20, %v1038_v21  ;;  %v9399_v18 = vcombine.low %v1057_v57, %v1061_v59  ;;  %v1093_v47 = vld [vmem:[#allocation5 + $0x1ce0] sm:$0xff] }
 0x20c   :  { %6572 = vmatpush1.bf16.msra.mxu0 %v9327_v29  ;;  %6900 = vmatpush1.bf16.msra.mxu1 %v9329_v30  ;;  %v1041_v29 = vld [vmem:[#allocation5 + $0x1b40] sm:$0xff] }
 0x20d   :  { %6573 = vmatprep.subr.bf16.mxu0 %v9336_v31  ;;  %6901 = vmatprep.subr.bf16.mxu1 %v9338_v61  ;;  %v1045_v30 = vld [vmem:[#allocation5 + $0x1b60] sm:$0xff]  ;;  %v129_v31 = vmul.f32 %v10292_v55, %v10292_v55  ;;  %v1042_v61 = vld [vmem:[#allocation5 + $0x1b48] sm:$0xff] }
 0x20e   :  { %v9384_v37 = vcombine.high %v1041_v29, %v1045_v30 }
 0x210   :  { %6574 = vmatpush1.bf16.msra.mxu0 %v9335_v39  ;;  %6902 = vmatpush1.bf16.msra.mxu1 %v9337_v40  ;;  %v143_v39 = vadd.f32 %v142_v51, %v128_v60  ;;  %v9386_v40 = vcombine.high %v1042_v61, %v1046_v33  ;;  %v1073_v60 = vld [vmem:[#allocation5 + $0x1c40] sm:$0xff] }
 0x211   :  { %6575 = vmatprep.subr.bf16.mxu0 %v9344_v41  ;;  %6903 = vmatprep.subr.bf16.mxu1 %v9346_v42  ;;  %v1049_v41 = vld [vmem:[#allocation5 + $0x1b80] sm:$0xff] }
 0x212   :  { %v1053_v42 = vld [vmem:[#allocation5 + $0x1ba0] sm:$0xff]  ;;  %v144_v55 = vadd.f32 %v143_v39, %v129_v31  ;;  %v9409_v31 = vcombine.low %v1066_v13, %v1070_v14  ;;  %v1086_v39 = vld [vmem:[#allocation5 + $0x1ca8] sm:$0xff] }
 0x213   :  { %v9392_v16 = vcombine.high %v1049_v41, %v1053_v42  ;;  %v9391_v3 = vcombine.low %v1049_v41, %v1053_v42  ;;  %v1081_v51 = vld [vmem:[#allocation5 + $0x1c80] sm:$0xff] }
 0x214   :  { %6576 = vmatpush1.bf16.msra.mxu0 %v9343_v49  ;;  %6904 = vmatpush1.bf16.msra.mxu1 %v9345_v43  ;;  %v9383_v49 = vcombine.low %v1041_v29, %v1045_v30  ;;  %v9385_v43 = vcombine.low %v1042_v61, %v1046_v33  ;;  %v1078_v29 = vld [vmem:[#allocation5 + $0x1c68] sm:$0xff] }
 0x215   :  { %6577 = vmatprep.subr.bf16.mxu0 %v9352_v53  ;;  %6905 = vmatprep.subr.bf16.mxu1 %v9354_v54  ;;  %v131_v53 = vmul.f32 %v10308_v27, %v10308_v27  ;;  %v145_v54 = vadd.f32 %v144_v55, %v130_v48  ;;  %v9400_v27 = vcombine.high %v1057_v57, %v1061_v59  ;;  %v1090_v48 = vld [vmem:[#allocation5 + $0x1cc8] sm:$0xff] }
 0x216   :  { %v1094_v55 = vld [vmem:[#allocation5 + $0x1ce8] sm:$0xff] }
 0x217   :  { %v1098_v57 = vld [vmem:[#allocation5 + $0x1d08] sm:$0xff] }
 0x218   :  { %6578 = vmatpush1.bf16.msra.mxu0 %v9351_v44  ;;  %6906 = vmatpush1.bf16.msra.mxu1 %v9353_v0  ;;  %v1058_v44 = vld [vmem:[#allocation5 + $0x1bc8] sm:$0xff] }
 0x219   :  { %6579 = vmatprep.subr.bf16.mxu0 %v9360_v8  ;;  %6907 = vmatprep.subr.bf16.mxu1 %v9362_v2  ;;  %v1062_v0 = vld [vmem:[#allocation5 + $0x1be8] sm:$0xff]  ;;  %v132_v8 = vmul.f32 %v10325_v63, %v10325_v63  ;;  %v146_v2 = vadd.f32 %v145_v54, %v131_v53  ;;  %v9434_v53 = vcombine.high %v1090_v48, %v1094_v55  ;;  %v1097_v54 = vld [vmem:[#allocation5 + $0x1d00] sm:$0xff] }
 0x21a   :  { %v9401_v20 = vcombine.low %v1058_v44, %v1062_v0  ;;  %v1102_v59 = vld [vmem:[#allocation5 + $0x1d28] sm:$0xff] }
 0x21c   :  { %6580 = vmatpush1.bf16.msra.mxu0 %v9359_v9  ;;  %6908 = vmatpush1.bf16.msra.mxu1 %v9361_v10  ;;  %v147_v9 = vadd.f32 %v146_v2, %v132_v8  ;;  %v9402_v10 = vcombine.high %v1058_v44, %v1062_v0  ;;  %v9431_v44 = vcombine.low %v1089_v46, %v1093_v47 }
 0x21d   :  { %6581 = vmatprep.subr.bf16.mxu0 %v9368_v11  ;;  %6909 = vmatprep.subr.bf16.mxu1 %v9370_v12  ;;  %v1065_v11 = vld [vmem:[#allocation5 + $0x1c00] sm:$0xff]  ;;  %v9433_v0 = vcombine.low %v1090_v48, %v1094_v55  ;;  %v9442_v2 = vcombine.high %v1098_v57, %v1102_v59  ;;  %v1138_v48 = vld [vmem:[#allocation5 + $0x1e48] sm:$0xff] }
 0x21e   :  { %v1069_v12 = vld [vmem:[#allocation5 + $0x1c20] sm:$0xff]  ;;  %v148_v15 = vadd.f32 %v147_v9, %v133_v6  ;;  %v9441_v9 = vcombine.low %v1098_v57, %v1102_v59  ;;  %v1142_v55 = vld [vmem:[#allocation5 + $0x1e68] sm:$0xff] }
 0x21f   :  { %v9408_v21 = vcombine.high %v1065_v11, %v1069_v12  ;;  %v9407_v30 = vcombine.low %v1065_v11, %v1069_v12  ;;  %v1113_v12 = vld [vmem:[#allocation5 + $0x1d80] sm:$0xff]  ;;  %v1146_v57 = vld [vmem:[#allocation5 + $0x1e88] sm:$0xff] }
 0x220   :  { %6582 = vmatpush1.bf16.msra.mxu0 %v9367_v22  ;;  %6910 = vmatpush1.bf16.msra.mxu1 %v9369_v25  ;;  %v9410_v22 = vcombine.high %v1066_v13, %v1070_v14  ;;  %v1077_v25 = vld [vmem:[#allocation5 + $0x1c60] sm:$0xff]  ;;  %v1114_v14 = vld [vmem:[#allocation5 + $0x1d88] sm:$0xff] }
 0x221   :  { %6583 = vmatprep.subr.bf16.mxu0 %v9376_v26  ;;  %6911 = vmatprep.subr.bf16.mxu1 %v9378_v28  ;;  %v10329_v26 = vpack.c.bf16 %v114_v45, %v114_v45  ;;  %v1074_v28 = vld [vmem:[#allocation5 + $0x1c48] sm:$0xff]  ;;  %v9416_v61 = vcombine.high %v1073_v60, %v1077_v25  ;;  %v1117_v13 = vld [vmem:[#allocation5 + $0x1da0] sm:$0xff] }
 0x222   :  { %149 = vadd.xlane.f32.xlu0 %v148_v15  ;;  %v9418_v33 = vcombine.high %v1074_v28, %v1078_v29  ;;  %v9417_v41 = vcombine.low %v1074_v28, %v1078_v29  ;;  %v1118_v15 = vld [vmem:[#allocation5 + $0x1da8] sm:$0xff] }
 0x223   :  { %v1122_v28 = vld [vmem:[#allocation5 + $0x1dc8] sm:$0xff] }
 0x224   :  { %6584 = vmatpush1.bf16.msra.mxu0 %v9375_v36  ;;  %6912 = vmatpush1.bf16.msra.mxu1 %v9377_v17  ;;  %v1085_v36 = vld [vmem:[#allocation5 + $0x1ca0] sm:$0xff]  ;;  %v10331_v17 = vpack.c.bf16 %v117_v5, %v117_v5  ;;  %v1106_v5 = vld [vmem:[#allocation5 + $0x1d48] sm:$0xff] }
 0x225   :  { %6585 = vmatprep.subr.bf16.mxu0 %v9384_v37  ;;  %6913 = vmatprep.subr.bf16.mxu1 %v9386_v40  ;;  %v1082_v37 = vld [vmem:[#allocation5 + $0x1c88] sm:$0xff]  ;;  %v9415_v40 = vcombine.low %v1073_v60, %v1077_v25  ;;  %v9424_v42 = vcombine.high %v1081_v51, %v1085_v36  ;;  %v1121_v60 = vld [vmem:[#allocation5 + $0x1dc0] sm:$0xff] }
 0x226   :  { %v9426_v45 = vcombine.high %v1082_v37, %v1086_v39  ;;  %v1125_v25 = vld [vmem:[#allocation5 + $0x1de0] sm:$0xff]  ;;  %v1126_v29 = vld [vmem:[#allocation5 + $0x1de8] sm:$0xff] }
 0x227   :  { %v1150_v59 = vld [vmem:[#allocation5 + $0x1ea8] sm:$0xff] }
 0x228   :  { %6586 = vmatpush1.bf16.msra.mxu0 %v9383_v49  ;;  %6914 = vmatpush1.bf16.msra.mxu1 %v9385_v43  ;;  %v9423_v49 = vcombine.low %v1081_v51, %v1085_v36  ;;  %v9425_v43 = vcombine.low %v1082_v37, %v1086_v39  ;;  %v1129_v51 = vld [vmem:[#allocation5 + $0x1e00] sm:$0xff]  ;;  %v1130_v37 = vld [vmem:[#allocation5 + $0x1e08] sm:$0xff] }
 0x229   :  { %6587 = vmatprep.subr.bf16.mxu0 %v9392_v16  ;;  %6915 = vmatprep.subr.bf16.mxu1 %v9394_v56  ;;  %v9432_v16 = vcombine.high %v1089_v46, %v1093_v47  ;;  %v1101_v56 = vld [vmem:[#allocation5 + $0x1d20] sm:$0xff]  ;;  %v1134_v39 = vld [vmem:[#allocation5 + $0x1e28] sm:$0xff] }
 0x22a   :  { %v9440_v8 = vcombine.high %v1097_v54, %v1101_v56  ;;  %v9439_v6 = vcombine.low %v1097_v54, %v1101_v56  ;;  %v1133_v36 = vld [vmem:[#allocation5 + $0x1e20] sm:$0xff] }
 0x22b   :  { %v1137_v46 = vld [vmem:[#allocation5 + $0x1e40] sm:$0xff] }
 0x22c   :  { %6588 = vmatpush1.bf16.msra.mxu0 %v9391_v3  ;;  %6916 = vmatpush1.bf16.msra.mxu1 %v9393_v4  ;;  %v1105_v3 = vld [vmem:[#allocation5 + $0x1d40] sm:$0xff] }
 0x22d   :  { %6589 = vmatprep.subr.bf16.mxu0 %v9400_v27  ;;  %6917 = vmatprep.subr.bf16.mxu1 %v9402_v10  ;;  %v1109_v4 = vld [vmem:[#allocation5 + $0x1d60] sm:$0xff]  ;;  %v1110_v27 = vld [vmem:[#allocation5 + $0x1d68] sm:$0xff] }
 0x22e   :  { %v9448_v10 = vcombine.high %v1105_v3, %v1109_v4  ;;  %v9450_v11 = vcombine.high %v1106_v5, %v1110_v27  ;;  %v1141_v47 = vld [vmem:[#allocation5 + $0x1e60] sm:$0xff] }
 0x22f   :  { %v1145_v54 = vld [vmem:[#allocation5 + $0x1e80] sm:$0xff] }
 0x230   :  { %6590 = vmatpush1.bf16.msra.mxu0 %v9399_v18  ;;  %6918 = vmatpush1.bf16.msra.mxu1 %v9401_v20  ;;  %v9447_v18 = vcombine.low %v1105_v3, %v1109_v4  ;;  %v9449_v20 = vcombine.low %v1106_v5, %v1110_v27  ;;  %v1149_v56 = vld [vmem:[#allocation5 + $0x1ea0] sm:$0xff]  ;;  %v1154_v5 = vld [vmem:[#allocation5 + $0x1ec8] sm:$0xff] }
 0x231   :  { %6600 = vmatprep.subr.bf16.mxu0 %v9408_v21  ;;  %6928 = vmatprep.subr.bf16.mxu1 %v9410_v22  ;;  %v9456_v21 = vcombine.high %v1113_v12, %v1117_v13  ;;  %v9458_v22 = vcombine.high %v1114_v14, %v1118_v15  ;;  %v1153_v3 = vld [vmem:[#allocation5 + $0x1ec0] sm:$0xff]  ;;  %v1158_v27 = vld [vmem:[#allocation5 + $0x1ee8] sm:$0xff] }
 0x232   :  { %v1157_v4 = vld [vmem:[#allocation5 + $0x1ee0] sm:$0xff] }
 0x233   :  { %6592 = vmatmul.mubr.bf16.vlgmr.msra.gmra.mrb[0].mxu0 %v10329_v26  ;;  %6920 = vmatmul.mubr.bf16.vlgmr.msra.gmra.mrb[0].mxu1 %v10329_v26 }
 0x234   :  { %6601 = vmatpush1.bf16.msra.mxu0 %v9407_v30  ;;  %6929 = vmatpush1.bf16.msra.mxu1 %v9409_v31  ;;  %v9455_v30 = vcombine.low %v1113_v12, %v1117_v13  ;;  %v9457_v31 = vcombine.low %v1114_v14, %v1118_v15  ;;  %v1161_v12 = vld [vmem:[#allocation5 + $0x1f00] sm:$0xff]  ;;  %v1162_v14 = vld [vmem:[#allocation5 + $0x1f08] sm:$0xff] }
 0x235   :  { %6602 = vmatprep.subr.bf16.mxu0 %v9416_v61  ;;  %6930 = vmatprep.subr.bf16.mxu1 %v9418_v33  ;;  %v9464_v61 = vcombine.high %v1121_v60, %v1125_v25  ;;  %v9466_v33 = vcombine.high %v1122_v28, %v1126_v29  ;;  %v1165_v13 = vld [vmem:[#allocation5 + $0x1f20] sm:$0xff]  ;;  %v1166_v15 = vld [vmem:[#allocation5 + $0x1f28] sm:$0xff] }
 0x236   :  { %6632 = vmatprep.mubr.bf16.mxu0 %v10331_v17  ;;  %6960 = vmatprep.mubr.bf16.mxu1 %v10331_v17 }
 0x238   :  { %6603 = vmatpush1.bf16.msra.mxu0 %v9415_v40  ;;  %6931 = vmatpush1.bf16.msra.mxu1 %v9417_v41  ;;  %v9463_v40 = vcombine.low %v1121_v60, %v1125_v25  ;;  %v9465_v41 = vcombine.low %v1122_v28, %v1126_v29  ;;  %v1169_v60 = vld [vmem:[#allocation5 + $0x1f40] sm:$0xff]  ;;  %v1170_v28 = vld [vmem:[#allocation5 + $0x1f48] sm:$0xff] }
 0x239   :  { %6604 = vmatprep.subr.bf16.mxu0 %v9424_v42  ;;  %6932 = vmatprep.subr.bf16.mxu1 %v9426_v45  ;;  %v9472_v42 = vcombine.high %v1129_v51, %v1133_v36  ;;  %v9474_v45 = vcombine.high %v1130_v37, %v1134_v39  ;;  %v1173_v25 = vld [vmem:[#allocation5 + $0x1f60] sm:$0xff]  ;;  %v1174_v29 = vld [vmem:[#allocation5 + $0x1f68] sm:$0xff] }
 0x23c   :  { %6605 = vmatpush1.bf16.msra.mxu0 %v9423_v49  ;;  %6933 = vmatpush1.bf16.msra.mxu1 %v9425_v43  ;;  %v9471_v49 = vcombine.low %v1129_v51, %v1133_v36  ;;  %v9473_v43 = vcombine.low %v1130_v37, %v1134_v39  ;;  %v1177_v51 = vld [vmem:[#allocation5 + $0x1f80] sm:$0xff]  ;;  %v1178_v37 = vld [vmem:[#allocation5 + $0x1f88] sm:$0xff] }
 0x23d   :  { %6606 = vmatprep.subr.bf16.mxu0 %v9432_v16  ;;  %6934 = vmatprep.subr.bf16.mxu1 %v9434_v53  ;;  %v9480_v16 = vcombine.high %v1137_v46, %v1141_v47  ;;  %v9482_v53 = vcombine.high %v1138_v48, %v1142_v55  ;;  %v1181_v36 = vld [vmem:[#allocation5 + $0x1fa0] sm:$0xff]  ;;  %v1182_v39 = vld [vmem:[#allocation5 + $0x1fa8] sm:$0xff] }
 0x240   :  { %6607 = vmatpush1.bf16.msra.mxu0 %v9431_v44  ;;  %6935 = vmatpush1.bf16.msra.mxu1 %v9433_v0  ;;  %v9479_v44 = vcombine.low %v1137_v46, %v1141_v47  ;;  %v9481_v0 = vcombine.low %v1138_v48, %v1142_v55  ;;  %v1185_v46 = vld [vmem:[#allocation5 + $0x1fc0] sm:$0xff]  ;;  %v1186_v48 = vld [vmem:[#allocation5 + $0x1fc8] sm:$0xff] }
 0x241   :  { %6608 = vmatprep.subr.bf16.mxu0 %v9440_v8  ;;  %6936 = vmatprep.subr.bf16.mxu1 %v9442_v2  ;;  %v9488_v8 = vcombine.high %v1145_v54, %v1149_v56  ;;  %v9490_v2 = vcombine.high %v1146_v57, %v1150_v59  ;;  %v1189_v47 = vld [vmem:[#allocation5 + $0x1fe0] sm:$0xff]  ;;  %v1190_v55 = vld [vmem:[#allocation5 + $0x1fe8] sm:$0xff] }
 0x244   :  { %6609 = vmatpush1.bf16.msra.mxu0 %v9439_v6  ;;  %6937 = vmatpush1.bf16.msra.mxu1 %v9441_v9  ;;  %v9487_v6 = vcombine.low %v1145_v54, %v1149_v56  ;;  %v9489_v9 = vcombine.low %v1146_v57, %v1150_v59  ;;  %v171_v54 = vld [vmem:[#allocation5 + $0x10] sm:$0xff]  ;;  %v172_v57 = vld [vmem:[#allocation5 + $0x18] sm:$0xff] }
 0x245   :  { %6610 = vmatprep.subr.bf16.mxu0 %v9448_v10  ;;  %6938 = vmatprep.subr.bf16.mxu1 %v9450_v11  ;;  %v9496_v10 = vcombine.high %v1153_v3, %v1157_v4  ;;  %v9498_v11 = vcombine.high %v1154_v5, %v1158_v27  ;;  %v175_v56 = vld [vmem:[#allocation5 + $0x30] sm:$0xff]  ;;  %v176_v59 = vld [vmem:[#allocation5 + $0x38] sm:$0xff] }
 0x248   :  { %6611 = vmatpush1.bf16.msra.mxu0 %v9447_v18  ;;  %6939 = vmatpush1.bf16.msra.mxu1 %v9449_v20  ;;  %v9495_v18 = vcombine.low %v1153_v3, %v1157_v4  ;;  %v9497_v20 = vcombine.low %v1154_v5, %v1158_v27  ;;  %v179_v3 = vld [vmem:[#allocation5 + $0x50] sm:$0xff]  ;;  %v10339_v5 = vpack.c.bf16 %v10325_v63, %v10325_v63  ;;  %v180_v27 = vld [vmem:[#allocation5 + $0x58] sm:$0xff] }
 0x249   :  { %6612 = vmatprep.subr.bf16.mxu0 %v9456_v21  ;;  %6940 = vmatprep.subr.bf16.mxu1 %v9458_v22  ;;  %v9504_v21 = vcombine.high %v1161_v12, %v1165_v13  ;;  %v9506_v22 = vcombine.high %v1162_v14, %v1166_v15  ;;  %v183_v4 = vld [vmem:[#allocation5 + $0x70] sm:$0xff] }
 0x24a   :  { %v8523_v63 = vcombine.low %v179_v3, %v183_v4 }
 0x24c   :  { %6613 = vmatpush1.bf16.msra.mxu0 %v9455_v30  ;;  %6941 = vmatpush1.bf16.msra.mxu1 %v9457_v31  ;;  %v9503_v30 = vcombine.low %v1161_v12, %v1165_v13  ;;  %v9505_v31 = vcombine.low %v1162_v14, %v1166_v15  ;;  %v187_v13 = vld [vmem:[#allocation5 + $0x90] sm:$0xff]  ;;  %v188_v15 = vld [vmem:[#allocation5 + $0x98] sm:$0xff] }
 0x24d   :  { %6614 = vmatprep.subr.bf16.mxu0 %v9464_v61  ;;  %6942 = vmatprep.subr.bf16.mxu1 %v9466_v33  ;;  %v9512_v61 = vcombine.high %v1169_v60, %v1173_v25  ;;  %v9514_v33 = vcombine.high %v1170_v28, %v1174_v29  ;;  %v191_v14 = vld [vmem:[#allocation5 + $0xb0] sm:$0xff] }
 0x250   :  { %6615 = vmatpush1.bf16.msra.mxu0 %v9463_v40  ;;  %6943 = vmatpush1.bf16.msra.mxu1 %v9465_v41  ;;  %v9511_v40 = vcombine.low %v1169_v60, %v1173_v25  ;;  %v9513_v41 = vcombine.low %v1170_v28, %v1174_v29  ;;  %v195_v60 = vld [vmem:[#allocation5 + $0xd0] sm:$0xff]  ;;  %v196_v28 = vld [vmem:[#allocation5 + $0xd8] sm:$0xff] }
 0x251   :  { %6616 = vmatprep.subr.bf16.mxu0 %v9472_v42  ;;  %6944 = vmatprep.subr.bf16.mxu1 %v9474_v45  ;;  %v9520_v42 = vcombine.high %v1177_v51, %v1181_v36  ;;  %v9522_v45 = vcombine.high %v1178_v37, %v1182_v39  ;;  %v199_v25 = vld [vmem:[#allocation5 + $0xf0] sm:$0xff]  ;;  %v200_v29 = vld [vmem:[#allocation5 + $0xf8] sm:$0xff] }
 0x254   :  { %6617 = vmatpush1.bf16.msra.mxu0 %v9471_v49  ;;  %6945 = vmatpush1.bf16.msra.mxu1 %v9473_v43  ;;  %v9519_v49 = vcombine.low %v1177_v51, %v1181_v36  ;;  %v9521_v43 = vcombine.low %v1178_v37, %v1182_v39  ;;  %v203_v51 = vld [vmem:[#allocation5 + $0x110] sm:$0xff]  ;;  %v204_v37 = vld [vmem:[#allocation5 + $0x118] sm:$0xff] }
 0x255   :  { %6618 = vmatprep.subr.bf16.mxu0 %v9480_v16  ;;  %6946 = vmatprep.subr.bf16.mxu1 %v9482_v53  ;;  %v9528_v16 = vcombine.high %v1185_v46, %v1189_v47  ;;  %v9530_v53 = vcombine.high %v1186_v48, %v1190_v55  ;;  %v207_v36 = vld [vmem:[#allocation5 + $0x130] sm:$0xff]  ;;  %v208_v39 = vld [vmem:[#allocation5 + $0x138] sm:$0xff] }
 0x258   :  { %6619 = vmatpush1.bf16.msra.mxu0 %v9479_v44  ;;  %6947 = vmatpush1.bf16.msra.mxu1 %v9481_v0  ;;  %v9527_v44 = vcombine.low %v1185_v46, %v1189_v47  ;;  %v9529_v0 = vcombine.low %v1186_v48, %v1190_v55  ;;  %v215_v46 = vld [vmem:[#allocation5 + $0x170] sm:$0xff]  ;;  %v212_v47 = vld [vmem:[#allocation5 + $0x158] sm:$0xff]  ;;  %v8547_v55 = vcombine.low %v203_v51, %v207_v36 }
 0x259   :  { %6620 = vmatprep.subr.bf16.mxu0 %v9488_v8  ;;  %6948 = vmatprep.subr.bf16.mxu1 %v9490_v2  ;;  %v8516_v8 = vcombine.high %v171_v54, %v175_v56  ;;  %v8518_v2 = vcombine.high %v172_v57, %v176_v59  ;;  %v216_v48 = vld [vmem:[#allocation5 + $0x178] sm:$0xff] }
 0x25c   :  { %6621 = vmatpush1.bf16.msra.mxu0 %v9487_v6  ;;  %6949 = vmatpush1.bf16.msra.mxu1 %v9489_v9  ;;  %v184_v6 = vld [vmem:[#allocation5 + $0x78] sm:$0xff]  ;;  %v8515_v9 = vcombine.low %v171_v54, %v175_v56  ;;  %v223_v54 = vld [vmem:[#allocation5 + $0x1b0] sm:$0xff] }
 0x25d   :  { %6622 = vmatprep.subr.bf16.mxu0 %v9496_v10  ;;  %6950 = vmatprep.subr.bf16.mxu1 %v9498_v11  ;;  %v8517_v10 = vcombine.low %v172_v57, %v176_v59  ;;  %v8524_v11 = vcombine.high %v179_v3, %v183_v4  ;;  %v8526_v12 = vcombine.high %v180_v27, %v184_v6  ;;  %v220_v56 = vld [vmem:[#allocation5 + $0x198] sm:$0xff]  ;;  %v231_v3 = vld [vmem:[#allocation5 + $0x1f0] sm:$0xff] }
 0x25e   :  { %v224_v57 = vld [vmem:[#allocation5 + $0x1b8] sm:$0xff] }
 0x25f   :  { %v228_v4 = vld [vmem:[#allocation5 + $0x1d8] sm:$0xff] }
 0x260   :  { %6623 = vmatpush1.bf16.msra.mxu0 %v9495_v18  ;;  %6951 = vmatpush1.bf16.msra.mxu1 %v9497_v20  ;;  %v192_v18 = vld [vmem:[#allocation5 + $0xb8] sm:$0xff]  ;;  %v8525_v20 = vcombine.low %v180_v27, %v184_v6 }
 0x261   :  { %6624 = vmatprep.subr.bf16.mxu0 %v9504_v21  ;;  %6952 = vmatprep.subr.bf16.mxu1 %v9506_v22  ;;  %v8532_v21 = vcombine.high %v187_v13, %v191_v14  ;;  %v8534_v22 = vcombine.high %v188_v15, %v192_v18  ;;  %v232_v27 = vld [vmem:[#allocation5 + $0x1f8] sm:$0xff] }
 0x264   :  { %6625 = vmatpush1.bf16.msra.mxu0 %v9503_v30  ;;  %6953 = vmatpush1.bf16.msra.mxu1 %v9505_v31  ;;  %v8531_v30 = vcombine.low %v187_v13, %v191_v14  ;;  %v8533_v31 = vcombine.low %v188_v15, %v192_v18  ;;  %v239_v13 = vld [vmem:[#allocation5 + $0x230] sm:$0xff]  ;;  %v236_v14 = vld [vmem:[#allocation5 + $0x218] sm:$0xff] }
 0x265   :  { %6626 = vmatprep.subr.bf16.mxu0 %v9512_v61  ;;  %6954 = vmatprep.subr.bf16.mxu1 %v9514_v33  ;;  %v8540_v61 = vcombine.high %v195_v60, %v199_v25  ;;  %v8542_v33 = vcombine.high %v196_v28, %v200_v29  ;;  %v240_v15 = vld [vmem:[#allocation5 + $0x238] sm:$0xff] }
 0x268   :  { %6627 = vmatpush1.bf16.msra.mxu0 %v9511_v40  ;;  %6955 = vmatpush1.bf16.msra.mxu1 %v9513_v41  ;;  %v8539_v40 = vcombine.low %v195_v60, %v199_v25  ;;  %v8541_v41 = vcombine.low %v196_v28, %v200_v29  ;;  %v247_v60 = vld [vmem:[#allocation5 + $0x270] sm:$0xff]  ;;  %v244_v25 = vld [vmem:[#allocation5 + $0x258] sm:$0xff] }
 0x269   :  { %6628 = vmatprep.subr.bf16.mxu0 %v9520_v42  ;;  %6956 = vmatprep.subr.bf16.mxu1 %v9522_v45  ;;  %v8548_v42 = vcombine.high %v203_v51, %v207_v36  ;;  %v211_v45 = vld [vmem:[#allocation5 + $0x150] sm:$0xff]  ;;  %v248_v28 = vld [vmem:[#allocation5 + $0x278] sm:$0xff] }
 0x26a   :  { %v8555_v59 = vcombine.low %v211_v45, %v215_v46  ;;  %v255_v51 = vld [vmem:[#allocation5 + $0x2b0] sm:$0xff]  ;;  %v252_v36 = vld [vmem:[#allocation5 + $0x298] sm:$0xff] }
 0x26c   :  { %6629 = vmatpush1.bf16.msra.mxu0 %v9519_v49  ;;  %6957 = vmatpush1.bf16.msra.mxu1 %v9521_v43  ;;  %v8549_v49 = vcombine.low %v204_v37, %v208_v39  ;;  %v8556_v43 = vcombine.high %v211_v45, %v215_v46  ;;  %v263_v45 = vld [vmem:[#allocation5 + $0x2f0] sm:$0xff]  ;;  %v260_v46 = vld [vmem:[#allocation5 + $0x2d8] sm:$0xff] }
 0x26d   :  { %6630 = vmatprep.subr.bf16.mxu0 %v9528_v16  ;;  %6958 = vmatprep.subr.bf16.mxu1 %v9530_v53  ;;  %v8558_v16 = vcombine.high %v212_v47, %v216_v48  ;;  %v219_v53 = vld [vmem:[#allocation5 + $0x190] sm:$0xff] }
 0x26e   :  { %v8563_v6 = vcombine.low %v219_v53, %v223_v54 }
 0x270   :  { %6631 = vmatpush1.bf16.msra.mxu0 %v9527_v44  ;;  %6959 = vmatpush1.bf16.msra.mxu1 %v9529_v0  ;;  %v8557_v44 = vcombine.low %v212_v47, %v216_v48  ;;  %v8564_v0 = vcombine.high %v219_v53, %v223_v54  ;;  %v264_v47 = vld [vmem:[#allocation5 + $0x2f8] sm:$0xff]  ;;  %v271_v53 = vld [vmem:[#allocation5 + $0x330] sm:$0xff] }
 0x271   :  { %6969 = vmatprep.subr.bf16.mxu0 %v8516_v8  ;;  %7297 = vmatprep.subr.bf16.mxu1 %v8518_v2  ;;  %v8566_v8 = vcombine.high %v220_v56, %v224_v57  ;;  %v227_v2 = vld [vmem:[#allocation5 + $0x1d0] sm:$0xff]  ;;  %v268_v54 = vld [vmem:[#allocation5 + $0x318] sm:$0xff] }
 0x272   :  { %v8571_v18 = vcombine.low %v227_v2, %v231_v3 }
 0x273   :  { %6633 = vmatmul.mubr.bf16.vlgmr.msra.gmra.mrb[0].mxu0 %v10339_v5  ;;  %6961 = vmatmul.mubr.bf16.vlgmr.msra.gmra.mrb[0].mxu1 %v10339_v5 }
 0x274   :  { %6970 = vmatpush1.bf16.msra.mxu0 %v8515_v9  ;;  %7298 = vmatpush1.bf16.msra.mxu1 %v8517_v10  ;;  %v8565_v9 = vcombine.low %v220_v56, %v224_v57  ;;  %v8572_v10 = vcombine.high %v227_v2, %v231_v3  ;;  %v272_v56 = vld [vmem:[#allocation5 + $0x338] sm:$0xff]  ;;  %v279_v2 = vld [vmem:[#allocation5 + $0x370] sm:$0xff] }
 0x275   :  { %6971 = vmatprep.subr.bf16.mxu0 %v8524_v11  ;;  %7299 = vmatprep.subr.bf16.mxu1 %v8526_v12  ;;  %v8574_v11 = vcombine.high %v228_v4, %v232_v27  ;;  %v235_v12 = vld [vmem:[#allocation5 + $0x210] sm:$0xff]  ;;  %v276_v3 = vld [vmem:[#allocation5 + $0x358] sm:$0xff] }
 0x276   :  { %7001 = vmatprep.mubr.bf16.mxu0 %v10216_v58  ;;  %7329 = vmatprep.mubr.bf16.mxu1 %v10216_v58  ;;  %v8550_v58 = vcombine.high %v204_v37, %v208_v39  ;;  %v8579_v29 = vcombine.low %v235_v12, %v239_v13  ;;  %v256_v37 = vld [vmem:[#allocation5 + $0x2b8] sm:$0xff] }
 0x278   :  { %6972 = vmatpush1.bf16.msra.mxu0 %v8523_v63  ;;  %7300 = vmatpush1.bf16.msra.mxu1 %v8525_v20  ;;  %v8573_v63 = vcombine.low %v228_v4, %v232_v27  ;;  %v8580_v20 = vcombine.high %v235_v12, %v239_v13  ;;  %v280_v4 = vld [vmem:[#allocation5 + $0x378] sm:$0xff]  ;;  %v287_v12 = vld [vmem:[#allocation5 + $0x3b0] sm:$0xff] }
 0x279   :  { %6973 = vmatprep.subr.bf16.mxu0 %v8532_v21  ;;  %7301 = vmatprep.subr.bf16.mxu1 %v8534_v22  ;;  %v8582_v21 = vcombine.high %v236_v14, %v240_v15  ;;  %v243_v22 = vld [vmem:[#allocation5 + $0x250] sm:$0xff]  ;;  %v284_v13 = vld [vmem:[#allocation5 + $0x398] sm:$0xff] }
 0x27a   :  { %v8587_v39 = vcombine.low %v243_v22, %v247_v60 }
 0x27c   :  { %6974 = vmatpush1.bf16.msra.mxu0 %v8531_v30  ;;  %7302 = vmatpush1.bf16.msra.mxu1 %v8533_v31  ;;  %v8581_v30 = vcombine.low %v236_v14, %v240_v15  ;;  %v8588_v31 = vcombine.high %v243_v22, %v247_v60  ;;  %v288_v14 = vld [vmem:[#allocation5 + $0x3b8] sm:$0xff]  ;;  %v295_v22 = vld [vmem:[#allocation5 + $0x3f0] sm:$0xff] }
 0x27d   :  { %6975 = vmatprep.subr.bf16.mxu0 %v8540_v61  ;;  %7303 = vmatprep.subr.bf16.mxu1 %v8542_v33  ;;  %v8590_v61 = vcombine.high %v244_v25, %v248_v28  ;;  %v251_v33 = vld [vmem:[#allocation5 + $0x290] sm:$0xff]  ;;  %v292_v60 = vld [vmem:[#allocation5 + $0x3d8] sm:$0xff] }
 0x27e   :  { %v8595_v48 = vcombine.low %v251_v33, %v255_v51 }
 0x280   :  { %6976 = vmatpush1.bf16.msra.mxu0 %v8539_v40  ;;  %7304 = vmatpush1.bf16.msra.mxu1 %v8541_v41  ;;  %v8589_v40 = vcombine.low %v244_v25, %v248_v28  ;;  %v8596_v41 = vcombine.high %v251_v33, %v255_v51  ;;  %v296_v25 = vld [vmem:[#allocation5 + $0x3f8] sm:$0xff]  ;;  %v303_v33 = vld [vmem:[#allocation5 + $0x430] sm:$0xff] }
 0x281   :  { %6977 = vmatprep.subr.bf16.mxu0 %v8548_v42  ;;  %7305 = vmatprep.subr.bf16.mxu1 %v8550_v58  ;;  %v8598_v42 = vcombine.high %v252_v36, %v256_v37  ;;  %v259_v58 = vld [vmem:[#allocation5 + $0x2d0] sm:$0xff]  ;;  %v300_v51 = vld [vmem:[#allocation5 + $0x418] sm:$0xff] }
 0x282   :  { %v8603_v57 = vcombine.low %v259_v58, %v263_v45 }
 0x284   :  { %6978 = vmatpush1.bf16.msra.mxu0 %v8547_v55  ;;  %7306 = vmatpush1.bf16.msra.mxu1 %v8549_v49  ;;  %v8597_v55 = vcombine.low %v252_v36, %v256_v37  ;;  %v8604_v49 = vcombine.high %v259_v58, %v263_v45  ;;  %v304_v36 = vld [vmem:[#allocation5 + $0x438] sm:$0xff]  ;;  %v311_v58 = vld [vmem:[#allocation5 + $0x470] sm:$0xff] }
 0x285   :  { %6979 = vmatprep.subr.bf16.mxu0 %v8556_v43  ;;  %7307 = vmatprep.subr.bf16.mxu1 %v8558_v16  ;;  %v8606_v43 = vcombine.high %v260_v46, %v264_v47  ;;  %v267_v16 = vld [vmem:[#allocation5 + $0x310] sm:$0xff]  ;;  %v308_v45 = vld [vmem:[#allocation5 + $0x458] sm:$0xff] }
 0x286   :  { %v8611_v27 = vcombine.low %v267_v16, %v271_v53 }
 0x288   :  { %6980 = vmatpush1.bf16.msra.mxu0 %v8555_v59  ;;  %7308 = vmatpush1.bf16.msra.mxu1 %v8557_v44  ;;  %v8605_v59 = vcombine.low %v260_v46, %v264_v47  ;;  %v8612_v44 = vcombine.high %v267_v16, %v271_v53  ;;  %v312_v46 = vld [vmem:[#allocation5 + $0x478] sm:$0xff]  ;;  %v319_v16 = vld [vmem:[#allocation5 + $0x4b0] sm:$0xff] }
 0x289   :  { %6981 = vmatprep.subr.bf16.mxu0 %v8564_v0  ;;  %7309 = vmatprep.subr.bf16.mxu1 %v8566_v8  ;;  %v8614_v0 = vcombine.high %v268_v54, %v272_v56  ;;  %v275_v8 = vld [vmem:[#allocation5 + $0x350] sm:$0xff]  ;;  %v316_v53 = vld [vmem:[#allocation5 + $0x498] sm:$0xff] }
 0x28a   :  { %v8619_v15 = vcombine.low %v275_v8, %v279_v2 }
 0x28c   :  { %6982 = vmatpush1.bf16.msra.mxu0 %v8563_v6  ;;  %7310 = vmatpush1.bf16.msra.mxu1 %v8565_v9  ;;  %v8613_v6 = vcombine.low %v268_v54, %v272_v56  ;;  %v8620_v9 = vcombine.high %v275_v8, %v279_v2  ;;  %v320_v54 = vld [vmem:[#allocation5 + $0x4b8] sm:$0xff]  ;;  %v327_v8 = vld [vmem:[#allocation5 + $0x4f0] sm:$0xff] }
 0x28d   :  { %6983 = vmatprep.subr.bf16.mxu0 %v8572_v10  ;;  %7311 = vmatprep.subr.bf16.mxu1 %v8574_v11  ;;  %v8622_v10 = vcombine.high %v276_v3, %v280_v4  ;;  %v283_v11 = vld [vmem:[#allocation5 + $0x390] sm:$0xff]  ;;  %v324_v2 = vld [vmem:[#allocation5 + $0x4d8] sm:$0xff] }
 0x28e   :  { %v8627_v28 = vcombine.low %v283_v11, %v287_v12 }
 0x290   :  { %6984 = vmatpush1.bf16.msra.mxu0 %v8571_v18  ;;  %7312 = vmatpush1.bf16.msra.mxu1 %v8573_v63  ;;  %v8621_v18 = vcombine.low %v276_v3, %v280_v4  ;;  %v8628_v63 = vcombine.high %v283_v11, %v287_v12  ;;  %v328_v3 = vld [vmem:[#allocation5 + $0x4f8] sm:$0xff] }
 0x291   :  { %6985 = vmatprep.subr.bf16.mxu0 %v8580_v20  ;;  %7313 = vmatprep.subr.bf16.mxu1 %v8582_v21  ;;  %v8630_v20 = vcombine.high %v284_v13, %v288_v14  ;;  %v291_v21 = vld [vmem:[#allocation5 + $0x3d0] sm:$0xff]  ;;  %v332_v11 = vld [vmem:[#allocation5 + $0x518] sm:$0xff] }
 0x292   :  { %v8635_v37 = vcombine.low %v291_v21, %v295_v22  ;;  %v336_v12 = vld [vmem:[#allocation5 + $0x538] sm:$0xff] }
 0x294   :  { %6986 = vmatpush1.bf16.msra.mxu0 %v8579_v29  ;;  %7314 = vmatpush1.bf16.msra.mxu1 %v8581_v30  ;;  %v8629_v29 = vcombine.low %v284_v13, %v288_v14  ;;  %v8636_v30 = vcombine.high %v291_v21, %v295_v22  ;;  %v8669_v14 = vcombine.low %v324_v2, %v328_v3  ;;  %v344_v21 = vld [vmem:[#allocation5 + $0x578] sm:$0xff] }
 0x295   :  { %6987 = vmatprep.subr.bf16.mxu0 %v8588_v31  ;;  %7315 = vmatprep.subr.bf16.mxu1 %v8590_v61  ;;  %v8638_v31 = vcombine.high %v292_v60, %v296_v25  ;;  %v299_v61 = vld [vmem:[#allocation5 + $0x410] sm:$0xff] }
 0x296   :  { %v8643_v47 = vcombine.low %v299_v61, %v303_v33 }
 0x298   :  { %6988 = vmatpush1.bf16.msra.mxu0 %v8587_v39  ;;  %7316 = vmatpush1.bf16.msra.mxu1 %v8589_v40  ;;  %v8637_v39 = vcombine.low %v292_v60, %v296_v25  ;;  %v8644_v40 = vcombine.high %v299_v61, %v303_v33  ;;  %v8677_v60 = vcombine.low %v332_v11, %v336_v12  ;;  %v352_v61 = vld [vmem:[#allocation5 + $0x5b8] sm:$0xff] }
 0x299   :  { %6989 = vmatprep.subr.bf16.mxu0 %v8596_v41  ;;  %7317 = vmatprep.subr.bf16.mxu1 %v8598_v42  ;;  %v8646_v41 = vcombine.high %v300_v51, %v304_v36  ;;  %v307_v42 = vld [vmem:[#allocation5 + $0x450] sm:$0xff] }
 0x29a   :  { %v8651_v56 = vcombine.low %v307_v42, %v311_v58 }
 0x29c   :  { %6990 = vmatpush1.bf16.msra.mxu0 %v8595_v48  ;;  %7318 = vmatpush1.bf16.msra.mxu1 %v8597_v55  ;;  %v8645_v48 = vcombine.low %v300_v51, %v304_v36  ;;  %v8652_v55 = vcombine.high %v307_v42, %v311_v58  ;;  %v360_v42 = vld [vmem:[#allocation5 + $0x5f8] sm:$0xff] }
 0x29d   :  { %6991 = vmatprep.subr.bf16.mxu0 %v8604_v49  ;;  %7319 = vmatprep.subr.bf16.mxu1 %v8606_v43  ;;  %v8654_v49 = vcombine.high %v308_v45, %v312_v46  ;;  %v315_v43 = vld [vmem:[#allocation5 + $0x490] sm:$0xff] }
 0x29e   :  { %v8659_v4 = vcombine.low %v315_v43, %v319_v16 }
 0x2a0   :  { %6992 = vmatpush1.bf16.msra.mxu0 %v8603_v57  ;;  %7320 = vmatpush1.bf16.msra.mxu1 %v8605_v59  ;;  %v8653_v57 = vcombine.low %v308_v45, %v312_v46  ;;  %v8660_v59 = vcombine.high %v315_v43, %v319_v16  ;;  %v368_v43 = vld [vmem:[#allocation5 + $0x638] sm:$0xff] }
 0x2a1   :  { %6993 = vmatprep.subr.bf16.mxu0 %v8612_v44  ;;  %7321 = vmatprep.subr.bf16.mxu1 %v8614_v0  ;;  %v8662_v44 = vcombine.high %v316_v53, %v320_v54  ;;  %v323_v0 = vld [vmem:[#allocation5 + $0x4d0] sm:$0xff] }
 0x2a2   :  { %v8667_v13 = vcombine.low %v323_v0, %v327_v8 }
 0x2a4   :  { %6994 = vmatpush1.bf16.msra.mxu0 %v8611_v27  ;;  %7322 = vmatpush1.bf16.msra.mxu1 %v8613_v6  ;;  %v8668_v27 = vcombine.high %v323_v0, %v327_v8  ;;  %v8670_v6 = vcombine.high %v324_v2, %v328_v3  ;;  %v376_v0 = vld [vmem:[#allocation5 + $0x678] sm:$0xff] }
 0x2a5   :  { %6995 = vmatprep.subr.bf16.mxu0 %v8620_v9  ;;  %7323 = vmatprep.subr.bf16.mxu1 %v8622_v10  ;;  %v331_v9 = vld [vmem:[#allocation5 + $0x510] sm:$0xff] }
 0x2a6   :  { %v335_v10 = vld [vmem:[#allocation5 + $0x530] sm:$0xff] }
 0x2a7   :  { %v8675_v22 = vcombine.low %v331_v9, %v335_v10 }
 0x2a8   :  { %6996 = vmatpush1.bf16.msra.mxu0 %v8619_v15  ;;  %7324 = vmatpush1.bf16.msra.mxu1 %v8621_v18  ;;  %v8676_v15 = vcombine.high %v331_v9, %v335_v10  ;;  %v339_v18 = vld [vmem:[#allocation5 + $0x550] sm:$0xff]  ;;  %v384_v9 = vld [vmem:[#allocation5 + $0x6b8] sm:$0xff] }
 0x2a9   :  { %6997 = vmatprep.subr.bf16.mxu0 %v8628_v63  ;;  %7325 = vmatprep.subr.bf16.mxu1 %v8630_v20  ;;  %v343_v63 = vld [vmem:[#allocation5 + $0x570] sm:$0xff]  ;;  %v340_v20 = vld [vmem:[#allocation5 + $0x558] sm:$0xff] }
 0x2aa   :  { %v8684_v25 = vcombine.high %v339_v18, %v343_v63  ;;  %v8683_v33 = vcombine.low %v339_v18, %v343_v63  ;;  %v8685_v51 = vcombine.low %v340_v20, %v344_v21  ;;  %v392_v18 = vld [vmem:[#allocation5 + $0x6f8] sm:$0xff] }
 0x2ac   :  { %6998 = vmatpush1.bf16.msra.mxu0 %v8627_v28  ;;  %7326 = vmatpush1.bf16.msra.mxu1 %v8629_v29  ;;  %v8686_v28 = vcombine.high %v340_v20, %v344_v21  ;;  %v347_v29 = vld [vmem:[#allocation5 + $0x590] sm:$0xff] }
 0x2ad   :  { %6999 = vmatprep.subr.bf16.mxu0 %v8636_v30  ;;  %7327 = vmatprep.subr.bf16.mxu1 %v8638_v31  ;;  %v351_v30 = vld [vmem:[#allocation5 + $0x5b0] sm:$0xff]  ;;  %v348_v31 = vld [vmem:[#allocation5 + $0x598] sm:$0xff] }
 0x2ae   :  { %v8692_v36 = vcombine.high %v347_v29, %v351_v30  ;;  %v8691_v58 = vcombine.low %v347_v29, %v351_v30  ;;  %v8693_v45 = vcombine.low %v348_v31, %v352_v61  ;;  %v400_v29 = vld [vmem:[#allocation5 + $0x738] sm:$0xff] }
 0x2b0   :  { %7000 = vmatpush1.bf16.msra.mxu0 %v8635_v37  ;;  %7328 = vmatpush1.bf16.msra.mxu1 %v8637_v39  ;;  %v8694_v37 = vcombine.high %v348_v31, %v352_v61  ;;  %v355_v39 = vld [vmem:[#allocation5 + $0x5d0] sm:$0xff] }
 0x2b1   :  { %7010 = vmatprep.subr.bf16.mxu0 %v8644_v40  ;;  %7338 = vmatprep.subr.bf16.mxu1 %v8646_v41  ;;  %v359_v40 = vld [vmem:[#allocation5 + $0x5f0] sm:$0xff]  ;;  %v356_v41 = vld [vmem:[#allocation5 + $0x5d8] sm:$0xff] }
 0x2b2   :  { %v8700_v46 = vcombine.high %v355_v39, %v359_v40  ;;  %v8699_v16 = vcombine.low %v355_v39, %v359_v40  ;;  %v408_v39 = vld [vmem:[#allocation5 + $0x778] sm:$0xff] }
 0x2b3   :  { %7002 = vmatmul.mubr.bf16.vlgmr.msra.gmra.mrb[4].mxu0 %v10235_v19  ;;  %7330 = vmatmul.mubr.bf16.vlgmr.msra.gmra.mrb[4].mxu1 %v10235_v19  ;;  %v8661_v19 = vcombine.low %v316_v53, %v320_v54  ;;  %v8701_v53 = vcombine.low %v356_v41, %v360_v42 }
 0x2b4   :  { %7011 = vmatpush1.bf16.msra.mxu0 %v8643_v47  ;;  %7339 = vmatpush1.bf16.msra.mxu1 %v8645_v48  ;;  %v8702_v47 = vcombine.high %v356_v41, %v360_v42  ;;  %v363_v48 = vld [vmem:[#allocation5 + $0x610] sm:$0xff] }
 0x2b5   :  { %7012 = vmatprep.subr.bf16.mxu0 %v8652_v55  ;;  %7340 = vmatprep.subr.bf16.mxu1 %v8654_v49  ;;  %v367_v55 = vld [vmem:[#allocation5 + $0x630] sm:$0xff]  ;;  %v364_v49 = vld [vmem:[#allocation5 + $0x618] sm:$0xff] }
 0x2b6   :  { %7042 = vmatprep.mubr.bf16.mxu0 %v10237_v32  ;;  %7370 = vmatprep.mubr.bf16.mxu1 %v10237_v32  ;;  %v8678_v32 = vcombine.high %v332_v11, %v336_v12  ;;  %v8708_v54 = vcombine.high %v363_v48, %v367_v55  ;;  %v8707_v8 = vcombine.low %v363_v48, %v367_v55  ;;  %v416_v48 = vld [vmem:[#allocation5 + $0x7b8] sm:$0xff] }
 0x2b7   :  { %v8709_v2 = vcombine.low %v364_v49, %v368_v43 }
 0x2b8   :  { %7013 = vmatpush1.bf16.msra.mxu0 %v8651_v56  ;;  %7341 = vmatpush1.bf16.msra.mxu1 %v8653_v57  ;;  %v8710_v56 = vcombine.high %v364_v49, %v368_v43  ;;  %v371_v57 = vld [vmem:[#allocation5 + $0x650] sm:$0xff] }
 0x2b9   :  { %7014 = vmatprep.subr.bf16.mxu0 %v8660_v59  ;;  %7342 = vmatprep.subr.bf16.mxu1 %v8662_v44  ;;  %v375_v59 = vld [vmem:[#allocation5 + $0x670] sm:$0xff]  ;;  %v372_v44 = vld [vmem:[#allocation5 + $0x658] sm:$0xff] }
 0x2ba   :  { %v8716_v3 = vcombine.high %v371_v57, %v375_v59  ;;  %v8715_v10 = vcombine.low %v371_v57, %v375_v59  ;;  %v8717_v11 = vcombine.low %v372_v44, %v376_v0  ;;  %v424_v57 = vld [vmem:[#allocation5 + $0x7f8] sm:$0xff] }
 0x2bc   :  { %7015 = vmatpush1.bf16.msra.mxu0 %v8659_v4  ;;  %7343 = vmatpush1.bf16.msra.mxu1 %v8661_v19  ;;  %v8718_v4 = vcombine.high %v372_v44, %v376_v0  ;;  %v379_v19 = vld [vmem:[#allocation5 + $0x690] sm:$0xff] }
 0x2bd   :  { %7016 = vmatprep.subr.bf16.mxu0 %v8668_v27  ;;  %7344 = vmatprep.subr.bf16.mxu1 %v8670_v6  ;;  %v383_v27 = vld [vmem:[#allocation5 + $0x6b0] sm:$0xff]  ;;  %v380_v6 = vld [vmem:[#allocation5 + $0x698] sm:$0xff] }
 0x2be   :  { %v8724_v12 = vcombine.high %v379_v19, %v383_v27  ;;  %v8723_v63 = vcombine.low %v379_v19, %v383_v27  ;;  %v8725_v20 = vcombine.low %v380_v6, %v384_v9  ;;  %v432_v19 = vld [vmem:[#allocation5 + $0x838] sm:$0xff] }
 0x2c0   :  { %7017 = vmatpush1.bf16.msra.mxu0 %v8667_v13  ;;  %7345 = vmatpush1.bf16.msra.mxu1 %v8669_v14  ;;  %v8726_v13 = vcombine.high %v380_v6, %v384_v9  ;;  %v387_v14 = vld [vmem:[#allocation5 + $0x6d0] sm:$0xff] }
 0x2c1   :  { %7018 = vmatprep.subr.bf16.mxu0 %v8676_v15  ;;  %7346 = vmatprep.subr.bf16.mxu1 %v8678_v32  ;;  %v391_v15 = vld [vmem:[#allocation5 + $0x6f0] sm:$0xff]  ;;  %v388_v32 = vld [vmem:[#allocation5 + $0x6d8] sm:$0xff] }
 0x2c2   :  { %v8732_v21 = vcombine.high %v387_v14, %v391_v15  ;;  %v8731_v30 = vcombine.low %v387_v14, %v391_v15  ;;  %v8733_v31 = vcombine.low %v388_v32, %v392_v18  ;;  %v440_v14 = vld [vmem:[#allocation5 + $0x878] sm:$0xff] }
 0x2c4   :  { %7019 = vmatpush1.bf16.msra.mxu0 %v8675_v22  ;;  %7347 = vmatpush1.bf16.msra.mxu1 %v8677_v60  ;;  %v8734_v22 = vcombine.high %v388_v32, %v392_v18  ;;  %v395_v60 = vld [vmem:[#allocation5 + $0x710] sm:$0xff] }
 0x2c5   :  { %7020 = vmatprep.subr.bf16.mxu0 %v8684_v25  ;;  %7348 = vmatprep.subr.bf16.mxu1 %v8686_v28  ;;  %v399_v25 = vld [vmem:[#allocation5 + $0x730] sm:$0xff]  ;;  %v396_v28 = vld [vmem:[#allocation5 + $0x718] sm:$0xff] }
 0x2c6   :  { %v8740_v61 = vcombine.high %v395_v60, %v399_v25  ;;  %v8739_v40 = vcombine.low %v395_v60, %v399_v25  ;;  %v8741_v41 = vcombine.low %v396_v28, %v400_v29  ;;  %v448_v60 = vld [vmem:[#allocation5 + $0x8b8] sm:$0xff] }
 0x2c8   :  { %7021 = vmatpush1.bf16.msra.mxu0 %v8683_v33  ;;  %7349 = vmatpush1.bf16.msra.mxu1 %v8685_v51  ;;  %v8742_v33 = vcombine.high %v396_v28, %v400_v29  ;;  %v403_v51 = vld [vmem:[#allocation5 + $0x750] sm:$0xff] }
 0x2c9   :  { %7022 = vmatprep.subr.bf16.mxu0 %v8692_v36  ;;  %7350 = vmatprep.subr.bf16.mxu1 %v8694_v37  ;;  %v407_v36 = vld [vmem:[#allocation5 + $0x770] sm:$0xff]  ;;  %v404_v37 = vld [vmem:[#allocation5 + $0x758] sm:$0xff] }
 0x2ca   :  { %v8748_v42 = vcombine.high %v403_v51, %v407_v36  ;;  %v8747_v55 = vcombine.low %v403_v51, %v407_v36  ;;  %v8749_v49 = vcombine.low %v404_v37, %v408_v39  ;;  %v456_v51 = vld [vmem:[#allocation5 + $0x8f8] sm:$0xff] }
 0x2cc   :  { %7023 = vmatpush1.bf16.msra.mxu0 %v8691_v58  ;;  %7351 = vmatpush1.bf16.msra.mxu1 %v8693_v45  ;;  %v8750_v58 = vcombine.high %v404_v37, %v408_v39  ;;  %v411_v45 = vld [vmem:[#allocation5 + $0x790] sm:$0xff] }
 0x2cd   :  { %7024 = vmatprep.subr.bf16.mxu0 %v8700_v46  ;;  %7352 = vmatprep.subr.bf16.mxu1 %v8702_v47  ;;  %v415_v46 = vld [vmem:[#allocation5 + $0x7b0] sm:$0xff]  ;;  %v412_v47 = vld [vmem:[#allocation5 + $0x798] sm:$0xff] }
 0x2ce   :  { %v8756_v43 = vcombine.high %v411_v45, %v415_v46  ;;  %v8755_v59 = vcombine.low %v411_v45, %v415_v46  ;;  %v8757_v44 = vcombine.low %v412_v47, %v416_v48 }
 0x2d0   :  { %7025 = vmatpush1.bf16.msra.mxu0 %v8699_v16  ;;  %7353 = vmatpush1.bf16.msra.mxu1 %v8701_v53  ;;  %v8758_v16 = vcombine.high %v412_v47, %v416_v48  ;;  %v419_v53 = vld [vmem:[#allocation5 + $0x7d0] sm:$0xff] }
 0x2d1   :  { %7026 = vmatprep.subr.bf16.mxu0 %v8708_v54  ;;  %7354 = vmatprep.subr.bf16.mxu1 %v8710_v56  ;;  %v423_v54 = vld [vmem:[#allocation5 + $0x7f0] sm:$0xff]  ;;  %v420_v56 = vld [vmem:[#allocation5 + $0x7d8] sm:$0xff] }
 0x2d2   :  { %v8764_v0 = vcombine.high %v419_v53, %v423_v54  ;;  %v8763_v27 = vcombine.low %v419_v53, %v423_v54  ;;  %v8765_v6 = vcombine.low %v420_v56, %v424_v57  ;;  %v467_v48 = vld [vmem:[#allocation5 + $0x950] sm:$0xff] }
 0x2d4   :  { %7027 = vmatpush1.bf16.msra.mxu0 %v8707_v8  ;;  %7355 = vmatpush1.bf16.msra.mxu1 %v8709_v2  ;;  %v8766_v8 = vcombine.high %v420_v56, %v424_v57  ;;  %v427_v2 = vld [vmem:[#allocation5 + $0x810] sm:$0xff] }
 0x2d5   :  { %7028 = vmatprep.subr.bf16.mxu0 %v8716_v3  ;;  %7356 = vmatprep.subr.bf16.mxu1 %v8718_v4  ;;  %v431_v3 = vld [vmem:[#allocation5 + $0x830] sm:$0xff]  ;;  %v428_v4 = vld [vmem:[#allocation5 + $0x818] sm:$0xff] }
 0x2d6   :  { %v8772_v9 = vcombine.high %v427_v2, %v431_v3  ;;  %v8771_v15 = vcombine.low %v427_v2, %v431_v3  ;;  %v8773_v32 = vcombine.low %v428_v4, %v432_v19  ;;  %v475_v57 = vld [vmem:[#allocation5 + $0x990] sm:$0xff] }
 0x2d8   :  { %7029 = vmatpush1.bf16.msra.mxu0 %v8715_v10  ;;  %7357 = vmatpush1.bf16.msra.mxu1 %v8717_v11  ;;  %v8774_v10 = vcombine.high %v428_v4, %v432_v19  ;;  %v435_v11 = vld [vmem:[#allocation5 + $0x850] sm:$0xff] }
 0x2d9   :  { %7030 = vmatprep.subr.bf16.mxu0 %v8724_v12  ;;  %7358 = vmatprep.subr.bf16.mxu1 %v8726_v13  ;;  %v439_v12 = vld [vmem:[#allocation5 + $0x870] sm:$0xff]  ;;  %v436_v13 = vld [vmem:[#allocation5 + $0x858] sm:$0xff] }
 0x2da   :  { %v8780_v18 = vcombine.high %v435_v11, %v439_v12  ;;  %v8779_v25 = vcombine.low %v435_v11, %v439_v12  ;;  %v8781_v28 = vcombine.low %v436_v13, %v440_v14  ;;  %v483_v19 = vld [vmem:[#allocation5 + $0x9d0] sm:$0xff] }
 0x2dc   :  { %7031 = vmatpush1.bf16.msra.mxu0 %v8723_v63  ;;  %7359 = vmatpush1.bf16.msra.mxu1 %v8725_v20  ;;  %v8782_v63 = vcombine.high %v436_v13, %v440_v14  ;;  %v443_v20 = vld [vmem:[#allocation5 + $0x890] sm:$0xff] }
 0x2dd   :  { %7032 = vmatprep.subr.bf16.mxu0 %v8732_v21  ;;  %7360 = vmatprep.subr.bf16.mxu1 %v8734_v22  ;;  %v447_v21 = vld [vmem:[#allocation5 + $0x8b0] sm:$0xff]  ;;  %v444_v22 = vld [vmem:[#allocation5 + $0x898] sm:$0xff] }
 0x2de   :  { %v8788_v29 = vcombine.high %v443_v20, %v447_v21  ;;  %v8787_v36 = vcombine.low %v443_v20, %v447_v21  ;;  %v491_v14 = vld [vmem:[#allocation5 + $0xa10] sm:$0xff] }
 0x2e0   :  { %7033 = vmatpush1.bf16.msra.mxu0 %v8731_v30  ;;  %7361 = vmatpush1.bf16.msra.mxu1 %v8733_v31  ;;  %v8790_v30 = vcombine.high %v444_v22, %v448_v60  ;;  %v451_v31 = vld [vmem:[#allocation5 + $0x8d0] sm:$0xff] }
 0x2e1   :  { %7034 = vmatprep.subr.bf16.mxu0 %v8740_v61  ;;  %7362 = vmatprep.subr.bf16.mxu1 %v8742_v33  ;;  %v455_v61 = vld [vmem:[#allocation5 + $0x8f0] sm:$0xff]  ;;  %v452_v33 = vld [vmem:[#allocation5 + $0x8d8] sm:$0xff] }
 0x2e2   :  { %v8796_v37 = vcombine.high %v451_v31, %v455_v61  ;;  %v8798_v39 = vcombine.high %v452_v33, %v456_v51  ;;  %v8795_v45 = vcombine.low %v451_v31, %v455_v61  ;;  %v8797_v46 = vcombine.low %v452_v33, %v456_v51  ;;  %v507_v51 = vld [vmem:[#allocation5 + $0xa90] sm:$0xff] }
 0x2e4   :  { %7035 = vmatpush1.bf16.msra.mxu0 %v8739_v40  ;;  %7363 = vmatpush1.bf16.msra.mxu1 %v8741_v41  ;;  %v459_v40 = vld [vmem:[#allocation5 + $0x910] sm:$0xff] }
 0x2e5   :  { %7036 = vmatprep.subr.bf16.mxu0 %v8748_v42  ;;  %7364 = vmatprep.subr.bf16.mxu1 %v8750_v58  ;;  %v463_v41 = vld [vmem:[#allocation5 + $0x930] sm:$0xff]  ;;  %v460_v42 = vld [vmem:[#allocation5 + $0x918] sm:$0xff] }
 0x2e6   :  { %v464_v58 = vld [vmem:[#allocation5 + $0x938] sm:$0xff]  ;;  %v8804_v47 = vcombine.high %v459_v40, %v463_v41 }
 0x2e7   :  { %v8805_v53 = vcombine.low %v460_v42, %v464_v58 }
 0x2e8   :  { %7037 = vmatpush1.bf16.msra.mxu0 %v8747_v55  ;;  %7365 = vmatpush1.bf16.msra.mxu1 %v8749_v49  ;;  %v471_v55 = vld [vmem:[#allocation5 + $0x970] sm:$0xff]  ;;  %v468_v49 = vld [vmem:[#allocation5 + $0x958] sm:$0xff] }
 0x2e9   :  { %7038 = vmatprep.subr.bf16.mxu0 %v8756_v43  ;;  %7366 = vmatprep.subr.bf16.mxu1 %v8758_v16  ;;  %v472_v43 = vld [vmem:[#allocation5 + $0x978] sm:$0xff]  ;;  %v8803_v16 = vcombine.low %v459_v40, %v463_v41  ;;  %v8812_v54 = vcombine.high %v467_v48, %v471_v55 }
 0x2ea   :  { %v8814_v56 = vcombine.high %v468_v49, %v472_v43  ;;  %v8813_v2 = vcombine.low %v468_v49, %v472_v43  ;;  %v523_v43 = vld [vmem:[#allocation5 + $0xb10] sm:$0xff] }
 0x2ec   :  { %7039 = vmatpush1.bf16.msra.mxu0 %v8755_v59  ;;  %7367 = vmatpush1.bf16.msra.mxu1 %v8757_v44  ;;  %v479_v59 = vld [vmem:[#allocation5 + $0x9b0] sm:$0xff]  ;;  %v476_v44 = vld [vmem:[#allocation5 + $0x998] sm:$0xff] }
 0x2ed   :  { %7040 = vmatprep.subr.bf16.mxu0 %v8764_v0  ;;  %7368 = vmatprep.subr.bf16.mxu1 %v8766_v8  ;;  %v480_v0 = vld [vmem:[#allocation5 + $0x9b8] sm:$0xff]  ;;  %v8811_v8 = vcombine.low %v467_v48, %v471_v55  ;;  %v8820_v3 = vcombine.high %v475_v57, %v479_v59 }
 0x2ee   :  { %v8822_v4 = vcombine.high %v476_v44, %v480_v0  ;;  %v8821_v11 = vcombine.low %v476_v44, %v480_v0  ;;  %v531_v0 = vld [vmem:[#allocation5 + $0xb50] sm:$0xff] }
 0x2f0   :  { %7041 = vmatpush1.bf16.msra.mxu0 %v8763_v27  ;;  %7369 = vmatpush1.bf16.msra.mxu1 %v8765_v6  ;;  %v487_v27 = vld [vmem:[#allocation5 + $0x9f0] sm:$0xff]  ;;  %v484_v6 = vld [vmem:[#allocation5 + $0x9d8] sm:$0xff] }
 0x2f1   :  { %7051 = vmatprep.subr.bf16.mxu0 %v8772_v9  ;;  %7379 = vmatprep.subr.bf16.mxu1 %v8774_v10  ;;  %v488_v9 = vld [vmem:[#allocation5 + $0x9f8] sm:$0xff]  ;;  %v8819_v10 = vcombine.low %v475_v57, %v479_v59  ;;  %v8828_v12 = vcombine.high %v483_v19, %v487_v27 }
 0x2f2   :  { %v8830_v13 = vcombine.high %v484_v6, %v488_v9  ;;  %v8829_v20 = vcombine.low %v484_v6, %v488_v9  ;;  %v539_v9 = vld [vmem:[#allocation5 + $0xb90] sm:$0xff] }
 0x2f3   :  { %7043 = vmatmul.mubr.bf16.vlgmr.msra.gmra.mrb[4].mxu0 %v10248_v38  ;;  %7371 = vmatmul.mubr.bf16.vlgmr.msra.gmra.mrb[4].mxu1 %v10248_v38  ;;  %v8789_v38 = vcombine.low %v444_v22, %v448_v60  ;;  %v499_v60 = vld [vmem:[#allocation5 + $0xa50] sm:$0xff] }
 0x2f4   :  { %7052 = vmatpush1.bf16.msra.mxu0 %v8771_v15  ;;  %7380 = vmatpush1.bf16.msra.mxu1 %v8773_v32  ;;  %v495_v15 = vld [vmem:[#allocation5 + $0xa30] sm:$0xff]  ;;  %v492_v32 = vld [vmem:[#allocation5 + $0xa18] sm:$0xff] }
 0x2f5   :  { %7053 = vmatprep.subr.bf16.mxu0 %v8780_v18  ;;  %7381 = vmatprep.subr.bf16.mxu1 %v8782_v63  ;;  %v496_v18 = vld [vmem:[#allocation5 + $0xa38] sm:$0xff]  ;;  %v8827_v63 = vcombine.low %v483_v19, %v487_v27  ;;  %v8836_v21 = vcombine.high %v491_v14, %v495_v15 }
 0x2f6   :  { %7083 = vmatprep.mubr.bf16.mxu0 %v10250_v50  ;;  %7411 = vmatprep.mubr.bf16.mxu1 %v10250_v50  ;;  %v8806_v50 = vcombine.high %v460_v42, %v464_v58  ;;  %v8838_v22 = vcombine.high %v492_v32, %v496_v18  ;;  %v8837_v31 = vcombine.low %v492_v32, %v496_v18  ;;  %v515_v58 = vld [vmem:[#allocation5 + $0xad0] sm:$0xff] }
 0x2f7   :  { %v547_v18 = vld [vmem:[#allocation5 + $0xbd0] sm:$0xff] }
 0x2f8   :  { %7054 = vmatpush1.bf16.msra.mxu0 %v8779_v25  ;;  %7382 = vmatpush1.bf16.msra.mxu1 %v8781_v28  ;;  %v503_v25 = vld [vmem:[#allocation5 + $0xa70] sm:$0xff]  ;;  %v500_v28 = vld [vmem:[#allocation5 + $0xa58] sm:$0xff] }
 0x2f9   :  { %7055 = vmatprep.subr.bf16.mxu0 %v8788_v29  ;;  %7383 = vmatprep.subr.bf16.mxu1 %v8790_v30  ;;  %v504_v29 = vld [vmem:[#allocation5 + $0xa78] sm:$0xff]  ;;  %v8835_v30 = vcombine.low %v491_v14, %v495_v15  ;;  %v8844_v61 = vcombine.high %v499_v60, %v503_v25 }
 0x2fa   :  { %v8846_v33 = vcombine.high %v500_v28, %v504_v29  ;;  %v8845_v40 = vcombine.low %v500_v28, %v504_v29  ;;  %v555_v29 = vld [vmem:[#allocation5 + $0xc10] sm:$0xff] }
 0x2fc   :  { %7056 = vmatpush1.bf16.msra.mxu0 %v8787_v36  ;;  %7384 = vmatpush1.bf16.msra.mxu1 %v8789_v38  ;;  %v511_v36 = vld [vmem:[#allocation5 + $0xab0] sm:$0xff]  ;;  %v508_v38 = vld [vmem:[#allocation5 + $0xa98] sm:$0xff] }
 0x2fd   :  { %7057 = vmatprep.subr.bf16.mxu0 %v8796_v37  ;;  %7385 = vmatprep.subr.bf16.mxu1 %v8798_v39  ;;  %v512_v37 = vld [vmem:[#allocation5 + $0xab8] sm:$0xff]  ;;  %v8843_v39 = vcombine.low %v499_v60, %v503_v25  ;;  %v8852_v41 = vcombine.high %v507_v51, %v511_v36 }
 0x2fe   :  { %v8854_v42 = vcombine.high %v508_v38, %v512_v37  ;;  %v8853_v48 = vcombine.low %v508_v38, %v512_v37  ;;  %v563_v37 = vld [vmem:[#allocation5 + $0xc50] sm:$0xff] }
 0x300   :  { %7058 = vmatpush1.bf16.msra.mxu0 %v8795_v45  ;;  %7386 = vmatpush1.bf16.msra.mxu1 %v8797_v46  ;;  %v519_v45 = vld [vmem:[#allocation5 + $0xaf0] sm:$0xff]  ;;  %v516_v46 = vld [vmem:[#allocation5 + $0xad8] sm:$0xff] }
 0x301   :  { %7059 = vmatprep.subr.bf16.mxu0 %v8804_v47  ;;  %7387 = vmatprep.subr.bf16.mxu1 %v8806_v50  ;;  %v520_v47 = vld [vmem:[#allocation5 + $0xaf8] sm:$0xff]  ;;  %v8851_v50 = vcombine.low %v507_v51, %v511_v36  ;;  %v8860_v55 = vcombine.high %v515_v58, %v519_v45 }
 0x302   :  { %v8862_v49 = vcombine.high %v516_v46, %v520_v47  ;;  %v8861_v57 = vcombine.low %v516_v46, %v520_v47  ;;  %v571_v47 = vld [vmem:[#allocation5 + $0xc90] sm:$0xff] }
 0x304   :  { %7060 = vmatpush1.bf16.msra.mxu0 %v8803_v16  ;;  %7388 = vmatpush1.bf16.msra.mxu1 %v8805_v53  ;;  %v527_v16 = vld [vmem:[#allocation5 + $0xb30] sm:$0xff]  ;;  %v524_v53 = vld [vmem:[#allocation5 + $0xb18] sm:$0xff] }
 0x305   :  { %7061 = vmatprep.subr.bf16.mxu0 %v8812_v54  ;;  %7389 = vmatprep.subr.bf16.mxu1 %v8814_v56  ;;  %v528_v54 = vld [vmem:[#allocation5 + $0xb38] sm:$0xff]  ;;  %v8859_v56 = vcombine.low %v515_v58, %v519_v45  ;;  %v8868_v59 = vcombine.high %v523_v43, %v527_v16 }
 0x306   :  { %v8870_v44 = vcombine.high %v524_v53, %v528_v54  ;;  %v8869_v19 = vcombine.low %v524_v53, %v528_v54  ;;  %v579_v54 = vld [vmem:[#allocation5 + $0xcd0] sm:$0xff] }
 0x308   :  { %7062 = vmatpush1.bf16.msra.mxu0 %v8811_v8  ;;  %7390 = vmatpush1.bf16.msra.mxu1 %v8813_v2  ;;  %v535_v8 = vld [vmem:[#allocation5 + $0xb70] sm:$0xff]  ;;  %v532_v2 = vld [vmem:[#allocation5 + $0xb58] sm:$0xff] }
 0x309   :  { %7063 = vmatprep.subr.bf16.mxu0 %v8820_v3  ;;  %7391 = vmatprep.subr.bf16.mxu1 %v8822_v4  ;;  %v536_v3 = vld [vmem:[#allocation5 + $0xb78] sm:$0xff]  ;;  %v8867_v4 = vcombine.low %v523_v43, %v527_v16  ;;  %v8876_v27 = vcombine.high %v531_v0, %v535_v8 }
 0x30a   :  { %v8878_v6 = vcombine.high %v532_v2, %v536_v3  ;;  %v8877_v14 = vcombine.low %v532_v2, %v536_v3  ;;  %v587_v2 = vld [vmem:[#allocation5 + $0xd10] sm:$0xff] }
 0x30b   :  { %v591_v3 = vld [vmem:[#allocation5 + $0xd30] sm:$0xff] }
 0x30c   :  { %7064 = vmatpush1.bf16.msra.mxu0 %v8819_v10  ;;  %7392 = vmatpush1.bf16.msra.mxu1 %v8821_v11  ;;  %v543_v10 = vld [vmem:[#allocation5 + $0xbb0] sm:$0xff]  ;;  %v540_v11 = vld [vmem:[#allocation5 + $0xb98] sm:$0xff] }
 0x30d   :  { %7065 = vmatprep.subr.bf16.mxu0 %v8828_v12  ;;  %7393 = vmatprep.subr.bf16.mxu1 %v8830_v13  ;;  %v544_v12 = vld [vmem:[#allocation5 + $0xbb8] sm:$0xff]  ;;  %v8875_v13 = vcombine.low %v531_v0, %v535_v8  ;;  %v8884_v15 = vcombine.high %v539_v9, %v543_v10 }
 0x30e   :  { %v8886_v32 = vcombine.high %v540_v11, %v544_v12  ;;  %v8885_v60 = vcombine.low %v540_v11, %v544_v12  ;;  %v599_v11 = vld [vmem:[#allocation5 + $0xd70] sm:$0xff]  ;;  %v596_v12 = vld [vmem:[#allocation5 + $0xd58] sm:$0xff] }
 0x310   :  { %7066 = vmatpush1.bf16.msra.mxu0 %v8827_v63  ;;  %7394 = vmatpush1.bf16.msra.mxu1 %v8829_v20  ;;  %v551_v63 = vld [vmem:[#allocation5 + $0xbf0] sm:$0xff]  ;;  %v548_v20 = vld [vmem:[#allocation5 + $0xbd8] sm:$0xff] }
 0x311   :  { %7067 = vmatprep.subr.bf16.mxu0 %v8836_v21  ;;  %7395 = vmatprep.subr.bf16.mxu1 %v8838_v22  ;;  %v552_v21 = vld [vmem:[#allocation5 + $0xbf8] sm:$0xff]  ;;  %v8883_v22 = vcombine.low %v539_v9, %v543_v10  ;;  %v8892_v25 = vcombine.high %v547_v18, %v551_v63  ;;  %v8932_v9 = vcombine.high %v587_v2, %v591_v3  ;;  %v595_v10 = vld [vmem:[#allocation5 + $0xd50] sm:$0xff] }
 0x312   :  { %v8894_v28 = vcombine.high %v548_v20, %v552_v21  ;;  %v8893_v51 = vcombine.low %v548_v20, %v552_v21  ;;  %v607_v20 = vld [vmem:[#allocation5 + $0xdb0] sm:$0xff]  ;;  %v604_v21 = vld [vmem:[#allocation5 + $0xd98] sm:$0xff] }
 0x314   :  { %7068 = vmatpush1.bf16.msra.mxu0 %v8835_v30  ;;  %7396 = vmatpush1.bf16.msra.mxu1 %v8837_v31  ;;  %v559_v30 = vld [vmem:[#allocation5 + $0xc30] sm:$0xff]  ;;  %v556_v31 = vld [vmem:[#allocation5 + $0xc18] sm:$0xff] }
 0x315   :  { %7069 = vmatprep.subr.bf16.mxu0 %v8844_v61  ;;  %7397 = vmatprep.subr.bf16.mxu1 %v8846_v33  ;;  %v560_v61 = vld [vmem:[#allocation5 + $0xc38] sm:$0xff]  ;;  %v8891_v33 = vcombine.low %v547_v18, %v551_v63  ;;  %v8900_v36 = vcombine.high %v555_v29, %v559_v30  ;;  %v603_v63 = vld [vmem:[#allocation5 + $0xd90] sm:$0xff] }
 0x316   :  { %v8902_v38 = vcombine.high %v556_v31, %v560_v61  ;;  %v8901_v58 = vcombine.low %v556_v31, %v560_v61  ;;  %v611_v31 = vld [vmem:[#allocation5 + $0xdd0] sm:$0xff] }
 0x317   :  { %v615_v61 = vld [vmem:[#allocation5 + $0xdf0] sm:$0xff] }
 0x318   :  { %7070 = vmatpush1.bf16.msra.mxu0 %v8843_v39  ;;  %7398 = vmatpush1.bf16.msra.mxu1 %v8845_v40  ;;  %v567_v39 = vld [vmem:[#allocation5 + $0xc70] sm:$0xff]  ;;  %v564_v40 = vld [vmem:[#allocation5 + $0xc58] sm:$0xff] }
 0x319   :  { %7071 = vmatprep.subr.bf16.mxu0 %v8852_v41  ;;  %7399 = vmatprep.subr.bf16.mxu1 %v8854_v42  ;;  %v568_v41 = vld [vmem:[#allocation5 + $0xc78] sm:$0xff]  ;;  %v8899_v42 = vcombine.low %v555_v29, %v559_v30  ;;  %v8908_v45 = vcombine.high %v563_v37, %v567_v39 }
 0x31a   :  { %v8910_v46 = vcombine.high %v564_v40, %v568_v41  ;;  %v8909_v43 = vcombine.low %v564_v40, %v568_v41  ;;  %v8947_v40 = vcombine.low %v603_v63, %v607_v20 }
 0x31c   :  { %7072 = vmatpush1.bf16.msra.mxu0 %v8851_v50  ;;  %7400 = vmatpush1.bf16.msra.mxu1 %v8853_v48  ;;  %v575_v50 = vld [vmem:[#allocation5 + $0xcb0] sm:$0xff]  ;;  %v572_v48 = vld [vmem:[#allocation5 + $0xc98] sm:$0xff] }
 0x31d   :  { %7073 = vmatprep.subr.bf16.mxu0 %v8860_v55  ;;  %7401 = vmatprep.subr.bf16.mxu1 %v8862_v49  ;;  %v576_v55 = vld [vmem:[#allocation5 + $0xcb8] sm:$0xff]  ;;  %v8907_v49 = vcombine.low %v563_v37, %v567_v39  ;;  %v8916_v16 = vcombine.high %v571_v47, %v575_v50 }
 0x31e   :  { %v8918_v53 = vcombine.high %v572_v48, %v576_v55 }
 0x320   :  { %7074 = vmatpush1.bf16.msra.mxu0 %v8859_v56  ;;  %7402 = vmatpush1.bf16.msra.mxu1 %v8861_v57  ;;  %v583_v56 = vld [vmem:[#allocation5 + $0xcf0] sm:$0xff]  ;;  %v580_v57 = vld [vmem:[#allocation5 + $0xcd8] sm:$0xff] }
 0x321   :  { %7075 = vmatprep.subr.bf16.mxu0 %v8868_v59  ;;  %7403 = vmatprep.subr.bf16.mxu1 %v8870_v44  ;;  %v584_v59 = vld [vmem:[#allocation5 + $0xcf8] sm:$0xff]  ;;  %v8915_v44 = vcombine.low %v571_v47, %v575_v50  ;;  %v8924_v0 = vcombine.high %v579_v54, %v583_v56  ;;  %v619_v50 = vld [vmem:[#allocation5 + $0xe10] sm:$0xff] }
 0x322   :  { %v8926_v8 = vcombine.high %v580_v57, %v584_v59 }
 0x324   :  { %7076 = vmatpush1.bf16.msra.mxu0 %v8867_v4  ;;  %7404 = vmatpush1.bf16.msra.mxu1 %v8869_v19  ;;  %v588_v4 = vld [vmem:[#allocation5 + $0xd18] sm:$0xff] }
 0x325   :  { %7077 = vmatprep.subr.bf16.mxu0 %v8876_v27  ;;  %7405 = vmatprep.subr.bf16.mxu1 %v8878_v6  ;;  %v592_v19 = vld [vmem:[#allocation5 + $0xd38] sm:$0xff]  ;;  %v8923_v27 = vcombine.low %v579_v54, %v583_v56  ;;  %v8925_v6 = vcombine.low %v580_v57, %v584_v59  ;;  %v627_v56 = vld [vmem:[#allocation5 + $0xe50] sm:$0xff] }
 0x326   :  { %v631_v57 = vld [vmem:[#allocation5 + $0xe70] sm:$0xff]  ;;  %v628_v59 = vld [vmem:[#allocation5 + $0xe58] sm:$0xff] }
 0x328   :  { %7078 = vmatpush1.bf16.msra.mxu0 %v8875_v13  ;;  %7406 = vmatpush1.bf16.msra.mxu1 %v8877_v14  ;;  %v600_v13 = vld [vmem:[#allocation5 + $0xd78] sm:$0xff]  ;;  %v8931_v14 = vcombine.low %v587_v2, %v591_v3  ;;  %v635_v3 = vld [vmem:[#allocation5 + $0xe90] sm:$0xff] }
 0x329   :  { %7079 = vmatprep.subr.bf16.mxu0 %v8884_v15  ;;  %7407 = vmatprep.subr.bf16.mxu1 %v8886_v32  ;;  %v8933_v15 = vcombine.low %v588_v4, %v592_v19  ;;  %v8940_v32 = vcombine.high %v595_v10, %v599_v11  ;;  %v8942_v18 = vcombine.high %v596_v12, %v600_v13 }
 0x32c   :  { %7080 = vmatpush1.bf16.msra.mxu0 %v8883_v22  ;;  %7408 = vmatpush1.bf16.msra.mxu1 %v8885_v60  ;;  %v608_v22 = vld [vmem:[#allocation5 + $0xdb8] sm:$0xff]  ;;  %v8939_v60 = vcombine.low %v595_v10, %v599_v11  ;;  %v643_v11 = vld [vmem:[#allocation5 + $0xed0] sm:$0xff] }
 0x32d   :  { %7081 = vmatprep.subr.bf16.mxu0 %v8892_v25  ;;  %7409 = vmatprep.subr.bf16.mxu1 %v8894_v28  ;;  %v8941_v25 = vcombine.low %v596_v12, %v600_v13  ;;  %v8948_v28 = vcombine.high %v603_v63, %v607_v20  ;;  %v8950_v30 = vcombine.high %v604_v21, %v608_v22  ;;  %v647_v12 = vld [vmem:[#allocation5 + $0xef0] sm:$0xff]  ;;  %v644_v13 = vld [vmem:[#allocation5 + $0xed8] sm:$0xff] }
 0x32e   :  { %v651_v20 = vld [vmem:[#allocation5 + $0xf10] sm:$0xff] }
 0x330   :  { %7082 = vmatpush1.bf16.msra.mxu0 %v8891_v33  ;;  %7410 = vmatpush1.bf16.msra.mxu1 %v8893_v51 }
 0x331   :  { %7092 = vmatprep.subr.bf16.mxu0 %v8900_v36  ;;  %7420 = vmatprep.subr.bf16.mxu1 %v8902_v38  ;;  %v612_v36 = vld [vmem:[#allocation5 + $0xdd8] sm:$0xff] }
 0x332   :  { %v616_v38 = vld [vmem:[#allocation5 + $0xdf8] sm:$0xff] }
 0x333   :  { %7084 = vmatmul.mubr.bf16.vlgmr.msra.gmra.mrb[4].mxu0 %v10263_v62  ;;  %7412 = vmatmul.mubr.bf16.vlgmr.msra.gmra.mrb[4].mxu1 %v10263_v62  ;;  %v8917_v62 = vcombine.low %v572_v48, %v576_v55  ;;  %v8958_v47 = vcombine.high %v612_v36, %v616_v38  ;;  %v623_v48 = vld [vmem:[#allocation5 + $0xe30] sm:$0xff]  ;;  %v620_v55 = vld [vmem:[#allocation5 + $0xe18] sm:$0xff] }
 0x334   :  { %7093 = vmatpush1.bf16.msra.mxu0 %v8899_v42  ;;  %7421 = vmatpush1.bf16.msra.mxu1 %v8901_v58  ;;  %v8949_v58 = vcombine.low %v604_v21, %v608_v22  ;;  %v655_v21 = vld [vmem:[#allocation5 + $0xf30] sm:$0xff]  ;;  %v652_v22 = vld [vmem:[#allocation5 + $0xf18] sm:$0xff] }
 0x335   :  { %7094 = vmatprep.subr.bf16.mxu0 %v8908_v45  ;;  %7422 = vmatprep.subr.bf16.mxu1 %v8910_v46  ;;  %v8956_v45 = vcombine.high %v611_v31, %v615_v61 }
 0x336   :  { %7124 = vmatprep.mubr.bf16.mxu0 %v10265_v7  ;;  %7452 = vmatprep.mubr.bf16.mxu1 %v10265_v7  ;;  %v8934_v7 = vcombine.high %v588_v4, %v592_v19  ;;  %v639_v4 = vld [vmem:[#allocation5 + $0xeb0] sm:$0xff]  ;;  %v636_v19 = vld [vmem:[#allocation5 + $0xe98] sm:$0xff] }
 0x338   :  { %7095 = vmatpush1.bf16.msra.mxu0 %v8907_v49  ;;  %7423 = vmatpush1.bf16.msra.mxu1 %v8909_v43  ;;  %v624_v49 = vld [vmem:[#allocation5 + $0xe38] sm:$0xff]  ;;  %v8955_v43 = vcombine.low %v611_v31, %v615_v61  ;;  %v659_v61 = vld [vmem:[#allocation5 + $0xf50] sm:$0xff] }
 0x339   :  { %7096 = vmatprep.subr.bf16.mxu0 %v8916_v16  ;;  %7424 = vmatprep.subr.bf16.mxu1 %v8918_v53  ;;  %v8957_v16 = vcombine.low %v612_v36, %v616_v38  ;;  %v8964_v53 = vcombine.high %v619_v50, %v623_v48  ;;  %v8966_v54 = vcombine.high %v620_v55, %v624_v49  ;;  %v663_v36 = vld [vmem:[#allocation5 + $0xf70] sm:$0xff]  ;;  %v660_v38 = vld [vmem:[#allocation5 + $0xf58] sm:$0xff] }
 0x33c   :  { %7097 = vmatpush1.bf16.msra.mxu0 %v8915_v44  ;;  %7425 = vmatpush1.bf16.msra.mxu1 %v8917_v62  ;;  %v632_v44 = vld [vmem:[#allocation5 + $0xe78] sm:$0xff]  ;;  %v8963_v62 = vcombine.low %v619_v50, %v623_v48  ;;  %v9003_v48 = vcombine.low %v659_v61, %v663_v36 }
 0x33d   :  { %7098 = vmatprep.subr.bf16.mxu0 %v8924_v0  ;;  %7426 = vmatprep.subr.bf16.mxu1 %v8926_v8  ;;  %v8965_v0 = vcombine.low %v620_v55, %v624_v49  ;;  %v8972_v8 = vcombine.high %v627_v56, %v631_v57  ;;  %v8974_v2 = vcombine.high %v628_v59, %v632_v44  ;;  %v672_v50 = vld [vmem:[#allocation5 + $0xfb8] sm:$0xff] }
 0x340   :  { %7099 = vmatpush1.bf16.msra.mxu0 %v8923_v27  ;;  %7427 = vmatpush1.bf16.msra.mxu1 %v8925_v6  ;;  %v640_v27 = vld [vmem:[#allocation5 + $0xeb8] sm:$0xff]  ;;  %v8971_v6 = vcombine.low %v627_v56, %v631_v57 }
 0x341   :  { %7100 = vmatprep.subr.bf16.mxu0 %v8932_v9  ;;  %7428 = vmatprep.subr.bf16.mxu1 %v8934_v7  ;;  %v8973_v9 = vcombine.low %v628_v59, %v632_v44  ;;  %v8980_v7 = vcombine.high %v635_v3, %v639_v4  ;;  %v8982_v10 = vcombine.high %v636_v19, %v640_v27  ;;  %v680_v56 = vld [vmem:[#allocation5 + $0xff8] sm:$0xff] }
 0x344   :  { %7101 = vmatpush1.bf16.msra.mxu0 %v8931_v14  ;;  %7429 = vmatpush1.bf16.msra.mxu1 %v8933_v15  ;;  %v648_v14 = vld [vmem:[#allocation5 + $0xef8] sm:$0xff]  ;;  %v8979_v15 = vcombine.low %v635_v3, %v639_v4 }
 0x345   :  { %7102 = vmatprep.subr.bf16.mxu0 %v8940_v32  ;;  %7430 = vmatprep.subr.bf16.mxu1 %v8942_v18  ;;  %v8981_v32 = vcombine.low %v636_v19, %v640_v27  ;;  %v8988_v18 = vcombine.high %v643_v11, %v647_v12  ;;  %v8990_v63 = vcombine.high %v644_v13, %v648_v14  ;;  %v688_v3 = vld [vmem:[#allocation5 + $0x1038] sm:$0xff] }
 0x346   :  { %v10357_v29 = vpop.f32.mrb[0].mxu0  ;;  %v10359_v33 = vpop.f32.mrb[0].mxu1 }
 0x347   :  { %v10361_v51 = vpop.f32.mrb[1].mxu0  ;;  %v10363_v37 = vpop.f32.mrb[1].mxu1 }
 0x348   :  { %v6638_v39 = vpop.f32.mrb[2].mxu0  ;;  %7103 = vmatpush1.bf16.msra.mxu0 %v8939_v60  ;;  %v6966_v41 = vpop.f32.mrb[2].mxu1  ;;  %7431 = vmatpush1.bf16.msra.mxu1 %v8941_v25  ;;  %v656_v60 = vld [vmem:[#allocation5 + $0xf38] sm:$0xff]  ;;  %v8987_v25 = vcombine.low %v643_v11, %v647_v12 }
 0x349   :  { %v6639_v42 = vpop.f32.mrb[3].mxu0  ;;  %7104 = vmatprep.subr.bf16.mxu0 %v8948_v28  ;;  %v6967_v46 = vpop.f32.mrb[3].mxu1  ;;  %7432 = vmatprep.subr.bf16.mxu1 %v8950_v30  ;;  %v8989_v28 = vcombine.low %v644_v13, %v648_v14  ;;  %v8996_v30 = vcombine.high %v651_v20, %v655_v21  ;;  %v8998_v31 = vcombine.high %v652_v22, %v656_v60  ;;  %v664_v39 = vld [vmem:[#allocation5 + $0xf78] sm:$0xff] }
 0x34a   :  { %v8997_v41 = vcombine.low %v652_v22, %v656_v60  ;;  %v9004_v42 = vcombine.high %v659_v61, %v663_v36  ;;  %v671_v46 = vld [vmem:[#allocation5 + $0xfb0] sm:$0xff]  ;;  %v9005_v55 = vcombine.low %v660_v38, %v664_v39  ;;  %v696_v11 = vld [vmem:[#allocation5 + $0x1078] sm:$0xff] }
 0x34b   :  { %v712_v61 = vld [vmem:[#allocation5 + $0x10f8] sm:$0xff] }
 0x34c   :  { %7105 = vmatpush1.bf16.msra.mxu0 %v8947_v40  ;;  %7433 = vmatpush1.bf16.msra.mxu1 %v8949_v58  ;;  %v8995_v40 = vcombine.low %v651_v20, %v655_v21  ;;  %v9006_v58 = vcombine.high %v660_v38, %v664_v39  ;;  %v704_v20 = vld [vmem:[#allocation5 + $0x10b8] sm:$0xff] }
 0x34d   :  { %7106 = vmatprep.subr.bf16.mxu0 %v8956_v45  ;;  %7434 = vmatprep.subr.bf16.mxu1 %v8958_v47  ;;  %v667_v45 = vld [vmem:[#allocation5 + $0xf90] sm:$0xff]  ;;  %v668_v47 = vld [vmem:[#allocation5 + $0xf98] sm:$0xff] }
 0x34e   :  { %v9012_v49 = vcombine.high %v667_v45, %v671_v46  ;;  %v9011_v57 = vcombine.low %v667_v45, %v671_v46  ;;  %v9013_v59 = vcombine.low %v668_v47, %v672_v50 }
 0x350   :  { %7107 = vmatpush1.bf16.msra.mxu0 %v8955_v43  ;;  %7435 = vmatpush1.bf16.msra.mxu1 %v8957_v16  ;;  %v9014_v43 = vcombine.high %v668_v47, %v672_v50  ;;  %v675_v16 = vld [vmem:[#allocation5 + $0xfd0] sm:$0xff] }
 0x351   :  { %7108 = vmatprep.subr.bf16.mxu0 %v8964_v53  ;;  %7436 = vmatprep.subr.bf16.mxu1 %v8966_v54  ;;  %v679_v53 = vld [vmem:[#allocation5 + $0xff0] sm:$0xff]  ;;  %v676_v54 = vld [vmem:[#allocation5 + $0xfd8] sm:$0xff] }
 0x352   :  { %v9020_v44 = vcombine.high %v675_v16, %v679_v53  ;;  %v9019_v4 = vcombine.low %v675_v16, %v679_v53  ;;  %v9021_v19 = vcombine.low %v676_v54, %v680_v56  ;;  %v723_v50 = vld [vmem:[#allocation5 + $0x1150] sm:$0xff] }
 0x354   :  { %7109 = vmatpush1.bf16.msra.mxu0 %v8963_v62  ;;  %7437 = vmatpush1.bf16.msra.mxu1 %v8965_v0  ;;  %v9022_v62 = vcombine.high %v676_v54, %v680_v56  ;;  %v683_v0 = vld [vmem:[#allocation5 + $0x1010] sm:$0xff] }
 0x355   :  { %7110 = vmatprep.subr.bf16.mxu0 %v8972_v8  ;;  %7438 = vmatprep.subr.bf16.mxu1 %v8974_v2  ;;  %v687_v8 = vld [vmem:[#allocation5 + $0x1030] sm:$0xff]  ;;  %v684_v2 = vld [vmem:[#allocation5 + $0x1018] sm:$0xff] }
 0x356   :  { %v9028_v27 = vcombine.high %v683_v0, %v687_v8  ;;  %v9027_v12 = vcombine.low %v683_v0, %v687_v8  ;;  %v9029_v13 = vcombine.low %v684_v2, %v688_v3  ;;  %v731_v56 = vld [vmem:[#allocation5 + $0x1190] sm:$0xff] }
 0x358   :  { %7111 = vmatpush1.bf16.msra.mxu0 %v8971_v6  ;;  %7439 = vmatpush1.bf16.msra.mxu1 %v8973_v9  ;;  %v9030_v6 = vcombine.high %v684_v2, %v688_v3  ;;  %v691_v9 = vld [vmem:[#allocation5 + $0x1050] sm:$0xff] }
 0x359   :  { %7112 = vmatprep.subr.bf16.mxu0 %v8980_v7  ;;  %7440 = vmatprep.subr.bf16.mxu1 %v8982_v10  ;;  %v695_v7 = vld [vmem:[#allocation5 + $0x1070] sm:$0xff]  ;;  %v692_v10 = vld [vmem:[#allocation5 + $0x1058] sm:$0xff] }
 0x35a   :  { %v9036_v14 = vcombine.high %v691_v9, %v695_v7  ;;  %v9035_v21 = vcombine.low %v691_v9, %v695_v7  ;;  %v9037_v22 = vcombine.low %v692_v10, %v696_v11  ;;  %v739_v3 = vld [vmem:[#allocation5 + $0x11d0] sm:$0xff] }
 0x35c   :  { %7113 = vmatpush1.bf16.msra.mxu0 %v8979_v15  ;;  %7441 = vmatpush1.bf16.msra.mxu1 %v8981_v32  ;;  %v9038_v15 = vcombine.high %v692_v10, %v696_v11  ;;  %v699_v32 = vld [vmem:[#allocation5 + $0x1090] sm:$0xff] }
 0x35d   :  { %7114 = vmatprep.subr.bf16.mxu0 %v8988_v18  ;;  %7442 = vmatprep.subr.bf16.mxu1 %v8990_v63  ;;  %v703_v18 = vld [vmem:[#allocation5 + $0x10b0] sm:$0xff]  ;;  %v700_v63 = vld [vmem:[#allocation5 + $0x1098] sm:$0xff] }
 0x35e   :  { %v9044_v60 = vcombine.high %v699_v32, %v703_v18  ;;  %v9043_v36 = vcombine.low %v699_v32, %v703_v18  ;;  %v747_v11 = vld [vmem:[#allocation5 + $0x1210] sm:$0xff] }
 0x360   :  { %7115 = vmatpush1.bf16.msra.mxu0 %v8987_v25  ;;  %7443 = vmatpush1.bf16.msra.mxu1 %v8989_v28  ;;  %v9046_v25 = vcombine.high %v700_v63, %v704_v20  ;;  %v707_v28 = vld [vmem:[#allocation5 + $0x10d0] sm:$0xff] }
 0x361   :  { %7116 = vmatprep.subr.bf16.mxu0 %v8996_v30  ;;  %7444 = vmatprep.subr.bf16.mxu1 %v8998_v31  ;;  %v711_v30 = vld [vmem:[#allocation5 + $0x10f0] sm:$0xff]  ;;  %v708_v31 = vld [vmem:[#allocation5 + $0x10d8] sm:$0xff] }
 0x362   :  { %v9052_v38 = vcombine.high %v707_v28, %v711_v30  ;;  %v9054_v39 = vcombine.high %v708_v31, %v712_v61  ;;  %v9051_v45 = vcombine.low %v707_v28, %v711_v30  ;;  %v9053_v46 = vcombine.low %v708_v31, %v712_v61  ;;  %v763_v61 = vld [vmem:[#allocation5 + $0x1290] sm:$0xff] }
 0x364   :  { %7117 = vmatpush1.bf16.msra.mxu0 %v8995_v40  ;;  %7445 = vmatpush1.bf16.msra.mxu1 %v8997_v41  ;;  %v715_v40 = vld [vmem:[#allocation5 + $0x1110] sm:$0xff] }
 0x365   :  { %7118 = vmatprep.subr.bf16.mxu0 %v9004_v42  ;;  %7446 = vmatprep.subr.bf16.mxu1 %v9006_v58  ;;  %v719_v41 = vld [vmem:[#allocation5 + $0x1130] sm:$0xff]  ;;  %v716_v42 = vld [vmem:[#allocation5 + $0x1118] sm:$0xff] }
 0x366   :  { %v720_v58 = vld [vmem:[#allocation5 + $0x1138] sm:$0xff]  ;;  %v9060_v47 = vcombine.high %v715_v40, %v719_v41 }
 0x367   :  { %v9061_v16 = vcombine.low %v716_v42, %v720_v58 }
 0x368   :  { %7119 = vmatpush1.bf16.msra.mxu0 %v9003_v48  ;;  %7447 = vmatpush1.bf16.msra.mxu1 %v9005_v55  ;;  %v727_v48 = vld [vmem:[#allocation5 + $0x1170] sm:$0xff]  ;;  %v724_v55 = vld [vmem:[#allocation5 + $0x1158] sm:$0xff] }
 0x369   :  { %7120 = vmatprep.subr.bf16.mxu0 %v9012_v49  ;;  %7448 = vmatprep.subr.bf16.mxu1 %v9014_v43  ;;  %v728_v49 = vld [vmem:[#allocation5 + $0x1178] sm:$0xff]  ;;  %v9059_v43 = vcombine.low %v715_v40, %v719_v41  ;;  %v9068_v53 = vcombine.high %v723_v50, %v727_v48 }
 0x36a   :  { %v9070_v54 = vcombine.high %v724_v55, %v728_v49  ;;  %v9069_v0 = vcombine.low %v724_v55, %v728_v49  ;;  %v779_v49 = vld [vmem:[#allocation5 + $0x1310] sm:$0xff] }
 0x36c   :  { %7121 = vmatpush1.bf16.msra.mxu0 %v9011_v57  ;;  %7449 = vmatpush1.bf16.msra.mxu1 %v9013_v59  ;;  %v735_v57 = vld [vmem:[#allocation5 + $0x11b0] sm:$0xff]  ;;  %v732_v59 = vld [vmem:[#allocation5 + $0x1198] sm:$0xff] }
 0x36d   :  { %7122 = vmatprep.subr.bf16.mxu0 %v9020_v44  ;;  %7450 = vmatprep.subr.bf16.mxu1 %v9022_v62  ;;  %v736_v44 = vld [vmem:[#allocation5 + $0x11b8] sm:$0xff]  ;;  %v9067_v62 = vcombine.low %v723_v50, %v727_v48  ;;  %v9076_v8 = vcombine.high %v731_v56, %v735_v57 }
 0x36e   :  { %v9078_v2 = vcombine.high %v732_v59, %v736_v44  ;;  %v9077_v9 = vcombine.low %v732_v59, %v736_v44  ;;  %v787_v44 = vld [vmem:[#allocation5 + $0x1350] sm:$0xff] }
 0x370   :  { %7123 = vmatpush1.bf16.msra.mxu0 %v9019_v4  ;;  %7451 = vmatpush1.bf16.msra.mxu1 %v9021_v19  ;;  %v743_v4 = vld [vmem:[#allocation5 + $0x11f0] sm:$0xff]  ;;  %v740_v19 = vld [vmem:[#allocation5 + $0x11d8] sm:$0xff] }
 0x371   :  { %7133 = vmatprep.subr.bf16.mxu0 %v9028_v27  ;;  %7461 = vmatprep.subr.bf16.mxu1 %v9030_v6  ;;  %v744_v27 = vld [vmem:[#allocation5 + $0x11f8] sm:$0xff]  ;;  %v9075_v6 = vcombine.low %v731_v56, %v735_v57  ;;  %v9084_v7 = vcombine.high %v739_v3, %v743_v4 }
 0x372   :  { %v9086_v10 = vcombine.high %v740_v19, %v744_v27  ;;  %v9085_v32 = vcombine.low %v740_v19, %v744_v27  ;;  %v795_v27 = vld [vmem:[#allocation5 + $0x1390] sm:$0xff] }
 0x373   :  { %7125 = vmatmul.mubr.bf16.vlgmr.msra.gmra.mrb[4].mxu0 %v10280_v24  ;;  %7453 = vmatmul.mubr.bf16.vlgmr.msra.gmra.mrb[4].mxu1 %v10280_v24  ;;  %v9045_v24 = vcombine.low %v700_v63, %v704_v20  ;;  %v755_v20 = vld [vmem:[#allocation5 + $0x1250] sm:$0xff] }
 0x374   :  { %7134 = vmatpush1.bf16.msra.mxu0 %v9027_v12  ;;  %7462 = vmatpush1.bf16.msra.mxu1 %v9029_v13  ;;  %v751_v12 = vld [vmem:[#allocation5 + $0x1230] sm:$0xff]  ;;  %v748_v13 = vld [vmem:[#allocation5 + $0x1218] sm:$0xff] }
 0x375   :  { %7135 = vmatprep.subr.bf16.mxu0 %v9036_v14  ;;  %7463 = vmatprep.subr.bf16.mxu1 %v9038_v15  ;;  %v752_v14 = vld [vmem:[#allocation5 + $0x1238] sm:$0xff]  ;;  %v9083_v15 = vcombine.low %v739_v3, %v743_v4  ;;  %v9092_v18 = vcombine.high %v747_v11, %v751_v12 }
 0x376   :  { %7165 = vmatprep.mubr.bf16.mxu0 %v10282_v34  ;;  %7493 = vmatprep.mubr.bf16.mxu1 %v10282_v34  ;;  %v9062_v34 = vcombine.high %v716_v42, %v720_v58  ;;  %v9094_v63 = vcombine.high %v748_v13, %v752_v14  ;;  %v9093_v28 = vcombine.low %v748_v13, %v752_v14  ;;  %v771_v58 = vld [vmem:[#allocation5 + $0x12d0] sm:$0xff] }
 0x377   :  { %v803_v14 = vld [vmem:[#allocation5 + $0x13d0] sm:$0xff] }
 0x378   :  { %7136 = vmatpush1.bf16.msra.mxu0 %v9035_v21  ;;  %7464 = vmatpush1.bf16.msra.mxu1 %v9037_v22  ;;  %v759_v21 = vld [vmem:[#allocation5 + $0x1270] sm:$0xff]  ;;  %v756_v22 = vld [vmem:[#allocation5 + $0x1258] sm:$0xff] }
 0x379   :  { %7137 = vmatprep.subr.bf16.mxu0 %v9044_v60  ;;  %7465 = vmatprep.subr.bf16.mxu1 %v9046_v25  ;;  %v760_v60 = vld [vmem:[#allocation5 + $0x1278] sm:$0xff]  ;;  %v9091_v25 = vcombine.low %v747_v11, %v751_v12  ;;  %v9100_v30 = vcombine.high %v755_v20, %v759_v21 }
 0x37a   :  { %v9102_v31 = vcombine.high %v756_v22, %v760_v60  ;;  %v9101_v40 = vcombine.low %v756_v22, %v760_v60  ;;  %v811_v60 = vld [vmem:[#allocation5 + $0x1410] sm:$0xff] }
 0x37c   :  { %7138 = vmatpush1.bf16.msra.mxu0 %v9043_v36  ;;  %7466 = vmatpush1.bf16.msra.mxu1 %v9045_v24  ;;  %v767_v36 = vld [vmem:[#allocation5 + $0x12b0] sm:$0xff]  ;;  %v764_v24 = vld [vmem:[#allocation5 + $0x1298] sm:$0xff] }
 0x37d   :  { %7139 = vmatprep.subr.bf16.mxu0 %v9052_v38  ;;  %7467 = vmatprep.subr.bf16.mxu1 %v9054_v39  ;;  %v768_v38 = vld [vmem:[#allocation5 + $0x12b8] sm:$0xff]  ;;  %v9099_v39 = vcombine.low %v755_v20, %v759_v21  ;;  %v9108_v41 = vcombine.high %v763_v61, %v767_v36 }
 0x37e   :  { %v9110_v42 = vcombine.high %v764_v24, %v768_v38  ;;  %v9109_v50 = vcombine.low %v764_v24, %v768_v38  ;;  %v819_v38 = vld [vmem:[#allocation5 + $0x1450] sm:$0xff] }
 0x380   :  { %7140 = vmatpush1.bf16.msra.mxu0 %v9051_v45  ;;  %7468 = vmatpush1.bf16.msra.mxu1 %v9053_v46  ;;  %v775_v45 = vld [vmem:[#allocation5 + $0x12f0] sm:$0xff]  ;;  %v772_v46 = vld [vmem:[#allocation5 + $0x12d8] sm:$0xff] }
 0x381   :  { %7141 = vmatprep.subr.bf16.mxu0 %v9060_v47  ;;  %7469 = vmatprep.subr.bf16.mxu1 %v9062_v34  ;;  %v776_v47 = vld [vmem:[#allocation5 + $0x12f8] sm:$0xff]  ;;  %v9107_v34 = vcombine.low %v763_v61, %v767_v36  ;;  %v9116_v48 = vcombine.high %v771_v58, %v775_v45 }
 0x382   :  { %v9118_v55 = vcombine.high %v772_v46, %v776_v47  ;;  %v9117_v56 = vcombine.low %v772_v46, %v776_v47  ;;  %v827_v47 = vld [vmem:[#allocation5 + $0x1490] sm:$0xff] }
 0x384   :  { %7142 = vmatpush1.bf16.msra.mxu0 %v9059_v43  ;;  %7470 = vmatpush1.bf16.msra.mxu1 %v9061_v16  ;;  %v783_v43 = vld [vmem:[#allocation5 + $0x1330] sm:$0xff]  ;;  %v780_v16 = vld [vmem:[#allocation5 + $0x1318] sm:$0xff] }
 0x385   :  { %7143 = vmatprep.subr.bf16.mxu0 %v9068_v53  ;;  %7471 = vmatprep.subr.bf16.mxu1 %v9070_v54  ;;  %v784_v53 = vld [vmem:[#allocation5 + $0x1338] sm:$0xff]  ;;  %v9115_v54 = vcombine.low %v771_v58, %v775_v45  ;;  %v9124_v57 = vcombine.high %v779_v49, %v783_v43 }
 0x386   :  { %v9126_v59 = vcombine.high %v780_v16, %v784_v53  ;;  %v9125_v3 = vcombine.low %v780_v16, %v784_v53  ;;  %v835_v53 = vld [vmem:[#allocation5 + $0x14d0] sm:$0xff] }
 0x388   :  { %7144 = vmatpush1.bf16.msra.mxu0 %v9067_v62  ;;  %7472 = vmatpush1.bf16.msra.mxu1 %v9069_v0  ;;  %v791_v62 = vld [vmem:[#allocation5 + $0x1370] sm:$0xff]  ;;  %v788_v0 = vld [vmem:[#allocation5 + $0x1358] sm:$0xff] }
 0x389   :  { %7145 = vmatprep.subr.bf16.mxu0 %v9076_v8  ;;  %7473 = vmatprep.subr.bf16.mxu1 %v9078_v2  ;;  %v792_v8 = vld [vmem:[#allocation5 + $0x1378] sm:$0xff]  ;;  %v9123_v2 = vcombine.low %v779_v49, %v783_v43  ;;  %v9132_v4 = vcombine.high %v787_v44, %v791_v62 }
 0x38a   :  { %v9134_v19 = vcombine.high %v788_v0, %v792_v8  ;;  %v9133_v11 = vcombine.low %v788_v0, %v792_v8  ;;  %v843_v0 = vld [vmem:[#allocation5 + $0x1510] sm:$0xff] }
 0x38b   :  { %v847_v8 = vld [vmem:[#allocation5 + $0x1530] sm:$0xff] }
 0x38c   :  { %7146 = vmatpush1.bf16.msra.mxu0 %v9075_v6  ;;  %7474 = vmatpush1.bf16.msra.mxu1 %v9077_v9  ;;  %v799_v6 = vld [vmem:[#allocation5 + $0x13b0] sm:$0xff]  ;;  %v796_v9 = vld [vmem:[#allocation5 + $0x1398] sm:$0xff] }
 0x38d   :  { %7147 = vmatprep.subr.bf16.mxu0 %v9084_v7  ;;  %7475 = vmatprep.subr.bf16.mxu1 %v9086_v10  ;;  %v800_v7 = vld [vmem:[#allocation5 + $0x13b8] sm:$0xff]  ;;  %v9131_v10 = vcombine.low %v787_v44, %v791_v62  ;;  %v9140_v12 = vcombine.high %v795_v27, %v799_v6 }
 0x38e   :  { %v9142_v13 = vcombine.high %v796_v9, %v800_v7  ;;  %v9141_v20 = vcombine.low %v796_v9, %v800_v7  ;;  %v855_v9 = vld [vmem:[#allocation5 + $0x1570] sm:$0xff]  ;;  %v852_v7 = vld [vmem:[#allocation5 + $0x1558] sm:$0xff] }
 0x390   :  { %7148 = vmatpush1.bf16.msra.mxu0 %v9083_v15  ;;  %7476 = vmatpush1.bf16.msra.mxu1 %v9085_v32  ;;  %v807_v15 = vld [vmem:[#allocation5 + $0x13f0] sm:$0xff]  ;;  %v804_v32 = vld [vmem:[#allocation5 + $0x13d8] sm:$0xff] }
 0x391   :  { %7149 = vmatprep.subr.bf16.mxu0 %v9092_v18  ;;  %7477 = vmatprep.subr.bf16.mxu1 %v9094_v63  ;;  %v808_v18 = vld [vmem:[#allocation5 + $0x13f8] sm:$0xff]  ;;  %v9139_v63 = vcombine.low %v795_v27, %v799_v6  ;;  %v9148_v21 = vcombine.high %v803_v14, %v807_v15  ;;  %v9188_v27 = vcombine.high %v843_v0, %v847_v8  ;;  %v851_v6 = vld [vmem:[#allocation5 + $0x1550] sm:$0xff] }
 0x392   :  { %v9150_v22 = vcombine.high %v804_v32, %v808_v18  ;;  %v9149_v61 = vcombine.low %v804_v32, %v808_v18  ;;  %v863_v32 = vld [vmem:[#allocation5 + $0x15b0] sm:$0xff]  ;;  %v860_v18 = vld [vmem:[#allocation5 + $0x1598] sm:$0xff] }
 0x394   :  { %7150 = vmatpush1.bf16.msra.mxu0 %v9091_v25  ;;  %7478 = vmatpush1.bf16.msra.mxu1 %v9093_v28  ;;  %v815_v25 = vld [vmem:[#allocation5 + $0x1430] sm:$0xff]  ;;  %v812_v28 = vld [vmem:[#allocation5 + $0x1418] sm:$0xff] }
 0x395   :  { %7151 = vmatprep.subr.bf16.mxu0 %v9100_v30  ;;  %7479 = vmatprep.subr.bf16.mxu1 %v9102_v31  ;;  %v816_v30 = vld [vmem:[#allocation5 + $0x1438] sm:$0xff]  ;;  %v9147_v31 = vcombine.low %v803_v14, %v807_v15  ;;  %v9156_v36 = vcombine.high %v811_v60, %v815_v25  ;;  %v859_v15 = vld [vmem:[#allocation5 + $0x1590] sm:$0xff] }
 0x396   :  { %v9158_v24 = vcombine.high %v812_v28, %v816_v30  ;;  %v9157_v58 = vcombine.low %v812_v28, %v816_v30  ;;  %v871_v28 = vld [vmem:[#allocation5 + $0x15f0] sm:$0xff]  ;;  %v868_v30 = vld [vmem:[#allocation5 + $0x15d8] sm:$0xff] }
 0x398   :  { %7152 = vmatpush1.bf16.msra.mxu0 %v9099_v39  ;;  %7480 = vmatpush1.bf16.msra.mxu1 %v9101_v40  ;;  %v823_v39 = vld [vmem:[#allocation5 + $0x1470] sm:$0xff]  ;;  %v820_v40 = vld [vmem:[#allocation5 + $0x1458] sm:$0xff] }
 0x399   :  { %7153 = vmatprep.subr.bf16.mxu0 %v9108_v41  ;;  %7481 = vmatprep.subr.bf16.mxu1 %v9110_v42  ;;  %v824_v41 = vld [vmem:[#allocation5 + $0x1478] sm:$0xff]  ;;  %v9155_v42 = vcombine.low %v811_v60, %v815_v25  ;;  %v9164_v45 = vcombine.high %v819_v38, %v823_v39  ;;  %v867_v25 = vld [vmem:[#allocation5 + $0x15d0] sm:$0xff] }
 0x39a   :  { %v9166_v46 = vcombine.high %v820_v40, %v824_v41  ;;  %v9165_v49 = vcombine.low %v820_v40, %v824_v41  ;;  %v879_v40 = vld [vmem:[#allocation5 + $0x1630] sm:$0xff]  ;;  %v876_v41 = vld [vmem:[#allocation5 + $0x1618] sm:$0xff] }
 0x39c   :  { %7154 = vmatpush1.bf16.msra.mxu0 %v9107_v34  ;;  %7482 = vmatpush1.bf16.msra.mxu1 %v9109_v50  ;;  %v831_v34 = vld [vmem:[#allocation5 + $0x14b0] sm:$0xff]  ;;  %v828_v50 = vld [vmem:[#allocation5 + $0x1498] sm:$0xff] }
 0x39d   :  { %7155 = vmatprep.subr.bf16.mxu0 %v9116_v48  ;;  %7483 = vmatprep.subr.bf16.mxu1 %v9118_v55  ;;  %v832_v48 = vld [vmem:[#allocation5 + $0x14b8] sm:$0xff]  ;;  %v9163_v55 = vcombine.low %v819_v38, %v823_v39  ;;  %v9172_v43 = vcombine.high %v827_v47, %v831_v34  ;;  %v875_v39 = vld [vmem:[#allocation5 + $0x1610] sm:$0xff] }
 0x39e   :  { %v9174_v16 = vcombine.high %v828_v50, %v832_v48 }
 0x3a0   :  { %7156 = vmatpush1.bf16.msra.mxu0 %v9115_v54  ;;  %7484 = vmatpush1.bf16.msra.mxu1 %v9117_v56  ;;  %v839_v54 = vld [vmem:[#allocation5 + $0x14f0] sm:$0xff]  ;;  %v836_v56 = vld [vmem:[#allocation5 + $0x14d8] sm:$0xff] }
 0x3a1   :  { %7157 = vmatprep.subr.bf16.mxu0 %v9124_v57  ;;  %7485 = vmatprep.subr.bf16.mxu1 %v9126_v59  ;;  %v840_v57 = vld [vmem:[#allocation5 + $0x14f8] sm:$0xff]  ;;  %v9171_v59 = vcombine.low %v827_v47, %v831_v34  ;;  %v9180_v44 = vcombine.high %v835_v53, %v839_v54  ;;  %v883_v34 = vld [vmem:[#allocation5 + $0x1650] sm:$0xff] }
 0x3a2   :  { %v9182_v62 = vcombine.high %v836_v56, %v840_v57 }
 0x3a4   :  { %7158 = vmatpush1.bf16.msra.mxu0 %v9123_v2  ;;  %7486 = vmatpush1.bf16.msra.mxu1 %v9125_v3  ;;  %v844_v2 = vld [vmem:[#allocation5 + $0x1518] sm:$0xff] }
 0x3a5   :  { %7159 = vmatprep.subr.bf16.mxu0 %v9132_v4  ;;  %7487 = vmatprep.subr.bf16.mxu1 %v9134_v19  ;;  %v848_v3 = vld [vmem:[#allocation5 + $0x1538] sm:$0xff]  ;;  %v9179_v4 = vcombine.low %v835_v53, %v839_v54  ;;  %v9181_v19 = vcombine.low %v836_v56, %v840_v57  ;;  %v891_v54 = vld [vmem:[#allocation5 + $0x1690] sm:$0xff] }
 0x3a6   :  { %v895_v56 = vld [vmem:[#allocation5 + $0x16b0] sm:$0xff]  ;;  %v892_v57 = vld [vmem:[#allocation5 + $0x1698] sm:$0xff] }
 0x3a8   :  { %7160 = vmatpush1.bf16.msra.mxu0 %v9131_v10  ;;  %7488 = vmatpush1.bf16.msra.mxu1 %v9133_v11  ;;  %v856_v10 = vld [vmem:[#allocation5 + $0x1578] sm:$0xff]  ;;  %v9187_v11 = vcombine.low %v843_v0, %v847_v8  ;;  %v899_v8 = vld [vmem:[#allocation5 + $0x16d0] sm:$0xff] }
 0x3a9   :  { %7161 = vmatprep.subr.bf16.mxu0 %v9140_v12  ;;  %7489 = vmatprep.subr.bf16.mxu1 %v9142_v13  ;;  %v9189_v12 = vcombine.low %v844_v2, %v848_v3  ;;  %v9196_v13 = vcombine.high %v851_v6, %v855_v9  ;;  %v9198_v14 = vcombine.high %v852_v7, %v856_v10 }
 0x3ac   :  { %7162 = vmatpush1.bf16.msra.mxu0 %v9139_v63  ;;  %7490 = vmatpush1.bf16.msra.mxu1 %v9141_v20  ;;  %v864_v63 = vld [vmem:[#allocation5 + $0x15b8] sm:$0xff]  ;;  %v9195_v20 = vcombine.low %v851_v6, %v855_v9  ;;  %v907_v9 = vld [vmem:[#allocation5 + $0x1710] sm:$0xff] }
 0x3ad   :  { %7163 = vmatprep.subr.bf16.mxu0 %v9148_v21  ;;  %7491 = vmatprep.subr.bf16.mxu1 %v9150_v22  ;;  %v9197_v21 = vcombine.low %v852_v7, %v856_v10  ;;  %v9204_v22 = vcombine.high %v859_v15, %v863_v32  ;;  %v9206_v60 = vcombine.high %v860_v18, %v864_v63  ;;  %v911_v7 = vld [vmem:[#allocation5 + $0x1730] sm:$0xff]  ;;  %v908_v10 = vld [vmem:[#allocation5 + $0x1718] sm:$0xff] }
 0x3b0   :  { %7164 = vmatpush1.bf16.msra.mxu0 %v9147_v31  ;;  %7492 = vmatpush1.bf16.msra.mxu1 %v9149_v61  ;;  %v872_v31 = vld [vmem:[#allocation5 + $0x15f8] sm:$0xff]  ;;  %v9203_v61 = vcombine.low %v859_v15, %v863_v32  ;;  %v915_v32 = vld [vmem:[#allocation5 + $0x1750] sm:$0xff] }
 0x3b1   :  { %7174 = vmatprep.subr.bf16.mxu0 %v9156_v36  ;;  %7502 = vmatprep.subr.bf16.mxu1 %v9158_v24  ;;  %v9205_v36 = vcombine.low %v860_v18, %v864_v63  ;;  %v9212_v24 = vcombine.high %v867_v25, %v871_v28  ;;  %v9214_v38 = vcombine.high %v868_v30, %v872_v31  ;;  %v919_v18 = vld [vmem:[#allocation5 + $0x1770] sm:$0xff]  ;;  %v916_v63 = vld [vmem:[#allocation5 + $0x1758] sm:$0xff] }
 0x3b3   :  { %7166 = vmatmul.mubr.bf16.vlgmr.msra.gmra.mrb[4].mxu0 %v10290_v52  ;;  %7494 = vmatmul.mubr.bf16.vlgmr.msra.gmra.mrb[4].mxu1 %v10290_v52  ;;  %v9173_v52 = vcombine.low %v828_v50, %v832_v48  ;;  %v887_v50 = vld [vmem:[#allocation5 + $0x1670] sm:$0xff]  ;;  %v884_v48 = vld [vmem:[#allocation5 + $0x1658] sm:$0xff] }
 0x3b4   :  { %7175 = vmatpush1.bf16.msra.mxu0 %v9155_v42  ;;  %7503 = vmatpush1.bf16.msra.mxu1 %v9157_v58  ;;  %v880_v42 = vld [vmem:[#allocation5 + $0x1638] sm:$0xff]  ;;  %v9211_v58 = vcombine.low %v867_v25, %v871_v28  ;;  %v923_v28 = vld [vmem:[#allocation5 + $0x1790] sm:$0xff] }
 0x3b5   :  { %7176 = vmatprep.subr.bf16.mxu0 %v9164_v45  ;;  %7504 = vmatprep.subr.bf16.mxu1 %v9166_v46  ;;  %v9213_v45 = vcombine.low %v868_v30, %v872_v31  ;;  %v9220_v46 = vcombine.high %v875_v39, %v879_v40  ;;  %v9222_v47 = vcombine.high %v876_v41, %v880_v42  ;;  %v927_v30 = vld [vmem:[#allocation5 + $0x17b0] sm:$0xff]  ;;  %v924_v31 = vld [vmem:[#allocation5 + $0x1798] sm:$0xff] }
 0x3b6   :  { %7206 = vmatprep.mubr.bf16.mxu0 %v10296_v1  ;;  %7534 = vmatprep.mubr.bf16.mxu1 %v10296_v1  ;;  %v9190_v1 = vcombine.high %v844_v2, %v848_v3  ;;  %v903_v2 = vld [vmem:[#allocation5 + $0x16f0] sm:$0xff]  ;;  %v900_v3 = vld [vmem:[#allocation5 + $0x16d8] sm:$0xff] }
 0x3b8   :  { %7177 = vmatpush1.bf16.msra.mxu0 %v9163_v55  ;;  %7505 = vmatpush1.bf16.msra.mxu1 %v9165_v49  ;;  %v888_v55 = vld [vmem:[#allocation5 + $0x1678] sm:$0xff]  ;;  %v9219_v49 = vcombine.low %v875_v39, %v879_v40  ;;  %v931_v40 = vld [vmem:[#allocation5 + $0x17d0] sm:$0xff] }
 0x3b9   :  { %7178 = vmatprep.subr.bf16.mxu0 %v9172_v43  ;;  %7506 = vmatprep.subr.bf16.mxu1 %v9174_v16  ;;  %v9221_v43 = vcombine.low %v876_v41, %v880_v42  ;;  %v9228_v16 = vcombine.high %v883_v34, %v887_v50  ;;  %v9230_v53 = vcombine.high %v884_v48, %v888_v55  ;;  %v935_v41 = vld [vmem:[#allocation5 + $0x17f0] sm:$0xff]  ;;  %v932_v42 = vld [vmem:[#allocation5 + $0x17d8] sm:$0xff] }
 0x3bc   :  { %7179 = vmatpush1.bf16.msra.mxu0 %v9171_v59  ;;  %7507 = vmatpush1.bf16.msra.mxu1 %v9173_v52  ;;  %v896_v59 = vld [vmem:[#allocation5 + $0x16b8] sm:$0xff]  ;;  %v9227_v52 = vcombine.low %v883_v34, %v887_v50  ;;  %v939_v50 = vld [vmem:[#allocation5 + $0x1810] sm:$0xff] }
 0x3bd   :  { %7180 = vmatprep.subr.bf16.mxu0 %v9180_v44  ;;  %7508 = vmatprep.subr.bf16.mxu1 %v9182_v62  ;;  %v9229_v44 = vcombine.low %v884_v48, %v888_v55  ;;  %v9236_v62 = vcombine.high %v891_v54, %v895_v56  ;;  %v9238_v0 = vcombine.high %v892_v57, %v896_v59  ;;  %v943_v48 = vld [vmem:[#allocation5 + $0x1830] sm:$0xff]  ;;  %v940_v55 = vld [vmem:[#allocation5 + $0x1818] sm:$0xff] }
 0x3c0   :  { %7181 = vmatpush1.bf16.msra.mxu0 %v9179_v4  ;;  %7509 = vmatpush1.bf16.msra.mxu1 %v9181_v19  ;;  %v904_v4 = vld [vmem:[#allocation5 + $0x16f8] sm:$0xff]  ;;  %v9235_v19 = vcombine.low %v891_v54, %v895_v56  ;;  %v947_v56 = vld [vmem:[#allocation5 + $0x1850] sm:$0xff] }
 0x3c1   :  { %7182 = vmatprep.subr.bf16.mxu0 %v9188_v27  ;;  %7510 = vmatprep.subr.bf16.mxu1 %v9190_v1  ;;  %v9237_v27 = vcombine.low %v892_v57, %v896_v59  ;;  %v9244_v1 = vcombine.high %v899_v8, %v903_v2  ;;  %v9246_v6 = vcombine.high %v900_v3, %v904_v4  ;;  %v951_v57 = vld [vmem:[#allocation5 + $0x1870] sm:$0xff]  ;;  %v948_v59 = vld [vmem:[#allocation5 + $0x1858] sm:$0xff] }
 0x3c4   :  { %7183 = vmatpush1.bf16.msra.mxu0 %v9187_v11  ;;  %7511 = vmatpush1.bf16.msra.mxu1 %v9189_v12  ;;  %v912_v11 = vld [vmem:[#allocation5 + $0x1738] sm:$0xff]  ;;  %v9243_v12 = vcombine.low %v899_v8, %v903_v2  ;;  %v955_v2 = vld [vmem:[#allocation5 + $0x1890] sm:$0xff] }
 0x3c5   :  { %7184 = vmatprep.subr.bf16.mxu0 %v9196_v13  ;;  %7512 = vmatprep.subr.bf16.mxu1 %v9198_v14  ;;  %v9245_v13 = vcombine.low %v900_v3, %v904_v4  ;;  %v9252_v14 = vcombine.high %v907_v9, %v911_v7  ;;  %v9254_v15 = vcombine.high %v908_v10, %v912_v11  ;;  %v959_v3 = vld [vmem:[#allocation5 + $0x18b0] sm:$0xff]  ;;  %v956_v4 = vld [vmem:[#allocation5 + $0x1898] sm:$0xff] }
 0x3c8   :  { %7185 = vmatpush1.bf16.msra.mxu0 %v9195_v20  ;;  %7513 = vmatpush1.bf16.msra.mxu1 %v9197_v21  ;;  %v920_v20 = vld [vmem:[#allocation5 + $0x1778] sm:$0xff]  ;;  %v9251_v21 = vcombine.low %v907_v9, %v911_v7  ;;  %v963_v7 = vld [vmem:[#allocation5 + $0x18d0] sm:$0xff] }
 0x3c9   :  { %7186 = vmatprep.subr.bf16.mxu0 %v9204_v22  ;;  %7514 = vmatprep.subr.bf16.mxu1 %v9206_v60  ;;  %v9253_v22 = vcombine.low %v908_v10, %v912_v11  ;;  %v9260_v60 = vcombine.high %v915_v32, %v919_v18  ;;  %v9262_v25 = vcombine.high %v916_v63, %v920_v20  ;;  %v967_v10 = vld [vmem:[#allocation5 + $0x18f0] sm:$0xff]  ;;  %v964_v11 = vld [vmem:[#allocation5 + $0x18d8] sm:$0xff] }
 0x3cc   :  { %7187 = vmatpush1.bf16.msra.mxu0 %v9203_v61  ;;  %7515 = vmatpush1.bf16.msra.mxu1 %v9205_v36  ;;  %v928_v61 = vld [vmem:[#allocation5 + $0x17b8] sm:$0xff]  ;;  %v9259_v36 = vcombine.low %v915_v32, %v919_v18  ;;  %v971_v32 = vld [vmem:[#allocation5 + $0x1910] sm:$0xff] }
 0x3cd   :  { %7188 = vmatprep.subr.bf16.mxu0 %v9212_v24  ;;  %7516 = vmatprep.subr.bf16.mxu1 %v9214_v38  ;;  %v9261_v24 = vcombine.low %v916_v63, %v920_v20  ;;  %v9268_v38 = vcombine.high %v923_v28, %v927_v30  ;;  %v9270_v39 = vcombine.high %v924_v31, %v928_v61  ;;  %v975_v18 = vld [vmem:[#allocation5 + $0x1930] sm:$0xff]  ;;  %v972_v63 = vld [vmem:[#allocation5 + $0x1918] sm:$0xff] }
 0x3ce   :  { %v976_v20 = vld [vmem:[#allocation5 + $0x1938] sm:$0xff] }
 0x3d0   :  { %7189 = vmatpush1.bf16.msra.mxu0 %v9211_v58  ;;  %7517 = vmatpush1.bf16.msra.mxu1 %v9213_v45  ;;  %v936_v58 = vld [vmem:[#allocation5 + $0x17f8] sm:$0xff]  ;;  %v9267_v45 = vcombine.low %v923_v28, %v927_v30  ;;  %v983_v28 = vld [vmem:[#allocation5 + $0x1970] sm:$0xff] }
 0x3d1   :  { %7190 = vmatprep.subr.bf16.mxu0 %v9220_v46  ;;  %7518 = vmatprep.subr.bf16.mxu1 %v9222_v47  ;;  %v9269_v46 = vcombine.low %v924_v31, %v928_v61  ;;  %v9276_v47 = vcombine.high %v931_v40, %v935_v41  ;;  %v9278_v34 = vcombine.high %v932_v42, %v936_v58  ;;  %v980_v30 = vld [vmem:[#allocation5 + $0x1958] sm:$0xff] }
 0x3d2   :  { %v984_v31 = vld [vmem:[#allocation5 + $0x1978] sm:$0xff]  ;;  %v9315_v61 = vcombine.low %v971_v32, %v975_v18 }
 0x3d4   :  { %7191 = vmatpush1.bf16.msra.mxu0 %v9219_v49  ;;  %7519 = vmatpush1.bf16.msra.mxu1 %v9221_v43  ;;  %v944_v49 = vld [vmem:[#allocation5 + $0x1838] sm:$0xff]  ;;  %v9275_v43 = vcombine.low %v931_v40, %v935_v41  ;;  %v991_v40 = vld [vmem:[#allocation5 + $0x19b0] sm:$0xff] }
 0x3d5   :  { %7192 = vmatprep.subr.bf16.mxu0 %v9228_v16  ;;  %7520 = vmatprep.subr.bf16.mxu1 %v9230_v53  ;;  %v9277_v16 = vcombine.low %v932_v42, %v936_v58  ;;  %v9284_v53 = vcombine.high %v939_v50, %v943_v48  ;;  %v9286_v54 = vcombine.high %v940_v55, %v944_v49  ;;  %v988_v41 = vld [vmem:[#allocation5 + $0x1998] sm:$0xff] }
 0x3d6   :  { %v992_v42 = vld [vmem:[#allocation5 + $0x19b8] sm:$0xff] }
 0x3d8   :  { %7193 = vmatpush1.bf16.msra.mxu0 %v9227_v52  ;;  %7521 = vmatpush1.bf16.msra.mxu1 %v9229_v44  ;;  %v952_v52 = vld [vmem:[#allocation5 + $0x1878] sm:$0xff]  ;;  %v9283_v44 = vcombine.low %v939_v50, %v943_v48  ;;  %v999_v50 = vld [vmem:[#allocation5 + $0x19f0] sm:$0xff] }
 0x3d9   :  { %7194 = vmatprep.subr.bf16.mxu0 %v9236_v62  ;;  %7522 = vmatprep.subr.bf16.mxu1 %v9238_v0  ;;  %v9285_v62 = vcombine.low %v940_v55, %v944_v49  ;;  %v9292_v0 = vcombine.high %v947_v56, %v951_v57  ;;  %v9294_v8 = vcombine.high %v948_v59, %v952_v52  ;;  %v996_v48 = vld [vmem:[#allocation5 + $0x19d8] sm:$0xff] }
 0x3da   :  { %v1000_v55 = vld [vmem:[#allocation5 + $0x19f8] sm:$0xff] }
 0x3dc   :  { %7195 = vmatpush1.bf16.msra.mxu0 %v9235_v19  ;;  %7523 = vmatpush1.bf16.msra.mxu1 %v9237_v27  ;;  %v960_v19 = vld [vmem:[#allocation5 + $0x18b8] sm:$0xff]  ;;  %v9291_v27 = vcombine.low %v947_v56, %v951_v57  ;;  %v1007_v56 = vld [vmem:[#allocation5 + $0x1a30] sm:$0xff] }
 0x3dd   :  { %7196 = vmatprep.subr.bf16.mxu0 %v9244_v1  ;;  %7524 = vmatprep.subr.bf16.mxu1 %v9246_v6  ;;  %v9293_v1 = vcombine.low %v948_v59, %v952_v52  ;;  %v9300_v6 = vcombine.high %v955_v2, %v959_v3  ;;  %v9302_v9 = vcombine.high %v956_v4, %v960_v19  ;;  %v1004_v57 = vld [vmem:[#allocation5 + $0x1a18] sm:$0xff] }
 0x3de   :  { %v1008_v59 = vld [vmem:[#allocation5 + $0x1a38] sm:$0xff] }
 0x3e0   :  { %7197 = vmatpush1.bf16.msra.mxu0 %v9243_v12  ;;  %7525 = vmatpush1.bf16.msra.mxu1 %v9245_v13  ;;  %v968_v12 = vld [vmem:[#allocation5 + $0x18f8] sm:$0xff]  ;;  %v9299_v13 = vcombine.low %v955_v2, %v959_v3  ;;  %v1015_v2 = vld [vmem:[#allocation5 + $0x1a70] sm:$0xff] }
 0x3e1   :  { %7198 = vmatprep.subr.bf16.mxu0 %v9252_v14  ;;  %7526 = vmatprep.subr.bf16.mxu1 %v9254_v15  ;;  %v9308_v14 = vcombine.high %v963_v7, %v967_v10  ;;  %v9310_v15 = vcombine.high %v964_v11, %v968_v12  ;;  %v1012_v3 = vld [vmem:[#allocation5 + $0x1a58] sm:$0xff] }
 0x3e4   :  { %7199 = vmatpush1.bf16.msra.mxu0 %v9251_v21  ;;  %7527 = vmatpush1.bf16.msra.mxu1 %v9253_v22  ;;  %v9307_v21 = vcombine.low %v963_v7, %v967_v10  ;;  %v9309_v22 = vcombine.low %v964_v11, %v968_v12  ;;  %v1023_v7 = vld [vmem:[#allocation5 + $0x1ab0] sm:$0xff]  ;;  %v1020_v10 = vld [vmem:[#allocation5 + $0x1a98] sm:$0xff] }
 0x3e5   :  { %7200 = vmatprep.subr.bf16.mxu0 %v9260_v60  ;;  %7528 = vmatprep.subr.bf16.mxu1 %v9262_v25  ;;  %v9316_v60 = vcombine.high %v971_v32, %v975_v18  ;;  %v979_v25 = vld [vmem:[#allocation5 + $0x1950] sm:$0xff]  ;;  %v1024_v11 = vld [vmem:[#allocation5 + $0x1ab8] sm:$0xff] }
 0x3e6   :  { %v9323_v58 = vcombine.low %v979_v25, %v983_v28  ;;  %v1031_v32 = vld [vmem:[#allocation5 + $0x1af0] sm:$0xff]  ;;  %v1028_v18 = vld [vmem:[#allocation5 + $0x1ad8] sm:$0xff] }
 0x3e8   :  { %7201 = vmatpush1.bf16.msra.mxu0 %v9259_v36  ;;  %7529 = vmatpush1.bf16.msra.mxu1 %v9261_v24  ;;  %v9317_v36 = vcombine.low %v972_v63, %v976_v20  ;;  %v9324_v24 = vcombine.high %v979_v25, %v983_v28  ;;  %v1039_v25 = vld [vmem:[#allocation5 + $0x1b30] sm:$0xff]  ;;  %v1036_v28 = vld [vmem:[#allocation5 + $0x1b18] sm:$0xff] }
 0x3e9   :  { %7202 = vmatprep.subr.bf16.mxu0 %v9268_v38  ;;  %7530 = vmatprep.subr.bf16.mxu1 %v9270_v39  ;;  %v9326_v38 = vcombine.high %v980_v30, %v984_v31  ;;  %v987_v39 = vld [vmem:[#allocation5 + $0x1990] sm:$0xff] }
 0x3ea   :  { %v9331_v49 = vcombine.low %v987_v39, %v991_v40 }
 0x3ec   :  { %7203 = vmatpush1.bf16.msra.mxu0 %v9267_v45  ;;  %7531 = vmatpush1.bf16.msra.mxu1 %v9269_v46  ;;  %v9325_v45 = vcombine.low %v980_v30, %v984_v31  ;;  %v9332_v46 = vcombine.high %v987_v39, %v991_v40  ;;  %v1040_v30 = vld [vmem:[#allocation5 + $0x1b38] sm:$0xff]  ;;  %v1047_v39 = vld [vmem:[#allocation5 + $0x1b70] sm:$0xff] }
 0x3ed   :  { %7204 = vmatprep.subr.bf16.mxu0 %v9276_v47  ;;  %7532 = vmatprep.subr.bf16.mxu1 %v9278_v34  ;;  %v9334_v47 = vcombine.high %v988_v41, %v992_v42  ;;  %v995_v34 = vld [vmem:[#allocation5 + $0x19d0] sm:$0xff]  ;;  %v1044_v40 = vld [vmem:[#allocation5 + $0x1b58] sm:$0xff] }
 0x3ee   :  { %v9339_v52 = vcombine.low %v995_v34, %v999_v50 }
 0x3f0   :  { %7205 = vmatpush1.bf16.msra.mxu0 %v9275_v43  ;;  %7533 = vmatpush1.bf16.msra.mxu1 %v9277_v16  ;;  %v9333_v43 = vcombine.low %v988_v41, %v992_v42  ;;  %v9340_v16 = vcombine.high %v995_v34, %v999_v50  ;;  %v1048_v41 = vld [vmem:[#allocation5 + $0x1b78] sm:$0xff]  ;;  %v1055_v34 = vld [vmem:[#allocation5 + $0x1bb0] sm:$0xff] }
 0x3f1   :  { %7215 = vmatprep.subr.bf16.mxu0 %v9284_v53  ;;  %7543 = vmatprep.subr.bf16.mxu1 %v9286_v54  ;;  %v9342_v53 = vcombine.high %v996_v48, %v1000_v55  ;;  %v1003_v54 = vld [vmem:[#allocation5 + $0x1a10] sm:$0xff]  ;;  %v1052_v50 = vld [vmem:[#allocation5 + $0x1b98] sm:$0xff] }
 0x3f3   :  { %7207 = vmatmul.mubr.bf16.vlgmr.msra.gmra.mrb[4].mxu0 %v10306_v23  ;;  %7535 = vmatmul.mubr.bf16.vlgmr.msra.gmra.mrb[4].mxu1 %v10306_v23  ;;  %v9301_v23 = vcombine.low %v956_v4, %v960_v19  ;;  %v1016_v4 = vld [vmem:[#allocation5 + $0x1a78] sm:$0xff]  ;;  %v9347_v19 = vcombine.low %v1003_v54, %v1007_v56 }
 0x3f4   :  { %7216 = vmatpush1.bf16.msra.mxu0 %v9283_v44  ;;  %7544 = vmatpush1.bf16.msra.mxu1 %v9285_v62  ;;  %v9341_v44 = vcombine.low %v996_v48, %v1000_v55  ;;  %v9348_v62 = vcombine.high %v1003_v54, %v1007_v56  ;;  %v1056_v48 = vld [vmem:[#allocation5 + $0x1bb8] sm:$0xff]  ;;  %v1063_v54 = vld [vmem:[#allocation5 + $0x1bf0] sm:$0xff] }
 0x3f5   :  { %7217 = vmatprep.subr.bf16.mxu0 %v9292_v0  ;;  %7545 = vmatprep.subr.bf16.mxu1 %v9294_v8  ;;  %v9350_v0 = vcombine.high %v1004_v57, %v1008_v59  ;;  %v1011_v8 = vld [vmem:[#allocation5 + $0x1a50] sm:$0xff]  ;;  %v1060_v56 = vld [vmem:[#allocation5 + $0x1bd8] sm:$0xff] }
 0x3f6   :  { %7247 = vmatprep.mubr.bf16.mxu0 %v10312_v35  ;;  %7575 = vmatprep.mubr.bf16.mxu1 %v10312_v35  ;;  %v9318_v35 = vcombine.high %v972_v63, %v976_v20  ;;  %v9355_v12 = vcombine.low %v1011_v8, %v1015_v2  ;;  %v1032_v63 = vld [vmem:[#allocation5 + $0x1af8] sm:$0xff] }
 0x3f8   :  { %7218 = vmatpush1.bf16.msra.mxu0 %v9291_v27  ;;  %7546 = vmatpush1.bf16.msra.mxu1 %v9293_v1  ;;  %v9349_v27 = vcombine.low %v1004_v57, %v1008_v59  ;;  %v9356_v1 = vcombine.high %v1011_v8, %v1015_v2  ;;  %v1064_v57 = vld [vmem:[#allocation5 + $0x1bf8] sm:$0xff]  ;;  %v1071_v8 = vld [vmem:[#allocation5 + $0x1c30] sm:$0xff] }
 0x3f9   :  { %7219 = vmatprep.subr.bf16.mxu0 %v9300_v6  ;;  %7547 = vmatprep.subr.bf16.mxu1 %v9302_v9  ;;  %v9358_v6 = vcombine.high %v1012_v3, %v1016_v4  ;;  %v1019_v9 = vld [vmem:[#allocation5 + $0x1a90] sm:$0xff]  ;;  %v1068_v2 = vld [vmem:[#allocation5 + $0x1c18] sm:$0xff] }
 0x3fa   :  { %v9363_v20 = vcombine.low %v1019_v9, %v1023_v7 }
 0x3fc   :  { %7220 = vmatpush1.bf16.msra.mxu0 %v9299_v13  ;;  %7548 = vmatpush1.bf16.msra.mxu1 %v9301_v23  ;;  %v9357_v13 = vcombine.low %v1012_v3, %v1016_v4  ;;  %v9364_v23 = vcombine.high %v1019_v9, %v1023_v7  ;;  %v1072_v3 = vld [vmem:[#allocation5 + $0x1c38] sm:$0xff]  ;;  %v1079_v9 = vld [vmem:[#allocation5 + $0x1c70] sm:$0xff] }
 0x3fd   :  { %7221 = vmatprep.subr.bf16.mxu0 %v9308_v14  ;;  %7549 = vmatprep.subr.bf16.mxu1 %v9310_v15  ;;  %v9366_v14 = vcombine.high %v1020_v10, %v1024_v11  ;;  %v1027_v15 = vld [vmem:[#allocation5 + $0x1ad0] sm:$0xff]  ;;  %v1076_v7 = vld [vmem:[#allocation5 + $0x1c58] sm:$0xff] }
 0x3fe   :  { %v9371_v31 = vcombine.low %v1027_v15, %v1031_v32 }
 0x400   :  { %7222 = vmatpush1.bf16.msra.mxu0 %v9307_v21  ;;  %7550 = vmatpush1.bf16.msra.mxu1 %v9309_v22  ;;  %v9365_v21 = vcombine.low %v1020_v10, %v1024_v11  ;;  %v9372_v22 = vcombine.high %v1027_v15, %v1031_v32  ;;  %v1080_v10 = vld [vmem:[#allocation5 + $0x1c78] sm:$0xff]  ;;  %v1087_v15 = vld [vmem:[#allocation5 + $0x1cb0] sm:$0xff] }
 0x401   :  { %7223 = vmatprep.subr.bf16.mxu0 %v9316_v60  ;;  %7551 = vmatprep.subr.bf16.mxu1 %v9318_v35  ;;  %v9374_v60 = vcombine.high %v1028_v18, %v1032_v63  ;;  %v1035_v35 = vld [vmem:[#allocation5 + $0x1b10] sm:$0xff]  ;;  %v1084_v32 = vld [vmem:[#allocation5 + $0x1c98] sm:$0xff] }
 0x402   :  { %v9379_v42 = vcombine.low %v1035_v35, %v1039_v25 }
 0x404   :  { %7224 = vmatpush1.bf16.msra.mxu0 %v9315_v61  ;;  %7552 = vmatpush1.bf16.msra.mxu1 %v9317_v36  ;;  %v9373_v61 = vcombine.low %v1028_v18, %v1032_v63  ;;  %v9380_v36 = vcombine.high %v1035_v35, %v1039_v25  ;;  %v1088_v18 = vld [vmem:[#allocation5 + $0x1cb8] sm:$0xff]  ;;  %v1095_v35 = vld [vmem:[#allocation5 + $0x1cf0] sm:$0xff] }
 0x405   :  { %7225 = vmatprep.subr.bf16.mxu0 %v9324_v24  ;;  %7553 = vmatprep.subr.bf16.mxu1 %v9326_v38  ;;  %v9382_v24 = vcombine.high %v1036_v28, %v1040_v30  ;;  %v1043_v38 = vld [vmem:[#allocation5 + $0x1b50] sm:$0xff]  ;;  %v1092_v25 = vld [vmem:[#allocation5 + $0x1cd8] sm:$0xff] }
 0x406   :  { %v9387_v55 = vcombine.low %v1043_v38, %v1047_v39 }
 0x408   :  { %7226 = vmatpush1.bf16.msra.mxu0 %v9323_v58  ;;  %7554 = vmatpush1.bf16.msra.mxu1 %v9325_v45  ;;  %v9381_v58 = vcombine.low %v1036_v28, %v1040_v30  ;;  %v9388_v45 = vcombine.high %v1043_v38, %v1047_v39  ;;  %v1096_v28 = vld [vmem:[#allocation5 + $0x1cf8] sm:$0xff] }
 0x409   :  { %7227 = vmatprep.subr.bf16.mxu0 %v9332_v46  ;;  %7555 = vmatprep.subr.bf16.mxu1 %v9334_v47  ;;  %v9390_v46 = vcombine.high %v1044_v40, %v1048_v41  ;;  %v1051_v47 = vld [vmem:[#allocation5 + $0x1b90] sm:$0xff]  ;;  %v1100_v38 = vld [vmem:[#allocation5 + $0x1d18] sm:$0xff] }
 0x40a   :  { %v9395_v59 = vcombine.low %v1051_v47, %v1055_v34  ;;  %v1104_v39 = vld [vmem:[#allocation5 + $0x1d38] sm:$0xff] }
 0x40c   :  { %7228 = vmatpush1.bf16.msra.mxu0 %v9331_v49  ;;  %7556 = vmatpush1.bf16.msra.mxu1 %v9333_v43  ;;  %v9389_v49 = vcombine.low %v1044_v40, %v1048_v41  ;;  %v9396_v43 = vcombine.high %v1051_v47, %v1055_v34  ;;  %v9437_v41 = vcombine.low %v1092_v25, %v1096_v28  ;;  %v1112_v47 = vld [vmem:[#allocation5 + $0x1d78] sm:$0xff] }
 0x40d   :  { %7229 = vmatprep.subr.bf16.mxu0 %v9340_v16  ;;  %7557 = vmatprep.subr.bf16.mxu1 %v9342_v53  ;;  %v9398_v16 = vcombine.high %v1052_v50, %v1056_v48  ;;  %v1059_v53 = vld [vmem:[#allocation5 + $0x1bd0] sm:$0xff] }
 0x40e   :  { %v9403_v4 = vcombine.low %v1059_v53, %v1063_v54 }
 0x410   :  { %7230 = vmatpush1.bf16.msra.mxu0 %v9339_v52  ;;  %7558 = vmatpush1.bf16.msra.mxu1 %v9341_v44  ;;  %v9397_v52 = vcombine.low %v1052_v50, %v1056_v48  ;;  %v9404_v44 = vcombine.high %v1059_v53, %v1063_v54  ;;  %v9445_v50 = vcombine.low %v1100_v38, %v1104_v39  ;;  %v1120_v53 = vld [vmem:[#allocation5 + $0x1db8] sm:$0xff] }
 0x411   :  { %7231 = vmatprep.subr.bf16.mxu0 %v9348_v62  ;;  %7559 = vmatprep.subr.bf16.mxu1 %v9350_v0  ;;  %v9406_v62 = vcombine.high %v1060_v56, %v1064_v57  ;;  %v1067_v0 = vld [vmem:[#allocation5 + $0x1c10] sm:$0xff] }
 0x412   :  { %v9411_v11 = vcombine.low %v1067_v0, %v1071_v8 }
 0x414   :  { %7232 = vmatpush1.bf16.msra.mxu0 %v9347_v19  ;;  %7560 = vmatpush1.bf16.msra.mxu1 %v9349_v27  ;;  %v9405_v19 = vcombine.low %v1060_v56, %v1064_v57  ;;  %v9412_v27 = vcombine.high %v1067_v0, %v1071_v8  ;;  %v1128_v0 = vld [vmem:[#allocation5 + $0x1df8] sm:$0xff] }
 0x415   :  { %7233 = vmatprep.subr.bf16.mxu0 %v9356_v1  ;;  %7561 = vmatprep.subr.bf16.mxu1 %v9358_v6  ;;  %v9414_v1 = vcombine.high %v1068_v2, %v1072_v3  ;;  %v1075_v6 = vld [vmem:[#allocation5 + $0x1c50] sm:$0xff] }
 0x416   :  { %v9419_v63 = vcombine.low %v1075_v6, %v1079_v9 }
 0x418   :  { %7234 = vmatpush1.bf16.msra.mxu0 %v9355_v12  ;;  %7562 = vmatpush1.bf16.msra.mxu1 %v9357_v13  ;;  %v9413_v12 = vcombine.low %v1068_v2, %v1072_v3  ;;  %v9420_v13 = vcombine.high %v1075_v6, %v1079_v9  ;;  %v1136_v6 = vld [vmem:[#allocation5 + $0x1e38] sm:$0xff] }
 0x419   :  { %7235 = vmatprep.subr.bf16.mxu0 %v9364_v23  ;;  %7563 = vmatprep.subr.bf16.mxu1 %v9366_v14  ;;  %v9422_v23 = vcombine.high %v1076_v7, %v1080_v10  ;;  %v1083_v14 = vld [vmem:[#allocation5 + $0x1c90] sm:$0xff] }
 0x41a   :  { %v9427_v30 = vcombine.low %v1083_v14, %v1087_v15 }
 0x41c   :  { %7236 = vmatpush1.bf16.msra.mxu0 %v9363_v20  ;;  %7564 = vmatpush1.bf16.msra.mxu1 %v9365_v21  ;;  %v9421_v20 = vcombine.low %v1076_v7, %v1080_v10  ;;  %v9428_v21 = vcombine.high %v1083_v14, %v1087_v15  ;;  %v1144_v14 = vld [vmem:[#allocation5 + $0x1e78] sm:$0xff] }
 0x41d   :  { %7237 = vmatprep.subr.bf16.mxu0 %v9372_v22  ;;  %7565 = vmatprep.subr.bf16.mxu1 %v9374_v60  ;;  %v9430_v22 = vcombine.high %v1084_v32, %v1088_v18  ;;  %v1091_v60 = vld [vmem:[#allocation5 + $0x1cd0] sm:$0xff] }
 0x41e   :  { %v9435_v40 = vcombine.low %v1091_v60, %v1095_v35 }
 0x420   :  { %7238 = vmatpush1.bf16.msra.mxu0 %v9371_v31  ;;  %7566 = vmatpush1.bf16.msra.mxu1 %v9373_v61  ;;  %v9436_v31 = vcombine.high %v1091_v60, %v1095_v35  ;;  %v9438_v61 = vcombine.high %v1092_v25, %v1096_v28  ;;  %v1148_v60 = vld [vmem:[#allocation5 + $0x1e98] sm:$0xff] }
 0x421   :  { %7239 = vmatprep.subr.bf16.mxu0 %v9380_v36  ;;  %7567 = vmatprep.subr.bf16.mxu1 %v9382_v24  ;;  %v1099_v36 = vld [vmem:[#allocation5 + $0x1d10] sm:$0xff]  ;;  %v1152_v35 = vld [vmem:[#allocation5 + $0x1eb8] sm:$0xff] }
 0x422   :  { %v1103_v24 = vld [vmem:[#allocation5 + $0x1d30] sm:$0xff] }
 0x423   :  { %v9443_v34 = vcombine.low %v1099_v36, %v1103_v24 }
 0x424   :  { %7240 = vmatpush1.bf16.msra.mxu0 %v9379_v42  ;;  %7568 = vmatpush1.bf16.msra.mxu1 %v9381_v58  ;;  %v9444_v42 = vcombine.high %v1099_v36, %v1103_v24  ;;  %v1107_v58 = vld [vmem:[#allocation5 + $0x1d50] sm:$0xff]  ;;  %v1156_v24 = vld [vmem:[#allocation5 + $0x1ed8] sm:$0xff] }
 0x425   :  { %7241 = vmatprep.subr.bf16.mxu0 %v9388_v45  ;;  %7569 = vmatprep.subr.bf16.mxu1 %v9390_v46  ;;  %v1111_v45 = vld [vmem:[#allocation5 + $0x1d70] sm:$0xff]  ;;  %v1108_v46 = vld [vmem:[#allocation5 + $0x1d58] sm:$0xff] }
 0x426   :  { %v9452_v48 = vcombine.high %v1107_v58, %v1111_v45  ;;  %v9451_v54 = vcombine.low %v1107_v58, %v1111_v45  ;;  %v9453_v56 = vcombine.low %v1108_v46, %v1112_v47  ;;  %v1159_v36 = vld [vmem:[#allocation5 + $0x1ef0] sm:$0xff]  ;;  %v7635_v45 = vlaneseq }
 0x427   :  { %v1167_v58 = vld [vmem:[#allocation5 + $0x1f30] sm:$0xff] }
 0x428   :  { %7242 = vmatpush1.bf16.msra.mxu0 %v9387_v55  ;;  %7570 = vmatpush1.bf16.msra.mxu1 %v9389_v49  ;;  %v9454_v55 = vcombine.high %v1108_v46, %v1112_v47  ;;  %v1115_v49 = vld [vmem:[#allocation5 + $0x1d90] sm:$0xff]  ;;  %v1164_v46 = vld [vmem:[#allocation5 + $0x1f18] sm:$0xff] }
 0x429   :  { %7243 = vmatprep.subr.bf16.mxu0 %v9396_v43  ;;  %7571 = vmatprep.subr.bf16.mxu1 %v9398_v16  ;;  %v1119_v43 = vld [vmem:[#allocation5 + $0x1db0] sm:$0xff]  ;;  %v1116_v16 = vld [vmem:[#allocation5 + $0x1d98] sm:$0xff] }
 0x42a   :  { %v9460_v57 = vcombine.high %v1115_v49, %v1119_v43  ;;  %v9459_v8 = vcombine.low %v1115_v49, %v1119_v43  ;;  %v9461_v2 = vcombine.low %v1116_v16, %v1120_v53  ;;  %v1168_v47 = vld [vmem:[#allocation5 + $0x1f38] sm:$0xff]  ;;  %v1171_v49 = vld [vmem:[#allocation5 + $0x1f50] sm:$0xff] }
 0x42b   :  { %v1175_v43 = vld [vmem:[#allocation5 + $0x1f70] sm:$0xff] }
 0x42c   :  { %7244 = vmatpush1.bf16.msra.mxu0 %v9395_v59  ;;  %7572 = vmatpush1.bf16.msra.mxu1 %v9397_v52  ;;  %v9462_v59 = vcombine.high %v1116_v16, %v1120_v53  ;;  %v1123_v52 = vld [vmem:[#allocation5 + $0x1dd0] sm:$0xff]  ;;  %v10381_v16 = vshrl.u32 %v7635_v45, 7  ;;  %v1172_v53 = vld [vmem:[#allocation5 + $0x1f58] sm:$0xff]  ;;  %v9864_v45 = vld [vmem:[#allocation8 + $0xd8] sm:$0xff]  }
 0x42d   :  { %7245 = vmatprep.subr.bf16.mxu0 %v9404_v44  ;;  %7573 = vmatprep.subr.bf16.mxu1 %v9406_v62  ;;  %v1127_v44 = vld [vmem:[#allocation5 + $0x1df0] sm:$0xff]  ;;  %v1124_v62 = vld [vmem:[#allocation5 + $0x1dd8] sm:$0xff] }
 0x42e   :  { %v9468_v3 = vcombine.high %v1123_v52, %v1127_v44  ;;  %v9467_v9 = vcombine.low %v1123_v52, %v1127_v44  ;;  %v9469_v7 = vcombine.low %v1124_v62, %v1128_v0  ;;  %v1179_v44 = vld [vmem:[#allocation5 + $0x1f90] sm:$0xff] }
 0x430   :  { %7246 = vmatpush1.bf16.msra.mxu0 %v9403_v4  ;;  %7574 = vmatpush1.bf16.msra.mxu1 %v9405_v19  ;;  %v9470_v4 = vcombine.high %v1124_v62, %v1128_v0  ;;  %v1131_v19 = vld [vmem:[#allocation5 + $0x1e10] sm:$0xff]  ;;  %v7641_v0 = vsub.s32 1, %v10381_v16 }
 0x431   :  { %7256 = vmatprep.subr.bf16.mxu0 %v9412_v27  ;;  %7584 = vmatprep.subr.bf16.mxu1 %v9414_v1  ;;  %v1135_v27 = vld [vmem:[#allocation5 + $0x1e30] sm:$0xff]  ;;  %v1132_v1 = vld [vmem:[#allocation5 + $0x1e18] sm:$0xff] }
 0x432   :  { %v9476_v10 = vcombine.high %v1131_v19, %v1135_v27  ;;  %v9475_v15 = vcombine.low %v1131_v19, %v1135_v27  ;;  %v1183_v62 = vld [vmem:[#allocation5 + $0x1fb0] sm:$0xff]  ;;  %v7649_v19 = vsub.s32 3, %v10381_v16  ;;  %v9515_v27 = vcombine.low %v1171_v49, %v1175_v43 }
 0x433   :  { %7248 = vmatmul.mubr.bf16.vlgmr.msra.gmra.mrb[4].mxu0 %v10329_v26  ;;  %7576 = vmatmul.mubr.bf16.vlgmr.msra.gmra.mrb[4].mxu1 %v10329_v26  ;;  %v9429_v26 = vcombine.low %v1084_v32, %v1088_v18  ;;  %v9477_v32 = vcombine.low %v1132_v1, %v1136_v6 }
 0x434   :  { %7257 = vmatpush1.bf16.msra.mxu0 %v9411_v11  ;;  %7585 = vmatpush1.bf16.msra.mxu1 %v9413_v12  ;;  %v9478_v11 = vcombine.high %v1132_v1, %v1136_v6  ;;  %v1139_v12 = vld [vmem:[#allocation5 + $0x1e50] sm:$0xff]  ;;  %v9524_v6 = vcombine.high %v1179_v44, %v1183_v62 }
 0x435   :  { %7258 = vmatprep.subr.bf16.mxu0 %v9420_v13  ;;  %7586 = vmatprep.subr.bf16.mxu1 %v9422_v23  ;;  %v1143_v13 = vld [vmem:[#allocation5 + $0x1e70] sm:$0xff]  ;;  %v1140_v23 = vld [vmem:[#allocation5 + $0x1e58] sm:$0xff] }
 0x436   :  { %7288 = vmatprep.mubr.bf16.mxu0 %v10331_v17  ;;  %7616 = vmatprep.mubr.bf16.mxu1 %v10331_v17  ;;  %v9446_v17 = vcombine.high %v1100_v38, %v1104_v39  ;;  %v9484_v18 = vcombine.high %v1139_v12, %v1143_v13  ;;  %v9483_v25 = vcombine.low %v1139_v12, %v1143_v13  ;;  %v1160_v38 = vld [vmem:[#allocation5 + $0x1ef8] sm:$0xff] }
 0x437   :  { %v9485_v28 = vcombine.low %v1140_v23, %v1144_v14  ;;  %v1188_v13 = vld [vmem:[#allocation5 + $0x1fd8] sm:$0xff] }
 0x438   :  { %7259 = vmatpush1.bf16.msra.mxu0 %v9419_v63  ;;  %7587 = vmatpush1.bf16.msra.mxu1 %v9421_v20  ;;  %v9486_v63 = vcombine.high %v1140_v23, %v1144_v14  ;;  %v1147_v20 = vld [vmem:[#allocation5 + $0x1e90] sm:$0xff]  ;;  %v1192_v23 = vld [vmem:[#allocation5 + $0x1ff8] sm:$0xff] }
 0x439   :  { %7260 = vmatprep.subr.bf16.mxu0 %v9428_v21  ;;  %7588 = vmatprep.subr.bf16.mxu1 %v9430_v22  ;;  %v1151_v21 = vld [vmem:[#allocation5 + $0x1eb0] sm:$0xff]  ;;  %v150_v22 = vpop.xlane.xlu0 %149 }
 0x43a   :  { %v9491_v39 = vcombine.low %v1147_v20, %v1151_v21 }
 0x43c   :  { %7261 = vmatpush1.bf16.msra.mxu0 %v9427_v30  ;;  %7589 = vmatpush1.bf16.msra.mxu1 %v9429_v26  ;;  %v9492_v30 = vcombine.high %v1147_v20, %v1151_v21  ;;  %v151_v26 = vmax.f32 %v150_v22, 1e-24  ;;  %v9534_v20 = vcombine.high %v1188_v13, %v1192_v23 }
 0x43d   :  { %7262 = vmatprep.subr.bf16.mxu0 %v9436_v31  ;;  %7590 = vmatprep.subr.bf16.mxu1 %v9438_v61  ;;  %v9494_v31 = vcombine.high %v1148_v60, %v1152_v35  ;;  %v1155_v61 = vld [vmem:[#allocation5 + $0x1ed0] sm:$0xff] }
 0x43e   :  { %9923 = vrsqrt.f32 %v151_v26  ;;  %v9854_v26 = vld [vmem:[#allocation8 + $0x80] sm:$0xff]  }
 0x440   :  { %7263 = vmatpush1.bf16.msra.mxu0 %v9435_v40  ;;  %7591 = vmatpush1.bf16.msra.mxu1 %v9437_v41  ;;  %v9493_v40 = vcombine.low %v1148_v60, %v1152_v35  ;;  %v9500_v41 = vcombine.high %v1155_v61, %v1159_v36  ;;  %v9533_v60 = vcombine.low %v1188_v13, %v1192_v23  ;;  %v9851_v35 = vld [vmem:[#allocation8 + $0x40] sm:$0xff]  }
 0x441   :  { %7264 = vmatprep.subr.bf16.mxu0 %v9444_v42  ;;  %7592 = vmatprep.subr.bf16.mxu1 %v9446_v17  ;;  %v9502_v42 = vcombine.high %v1156_v24, %v1160_v38  ;;  %v1163_v17 = vld [vmem:[#allocation5 + $0x1f10] sm:$0xff]  ;;  %v9886_v23 = vld [vmem:[#allocation8 + $0x180] sm:$0xff]  }
 0x444   :  { %7265 = vmatpush1.bf16.msra.mxu0 %v9443_v34  ;;  %7593 = vmatpush1.bf16.msra.mxu1 %v9445_v50  ;;  %v9499_v34 = vcombine.low %v1155_v61, %v1159_v36  ;;  %v9501_v50 = vcombine.low %v1156_v24, %v1160_v38  ;;  %v9856_v36 = vld [vmem:[#allocation8 + $0xc8] sm:$0xff]  }
 0x445   :  { %7266 = vmatprep.subr.bf16.mxu0 %v9452_v48  ;;  %7594 = vmatprep.subr.bf16.mxu1 %v9454_v55  ;;  %v9508_v48 = vcombine.high %v1163_v17, %v1167_v58  ;;  %v9510_v55 = vcombine.high %v1164_v46, %v1168_v47  ;;  %v9857_v38 = vld [vmem:[#allocation8 + $0x8] sm:$0xff]  }
 0x448   :  { %7267 = vmatpush1.bf16.msra.mxu0 %v9451_v54  ;;  %7595 = vmatpush1.bf16.msra.mxu1 %v9453_v56  ;;  %v1176_v54 = vld [vmem:[#allocation5 + $0x1f78] sm:$0xff]  ;;  %v9507_v56 = vcombine.low %v1163_v17, %v1167_v58  ;;  %v9863_v58 = vld [vmem:[#allocation8 + $0x58] sm:$0xff]  }
 0x449   :  { %7268 = vmatprep.subr.bf16.mxu0 %v9460_v57  ;;  %7596 = vmatprep.subr.bf16.mxu1 %v9462_v59  ;;  %v9509_v57 = vcombine.low %v1164_v46, %v1168_v47  ;;  %v9516_v59 = vcombine.high %v1171_v49, %v1175_v43  ;;  %v9518_v52 = vcombine.high %v1172_v53, %v1176_v54  ;;  %v9862_v17 = vld [vmem:[#allocation8 + $0x90] sm:$0xff]   ;;  %v9866_v46 = vld [vmem:[#allocation8 + $0x98] sm:$0xff]   ;;  %v9867_v47 = vld [vmem:[#allocation8 + $0x60] sm:$0xff]   ;;  %v7645_v43 = vsub.s32 2, %v10381_v16 }
 0x44a   :  { %v9517_v1 = vcombine.low %v1172_v53, %v1176_v54  ;;  %v9871_v49 = vld [vmem:[#allocation8 + $0x68] sm:$0xff]  }
 0x44b   :  { %v9872_v53 = vld [vmem:[#allocation8 + $0xe8] sm:$0xff]  }
 0x44c   :  { %7269 = vmatpush1.bf16.msra.mxu0 %v9459_v8  ;;  %7597 = vmatpush1.bf16.msra.mxu1 %v9461_v2  ;;  %v1180_v8 = vld [vmem:[#allocation5 + $0x1f98] sm:$0xff]  ;;  %v9873_v54 = vld [vmem:[#allocation8 + $0x28] sm:$0xff]  }
 0x44d   :  { %7270 = vmatprep.subr.bf16.mxu0 %v9468_v3  ;;  %7598 = vmatprep.subr.bf16.mxu1 %v9470_v4  ;;  %v1184_v2 = vld [vmem:[#allocation5 + $0x1fb8] sm:$0xff]  ;;  %v10384_v3 = vpop.eup %9923  ;;  %v10386_v4 = vld [vmem:[#allocation7] sm:$0xff] }
 0x44e   :  { %v7642_v12 = vrot.slane %v10386_v4, %v7641_v0  ;;  %v7628_v14 = vmul.f32 %v10384_v3, %v10363_v37  ;;  %v9852_v37 = vld [vmem:[#allocation8 + $0xc0] sm:$0xff]   ;;  %v9876_v0 = vld [vmem:[#allocation8 + $0xf0] sm:$0xff]  }
 0x450   :  { %7271 = vmatpush1.bf16.msra.mxu0 %v9467_v9  ;;  %7599 = vmatpush1.bf16.msra.mxu1 %v9469_v7  ;;  %v9526_v9 = vcombine.high %v1180_v8, %v1184_v2  ;;  %v1187_v7 = vld [vmem:[#allocation5 + $0x1fd0] sm:$0xff] }
 0x451   :  { %7272 = vmatprep.subr.bf16.mxu0 %v9476_v10  ;;  %7600 = vmatprep.subr.bf16.mxu1 %v9478_v11  ;;  %v1191_v10 = vld [vmem:[#allocation5 + $0x1ff0] sm:$0xff]  ;;  %v7626_v11 = vmul.f32 %v10384_v3, %v10361_v51 }
 0x452   :  { %v9531_v51 = vcombine.low %v1187_v7, %v1191_v10 }
 0x453   :  { %v7676_v21 = vadd.f32 %v7642_v12, %v7626_v11  ;;  %v9884_v11 = vld [vmem:[#allocation8 + $0x1c0] sm:$0xff]  }
 0x454   :  { %7273 = vmatpush1.bf16.msra.mxu0 %v9475_v15  ;;  %7601 = vmatpush1.bf16.msra.mxu1 %v9477_v32  ;;  %v7650_v15 = vrot.slane %v10386_v4, %v7649_v19  ;;  %v9523_v32 = vcombine.low %v1179_v44, %v1183_v62  ;;  %v7627_v44 = vmul.f32 %v10384_v3, %v10359_v33  ;;  %v9878_v19 = vld [vmem:[#allocation8 + $0xb0] sm:$0xff]   ;;  %v9882_v33 = vld [vmem:[#allocation8 + $0xb8] sm:$0xff]   ;;  %v9885_v12 = vld [vmem:[#allocation8 + $0x100] sm:$0xff]  }
 0x455   :  { %7274 = vmatprep.subr.bf16.mxu0 %v9484_v18  ;;  %7602 = vmatprep.subr.bf16.mxu1 %v9486_v63  ;;  %v9525_v18 = vcombine.low %v1180_v8, %v1184_v2  ;;  %v9532_v63 = vcombine.high %v1187_v7, %v1191_v10  ;;  %v7646_v62 = vrot.slane %v10386_v4, %v7645_v43  ;;  %v9877_v8 = vld [vmem:[#allocation8 + $0x30] sm:$0xff]   ;;  %v9883_v7 = vld [vmem:[#allocation8 + $0x140] sm:$0xff]  }
 0x456   :  { %v7678_v22 = vadd.f32 %v7650_v15, %v7628_v14  ;;  %v9887_v14 = vld [vmem:[#allocation8 + $0x148] sm:$0xff]  }
 0x458   :  { %7275 = vmatpush1.bf16.msra.mxu0 %v9483_v25  ;;  %7603 = vmatpush1.bf16.msra.mxu1 %v9485_v28  ;;  %v7684_v25 = vmax.f32 %v7676_v21, 0.0  ;;  %v7686_v28 = vmax.f32 %v7678_v22, 0.0  ;;  %v9892_v21 = vld [vmem:[#allocation8 + $0x1d0] sm:$0xff]  }
 0x459   :  { %7276 = vmatprep.subr.bf16.mxu0 %v9492_v30  ;;  %7604 = vmatprep.subr.bf16.mxu1 %v9494_v31  ;;  %v9853_v30 = vld [vmem:[#allocation8] sm:$0xff]   ;;  %v9855_v31 = vld [vmem:[#allocation8 + $0x48] sm:$0xff]   ;;  %v9893_v22 = vld [vmem:[#allocation8 + $0x110] sm:$0xff]  }
 0x45a   :  { %v7692_v61 = vpack.c.bf16 %v7684_v25, %v7684_v25  ;;  %v7694_v24 = vpack.c.bf16 %v7686_v28, %v7686_v28  ;;  %v9898_v25 = vld [vmem:[#allocation8 + $0x198] sm:$0xff]   ;;  %v9899_v28 = vld [vmem:[#allocation8 + $0x160] sm:$0xff]  }
 0x45c   :  { %7277 = vmatpush1.bf16.msra.mxu0 %v9491_v39  ;;  %7605 = vmatpush1.bf16.msra.mxu1 %v9493_v40  ;;  %v9858_v39 = vld [vmem:[#allocation8 + $0x88] sm:$0xff]   ;;  %v9859_v40 = vld [vmem:[#allocation8 + $0x50] sm:$0xff]  }
 0x45d   :  { %7278 = vmatprep.subr.bf16.mxu0 %v9500_v41  ;;  %7606 = vmatprep.subr.bf16.mxu1 %v9502_v42  ;;  %v9860_v41 = vld [vmem:[#allocation8 + $0xd0] sm:$0xff]  }
 0x45e   :  { %v9861_v42 = vld [vmem:[#allocation8 + $0x10] sm:$0xff]  }
 0x460   :  { %7279 = vmatpush1.bf16.msra.mxu0 %v9499_v34  ;;  %7607 = vmatpush1.bf16.msra.mxu1 %v9501_v50  ;;  %v9868_v34 = vld [vmem:[#allocation8 + $0xe0] sm:$0xff]  }
 0x461   :  { %7280 = vmatprep.subr.bf16.mxu0 %v9508_v48  ;;  %7608 = vmatprep.subr.bf16.mxu1 %v9510_v55  ;;  %v9869_v50 = vld [vmem:[#allocation8 + $0x20] sm:$0xff]   ;;  %v7637_v48 = vsub.s32 0, %v10381_v16 }
 0x462   :  { %v9870_v55 = vld [vmem:[#allocation8 + $0xa0] sm:$0xff]  }
 0x464   :  { %7281 = vmatpush1.bf16.msra.mxu0 %v9507_v56  ;;  %7609 = vmatpush1.bf16.msra.mxu1 %v9509_v57  ;;  %v7625_v56 = vmul.f32 %v10384_v3, %v10357_v29  ;;  %v7638_v57 = vrot.slane %v10386_v4, %v7637_v48  ;;  %v9879_v29 = vld [vmem:[#allocation8 + $0x78] sm:$0xff]   ;;  %v7665_v48 = vsub.s32 7, %v10381_v16 }
 0x465   :  { %7282 = vmatprep.subr.bf16.mxu0 %v9516_v59  ;;  %7610 = vmatprep.subr.bf16.mxu1 %v9518_v52  ;;  %v9874_v59 = vld [vmem:[#allocation8 + $0xa8] sm:$0xff]   ;;  %v9875_v52 = vld [vmem:[#allocation8 + $0x70] sm:$0xff]  }
 0x466   :  { %v7675_v2 = vadd.f32 %v7638_v57, %v7625_v56 }
 0x468   :  { %7283 = vmatpush1.bf16.msra.mxu0 %v9515_v27  ;;  %7611 = vmatpush1.bf16.msra.mxu1 %v9517_v1  ;;  %v7677_v27 = vadd.f32 %v7646_v62, %v7627_v44  ;;  %v9880_v1 = vld [vmem:[#allocation8 + $0xf8] sm:$0xff]  }
 0x469   :  { %7284 = vmatprep.subr.bf16.mxu0 %v9524_v6  ;;  %7612 = vmatprep.subr.bf16.mxu1 %v9526_v9  ;;  %v9881_v6 = vld [vmem:[#allocation8 + $0x38] sm:$0xff]   ;;  %v7683_v9 = vmax.f32 %v7675_v2, 0.0 }
 0x46a   :  { %v7685_v10 = vmax.f32 %v7677_v27, 0.0 }
 0x46b   :  { %v7691_v13 = vpack.c.bf16 %v7683_v9, %v7683_v9 }
 0x46c   :  { %7285 = vmatpush1.bf16.msra.mxu0 %v9523_v32  ;;  %7613 = vmatpush1.bf16.msra.mxu1 %v9525_v18  ;;  %v7693_v15 = vpack.c.bf16 %v7685_v10, %v7685_v10  ;;  %v9888_v32 = vld [vmem:[#allocation8 + $0x1c8] sm:$0xff]  }
 0x46d   :  { %7286 = vmatprep.subr.bf16.mxu0 %v9532_v63  ;;  %7614 = vmatprep.subr.bf16.mxu1 %v9534_v20  ;;  %v9889_v18 = vld [vmem:[#allocation8 + $0x108] sm:$0xff]   ;;  %v9891_v20 = vld [vmem:[#allocation8 + $0x150] sm:$0xff]  }
 0x46e   :  { %v9890_v63 = vld [vmem:[#allocation8 + $0x188] sm:$0xff]  }
 0x470   :  { %7287 = vmatpush1.bf16.msra.mxu0 %v9531_v51  ;;  %7615 = vmatpush1.bf16.msra.mxu1 %v9533_v60  ;;  %v9894_v51 = vld [vmem:[#allocation8 + $0x190] sm:$0xff]   ;;  %v9895_v60 = vld [vmem:[#allocation8 + $0x158] sm:$0xff]  }
 0x471   :  { %9609 = vmatprep.subr.bf16.mxu0 %v9851_v35  ;;  %9631 = vmatprep.subr.bf16.mxu1 %v9852_v37  ;;  %v9896_v35 = vld [vmem:[#allocation8 + $0x1d8] sm:$0xff]  }
 0x472   :  { %v9897_v37 = vld [vmem:[#allocation8 + $0x118] sm:$0xff]  }
 0x473   :  { %7289 = vmatmul.mubr.bf16.vlgmr.msra.gmra.mrb[4].mxu0 %v10339_v5  ;;  %7617 = vmatmul.mubr.bf16.vlgmr.msra.gmra.mrb[4].mxu1 %v10339_v5  ;;  %v9865_v5 = vld [vmem:[#allocation8 + $0x18] sm:$0xff]  }
 0x474   :  { %9610 = vmatpush3.bf16.msra.mxu0 %v9853_v30  ;;  %8250 = vmatprep.mubr.bf16.mxu0 %v7692_v61  ;;  %v9900_v30 = vld [vmem:[#allocation8 + $0x1e0] sm:$0xff]   ;;  %v9903_v61 = vld [vmem:[#allocation8 + $0x168] sm:$0xff]  }
 0x475   :  { %9632 = vmatpush3.bf16.msra.mxu1 %v9854_v26  ;;  %8290 = vmatprep.mubr.bf16.mxu1 %v7694_v24  ;;  %v9901_v26 = vld [vmem:[#allocation8 + $0x120] sm:$0xff]   ;;  %v9905_v24 = vld [vmem:[#allocation8 + $0x128] sm:$0xff]  }
 0x476   :  { %9611 = vmatprep.subr.bf16.mxu0 %v9855_v31  ;;  %9633 = vmatprep.subr.bf16.mxu1 %v9856_v36  ;;  %v9902_v31 = vld [vmem:[#allocation8 + $0x1a0] sm:$0xff]   ;;  %v9904_v36 = vld [vmem:[#allocation8 + $0x1e8] sm:$0xff]  }
 0x478   :  { %9612 = vmatpush3.bf16.msra.mxu0 %v9857_v38  ;;  %v9906_v38 = vld [vmem:[#allocation8 + $0x1a8] sm:$0xff]  }
 0x479   :  { %9634 = vmatpush3.bf16.msra.mxu1 %v9858_v39  ;;  %9613 = vmatprep.subr.bf16.mxu0 %v9859_v40  ;;  %v9907_v39 = vld [vmem:[#allocation8 + $0x170] sm:$0xff]  }
 0x47a   :  { %9635 = vmatprep.subr.bf16.mxu1 %v9860_v41  ;;  %v9908_v40 = vld [vmem:[#allocation8 + $0x1f0] sm:$0xff]  }
 0x47b   :  { %v9909_v41 = vld [vmem:[#allocation8 + $0x130] sm:$0xff]  }
 0x47c   :  { %9614 = vmatpush3.bf16.msra.mxu0 %v9861_v42  ;;  %v9910_v42 = vld [vmem:[#allocation8 + $0x1b0] sm:$0xff]  }
 0x47d   :  { %9636 = vmatpush3.bf16.msra.mxu1 %v9862_v17  ;;  %9615 = vmatprep.subr.bf16.mxu0 %v9863_v58  ;;  %v9911_v17 = vld [vmem:[#allocation8 + $0x178] sm:$0xff]  }
 0x47e   :  { %9637 = vmatprep.subr.bf16.mxu1 %v9864_v45  ;;  %v9912_v58 = vld [vmem:[#allocation8 + $0x1f8] sm:$0xff]  }
 0x47f   :  { %v9913_v45 = vld [vmem:[#allocation8 + $0x138] sm:$0xff]  }
 0x480   :  { %9616 = vmatpush3.bf16.msra.mxu0 %v9865_v5  ;;  %v9914_v5 = vld [vmem:[#allocation8 + $0x1b8] sm:$0xff]  }
 0x481   :  { %9638 = vmatpush3.bf16.msra.mxu1 %v9866_v46  ;;  %9617 = vmatprep.subr.bf16.mxu0 %v9867_v47  ;;  %v10101_v46 = vmov 0.0   ;;  %v7653_v47 = vsub.s32 4, %v10381_v16 }
 0x482   :  { %9639 = vmatprep.subr.bf16.mxu1 %v9868_v34  ;;  %v7661_v34 = vsub.s32 6, %v10381_v16 }
 0x484   :  { %9618 = vmatpush3.bf16.msra.mxu0 %v9869_v50  ;;  %v7657_v50 = vsub.s32 5, %v10381_v16  ;;  %v7662_v43 = vrot.slane %v10386_v4, %v7661_v34 }
 0x485   :  { %9640 = vmatpush3.bf16.msra.mxu1 %v9870_v55  ;;  %9619 = vmatprep.subr.bf16.mxu0 %v9871_v49  ;;  %v7654_v55 = vrot.slane %v10386_v4, %v7653_v47 }
 0x486   :  { %9641 = vmatprep.subr.bf16.mxu1 %v9872_v53  ;;  %v7658_v53 = vrot.slane %v10386_v4, %v7657_v50 }
 0x488   :  { %9620 = vmatpush3.bf16.msra.mxu0 %v9873_v54 }
 0x489   :  { %9642 = vmatpush3.bf16.msra.mxu1 %v9874_v59  ;;  %9621 = vmatprep.subr.bf16.mxu0 %v9875_v52  ;;  %v7666_v59 = vrot.slane %v10386_v4, %v7665_v48 }
 0x48a   :  { %9643 = vmatprep.subr.bf16.mxu1 %v9876_v0 }
 0x48c   :  { %9622 = vmatpush3.bf16.msra.mxu0 %v9877_v8 }
 0x48d   :  { %9644 = vmatpush3.bf16.msra.mxu1 %v9878_v19  ;;  %9623 = vmatprep.subr.bf16.mxu0 %v9879_v29 }
 0x48e   :  { %9645 = vmatprep.subr.bf16.mxu1 %v9880_v1 }
 0x490   :  { %9624 = vmatpush3.bf16.msra.mxu0 %v9881_v6 }
 0x491   :  { %9646 = vmatpush3.bf16.msra.mxu1 %v9882_v33  ;;  %9653 = vmatprep.subr.bf16.mxu0 %v9883_v7 }
 0x492   :  { %9675 = vmatprep.subr.bf16.mxu1 %v9884_v11  ;;  %v9915_v11 = vld [vmem:[%s10467_s5] sm:$0xff]  }
 0x493   :  { %8251 = vmatmul.mubr.bf16.vlgmr.msra.gmra.mrb[8].mxu0 %v7691_v13 }
 0x494   :  { %8291 = vmatmul.mubr.bf16.vlgmr.msra.gmra.mrb[8].mxu1 %v7693_v15  ;;  %9654 = vmatpush3.bf16.msra.mxu0 %v9885_v12  ;;  %v9918_v15 = vld [vmem:[%s10467_s5 + $0x18] sm:$0xff]  }
 0x495   :  { %9676 = vmatpush3.bf16.msra.mxu1 %v9886_v23  ;;  %9655 = vmatprep.subr.bf16.mxu0 %v9887_v14  ;;  %v9917_v14 = vld [vmem:[%s10467_s5 + $0x10] sm:$0xff]  }
 0x496   :  { %9677 = vmatprep.subr.bf16.mxu1 %v9888_v32  ;;  %v9919_v32 = vld [vmem:[%s10467_s5 + $0x20] sm:$0xff]  }
 0x498   :  { %9656 = vmatpush3.bf16.msra.mxu0 %v9889_v18 }
 0x499   :  { %9678 = vmatpush3.bf16.msra.mxu1 %v9890_v63  ;;  %9657 = vmatprep.subr.bf16.mxu0 %v9891_v20  ;;  %v9535_v20 = vld [vmem:[#allocation10] ss:$0 sm:$0xff] }
 0x49a   :  { %9679 = vmatprep.subr.bf16.mxu1 %v9892_v21 }
 0x49c   :  { %9658 = vmatpush3.bf16.msra.mxu0 %v9893_v22 }
 0x49d   :  { %9680 = vmatpush3.bf16.msra.mxu1 %v9894_v51  ;;  %9659 = vmatprep.subr.bf16.mxu0 %v9895_v60 }
 0x49e   :  { %9681 = vmatprep.subr.bf16.mxu1 %v9896_v35 }
 0x4a0   :  { %9660 = vmatpush3.bf16.msra.mxu0 %v9897_v37 }
 0x4a1   :  { %9682 = vmatpush3.bf16.msra.mxu1 %v9898_v25  ;;  %9661 = vmatprep.subr.bf16.mxu0 %v9899_v28 }
 0x4a2   :  { %9683 = vmatprep.subr.bf16.mxu1 %v9900_v30 }
 0x4a4   :  { %9662 = vmatpush3.bf16.msra.mxu0 %v9901_v26 }
 0x4a5   :  { %9684 = vmatpush3.bf16.msra.mxu1 %v9902_v31  ;;  %9663 = vmatprep.subr.bf16.mxu0 %v9903_v61  ;;  %v9920_v31 = vld [vmem:[%s10467_s5 + $0x28] sm:$0xff]   ;;  %v9921_v61 = vld [vmem:[%s10467_s5 + $0x30] sm:$0xff]  }
 0x4a6   :  { %9685 = vmatprep.subr.bf16.mxu1 %v9904_v36  ;;  %v9922_v36 = vld [vmem:[%s10467_s5 + $0x38] sm:$0xff]  }
 0x4a8   :  { %9664 = vmatpush3.bf16.msra.mxu0 %v9905_v24 }
 0x4a9   :  { %9686 = vmatpush3.bf16.msra.mxu1 %v9906_v38  ;;  %9665 = vmatprep.subr.bf16.mxu0 %v9907_v39 }
 0x4aa   :  { %9687 = vmatprep.subr.bf16.mxu1 %v9908_v40 }
 0x4ac   :  { %9666 = vmatpush3.bf16.msra.mxu0 %v9909_v41 }
 0x4ad   :  { %9688 = vmatpush3.bf16.msra.mxu1 %v9910_v42  ;;  %9667 = vmatprep.subr.bf16.mxu0 %v9911_v17 }
 0x4ae   :  { %9689 = vmatprep.subr.bf16.mxu1 %v9912_v58 }
 0x4b0   :  { %9668 = vmatpush3.bf16.msra.mxu0 %v9913_v45 }
 0x4b1   :  { %9690 = vmatpush3.bf16.msra.mxu1 %v9914_v5  ;;  %9706 = vmatprep.subr.bf16.mxu0 %v10101_v46 }
 0x546   :  { %v7290_v49 = vpop.f32.mrb[4].mxu0  ;;  %v7618_v56 = vpop.f32.mrb[4].mxu1 }
 0x547   :  { %v7629_v54 = vmul.f32 %v10384_v3, %v7290_v49  ;;  %v7292_v57 = vpop.f32.mrb[5].mxu0  ;;  %v7631_v52 = vmul.f32 %v10384_v3, %v7618_v56  ;;  %v7620_v62 = vpop.f32.mrb[5].mxu1 }
 0x548   :  { %v7630_v44 = vmul.f32 %v10384_v3, %v7292_v57  ;;  %v7294_v0 = vpop.f32.mrb[6].mxu0  ;;  %v7632_v8 = vmul.f32 %v10384_v3, %v7620_v62  ;;  %v7622_v2 = vpop.f32.mrb[6].mxu1  ;;  %v9916_v3 = vld [vmem:[%s10467_s5 + $0x8] sm:$0xff]   ;;  %s10103_s5 = smov [#allocation13]  }
 0x549   :  { %v7679_v16 = vadd.f32 %v7654_v55, %v7629_v54  ;;  %v7295_v19 = vpop.f32.mrb[7].mxu0  ;;  %v7681_v29 = vadd.f32 %v7662_v43, %v7631_v52  ;;  %v7623_v1 = vpop.f32.mrb[7].mxu1  ;;  %v9600_v55 = vld [vmem:[#allocation11] ss:$0 sm:$0xff]  ;;  %s8499_s15 = sshll.u32 %s10103_s5, 4  ;;  %s8500_s15 = int_to_ptr.vmem [resolvable:$true] %s8499_s15 }
 0x54a   :  { %v7680_v27 = vadd.f32 %v7658_v53, %v7630_v44  ;;  %v7682_v9 = vadd.f32 %v7666_v59, %v7632_v8  ;;  %s10059_s3 = scalar_lea.vmem %s8500_s15, 128  ;;  %p10064_p7 = scmp.lt.s32.totalorder %s8500_s15, %s8500_s15 }
 0x54b   :  { %v7687_v6 = vmax.f32 %v7679_v16, 0.0  ;;  %v7689_v33 = vmax.f32 %v7681_v29, 0.0  ;;  %p10060_p6 = scmp.ne.s32.totalorder %s8500_s15, %s10059_s3  ;;  %p10065_p8 = scmp.lt.s32.totalorder %s10059_s3, %s10059_s3 }
 0x54c   :  { %v7688_v7 = vmax.f32 %v7680_v27, 0.0  ;;  %v7690_v10 = vmax.f32 %v7682_v9, 0.0 }
 0x54d   :  { %v7695_v12 = vpack.c.bf16 %v7687_v6, %v7687_v6  ;;  %v7697_v23 = vpack.c.bf16 %v7689_v33, %v7689_v33  ;;  %p10066_p9 = por %p10065_p8, %p10064_p7 }
 0x54e   :  { %v7696_v4 = vpack.c.bf16 %v7688_v7, %v7688_v7  ;;  %v7698_v13 = vpack.c.bf16 %v7690_v10, %v7690_v10 }
 0x54f   :  { %p10067_p10 = pnand %p10066_p9, %p10060_p6 }
 0x550   :  { %8330 = vmatprep.mubr.bf16.mxu0 %v7696_v4  ;;  %8370 = vmatprep.mubr.bf16.mxu1 %v7698_v13 }
 0x551   :  { %8331 = vmatmul.mubr.bf16.vlgmr.msra.gmra.mrb[12].mxu0 %v7695_v12  ;;  %8371 = vmatmul.mubr.bf16.vlgmr.msra.gmra.mrb[12].mxu1 %v7697_v23 }
 0x552   :  { %9707 = vmatpush3.bf16.msra.mxu0 %v9915_v11  ;;  %9722 = vmatprep.mubr.msk.bf16.mxu0 %vm10102_vm0, %v10101_v46 }
 0x553   :  { %9708 = vmatprep.subr.bf16.mxu0 %v10101_v46 }
 0x556   :  { %9709 = vmatpush3.bf16.msra.mxu0 %v9916_v3 }
 0x557   :  { %9710 = vmatprep.subr.bf16.mxu0 %v10101_v46 }
 0x55a   :  { %9711 = vmatpush3.bf16.msra.mxu0 %v9917_v14 }
 0x55b   :  { %9712 = vmatprep.subr.bf16.mxu0 %v10101_v46 }
 0x55e   :  { %9713 = vmatpush3.bf16.msra.mxu0 %v9918_v15 }
 0x55f   :  { %9714 = vmatprep.subr.bf16.mxu0 %v10101_v46 }
 0x562   :  { %9715 = vmatpush3.bf16.msra.mxu0 %v9919_v32 }
 0x563   :  { %9716 = vmatprep.subr.bf16.mxu0 %v10101_v46 }
 0x566   :  { %v9625_v18 = vpop.f32.mrb[8].mxu0  ;;  %9717 = vmatpush3.bf16.msra.mxu0 %v9920_v31 }
 0x567   :  { %v9647_v63 = vpop.f32.mrb[8].mxu1  ;;  %v9626_v21 = vpop.f32.mrb[9].mxu0  ;;  %9718 = vmatprep.subr.bf16.mxu0 %v10101_v46 }
 0x568   :  { %v9627_v22 = vadd.f32 %v9626_v21, %v9625_v18  ;;  %v9648_v51 = vpop.f32.mrb[9].mxu1  ;;  %v9628_v60 = vpop.f32.mrb[10].mxu0 }
 0x569   :  { %v9649_v35 = vadd.f32 %v9648_v51, %v9647_v63  ;;  %v9650_v37 = vpop.f32.mrb[10].mxu1  ;;  %v9629_v25 = vpop.f32.mrb[11].mxu0 }
 0x56a   :  { %v8253_v28 = vadd.f32 %v9627_v22, %v9535_v20  ;;  %v9651_v30 = vpop.f32.mrb[11].mxu1  ;;  %9719 = vmatpush3.bf16.msra.mxu0 %v9921_v61 }
 0x56b   :  { %9720 = vmatprep.subr.bf16.mxu0 %v10101_v46 }
 0x56c   :  { %v8293_v26 = vadd.f32 %v9649_v35, %v8253_v28 }
 0x56e   :  { %9721 = vmatpush3.bf16.msra.mxu0 %v9922_v36 }
 0x624   :  { %v9669_v24 = vpop.f32.mrb[12].mxu0  ;;  %v9691_v38 = vpop.f32.mrb[12].mxu1 }
 0x625   :  { %v9670_v39 = vpop.f32.mrb[13].mxu0  ;;  %v9692_v41 = vpop.f32.mrb[13].mxu1 }
 0x626   :  { %v9671_v40 = vadd.f32 %v9670_v39, %v9669_v24  ;;  %v9672_v42 = vpop.f32.mrb[14].mxu0  ;;  %v9693_v17 = vadd.f32 %v9692_v41, %v9691_v38  ;;  %v9694_v58 = vpop.f32.mrb[14].mxu1 }
 0x627   :  { %v9673_v45 = vpop.f32.mrb[15].mxu0  ;;  %v9695_v47 = vpop.f32.mrb[15].mxu1 }
 0x628   :  { %v8333_v5 = vadd.f32 %v9671_v40, %v8293_v26 }
 0x62a   :  { %v8373_v34 = vadd.f32 %v9693_v17, %v8333_v5 }
 0x62c   :  { %v8378_v50 = vmax.f32 %v8373_v34, 0.0 }
 0x62e   :  { %v8379_v48 = vpack.c.bf16 %v8378_v50, %v8378_v50 }
 0x630   :  { %9723 = vmatmul.mubr.bf16.vlgmr.msra.gmra.mrb[16].mxu0 %v8379_v48 }
 0x703   :  { %v8485_v49 = vpop.f32.mrb[16].mxu0 }
 0x704   :  { %v8486_v46 = vadd.f32 %v9600_v55, %v8485_v49  ;;  %v9724_v43 = vpop.f32.mrb[17].mxu0 }
 0x705   :  { %v8488_v53 = vpop.f32.mrb[18].mxu0 }
 0x706   :  { %v9725_v54 = vpop.f32.mrb[19].mxu0  ;;  %8492 = vst.msk [vmem:[#allocation13] sm:$0xff] %vm8491_vm1, %v8486_v46 }
 0x707   :  { %10070 = shalt.err (!%p10067_p10)
}
 0x708   :  { %s10071_s18 = scalar_lea.hbm %s10469_s7, 128 }
 0x709   :  { %p10072_p11 = scmp.ne.s32.totalorder %s10469_s7, %s10071_s18  ;;  %p10075_p12 = scmp.lt.u32.totalorder %s10071_s18, %s10469_s7 }
 0x70b   :  { %p10077_p13 = pnand %p10075_p12, %p10072_p11 }
 0x70d   :  { %10080 = shalt.err (!%p10077_p13)
}
 0x70e   :  { %8502 = dma.vmem_to_hbm [thread:$0]  %s8500_s15, 128, %s10469_s7, [#allocation4]  }
 0x70f   :  { %10089 = dma.done.wait [#allocation4], 128  }
 0x710   :  { %10090 = vsyncadd [#allocation4], 4294967168 }
 0x711   :  { %8506 = vsyncpa [#allocation3], 1 }
 0x712   :  { %8507 = vsyncpa [#allocation6], 1 }
 0x713   :  { %8508 = vsyncpa [#allocation9], 1 }
 0x714   :  { %8509 = vsyncpa [#allocation12], 1 }
 0x715   :  { %8510 = vsyncpa [#allocation4], 1 }

</bundles_post_ra>
